<compile_context>
chip_gen: v7x
topology: tpu7x:2x2x1
jax: 0.10.0
libtpu: 0.0.40
codegen_flags: <defaults>
</compile_context>

<pallas_src>
import functools

import jax
import jax.numpy as jnp
from jax.experimental import pallas as pl
from jax.experimental.pallas import tpu as pltpu

NEG_SLOPE = 0.4
_HALO = 8                           # input-frame halo on each side of a tile
_VMEM_BUDGET = 38 * 1024 * 1024     # target working set (v7x-safe)
_VMEM_LIMIT = 48 * 1024 * 1024


# ----------------------------- kernel ---------------------------------------
def _fused_upsampler_kernel(xe_ref, e1c_ref, e1s_ref, e2c_ref, e2s_ref,
                            w1v_ref, w2v_ref, b_ref, out_ref, y_ref, *, t_valid):
    """One (batch, time-tile) grid step: x tile (+halos) -> 256x output block.

    xe_ref : (1, 1, F, tT+16)  input frames j0-8 .. j0+tT+7
    e1c/e1s: (tT+16, 16tT+256) bf16 0/1 expansion matrices (layer-1 centre/side)
    e2c/e2s: (128, 2048)/(130, 2048) bf16 expansion matrices (layer-2)
    w1v/w2v: (6, width) f32 per-output-lane taps  [centre d=0,1,2, side d=0,1,2]
    b_ref  : (2,) f32 biases in SMEM
    out_ref: (1, F, 256*tT) output block, natural time order
    y_ref  : (F, 16tT+256) f32 scratch holding the layer-1 intermediate (+halo)
    """
    F, w1_len = y_ref.shape
    tT = (w1_len - 2 * 16 * _HALO) // 16
    n_chunks = tT // 8
    j = pl.program_id(1)

    def expand(src, e):
        # src[:, q // 16] (or the +/-1 side variant) via an MXU matmul with a
        # 0/1 matrix.  hi/lo bf16 split keeps the result at ~f32 accuracy.
        hi = src.astype(jnp.bfloat16)
        lo = (src - hi.astype(jnp.float32)).astype(jnp.bfloat16)
        return (jnp.dot(hi, e, preferred_element_type=jnp.float32)
                + jnp.dot(lo, e, preferred_element_type=jnp.float32))

    def up(v):      # v[f-1, :], zero row at f == 0     (height tap 2)
        return jnp.concatenate([jnp.zeros_like(v[:1]), v[:-1]], axis=0)

    def down(v):    # v[f+1, :], zero row at f == F-1   (height tap 0)
        return jnp.concatenate([v[1:], jnp.zeros_like(v[:1])], axis=0)

    def leaky(a):
        return jnp.maximum(a, NEG_SLOPE * a)

    # -------- layer 1: x tile (+8-frame halos) -> intermediate Y in VMEM -----
    xe = xe_ref[0, 0].astype(jnp.float32)                  # (F, tT+16)
    xc = expand(xe, e1c_ref[...])                          # (F, w1_len)
    xs = expand(xe, e1s_ref[...])
    w1 = w1v_ref[...]                                      # (6, w1_len)
    y = (up(xc) * w1[0:1] + xc * w1[1:2] + down(xc) * w1[2:3]
         + up(xs) * w1[3:4] + xs * w1[4:5] + down(xs) * w1[5:6] + b_ref[0])
    y = leaky(y)
    # Intermediate columns outside the true 16*T range (sequence edges / padded
    # frames) must behave as "absent" (zero contribution) for layer 2.
    gcol = (jax.lax.broadcasted_iota(jnp.int32, (F, w1_len), 1)
            + 16 * tT * j - 16 * _HALO)
    y = jnp.where((gcol >= 0) & (gcol < 16 * t_valid), y, 0.0)
    y_ref[...] = y

    # -------- layer 2: 128 Y columns -> 2048 output samples per chunk --------
    e2c = e2c_ref[...]
    e2s = e2s_ref[...]
    w2 = w2v_ref[...]                                      # (6, 2048)
    # Hoisted broadcasts (JAX does not CSE broadcast_in_dim inside the loop).
    wp = [jnp.broadcast_to(w2[i:i + 1], (F, 2048)) for i in range(6)]
    b2 = b_ref[1]
    base = 16 * _HALO                                      # local col of Y[16*j0]
    for c in range(n_chunks):
        yc = y_ref[:, base + 128 * c: base + 128 * (c + 1)]            # (F, 128)
        ys = y_ref[:, base + 128 * c - 1: base + 128 * (c + 1) + 1]    # (F, 130)
        pc = expand(yc, e2c)                                # Y[:, q//16]
        ps = expand(ys, e2s)                                # Y[:, q//16 -/+ 1]
        acc = (up(pc) * wp[0] + pc * wp[1] + down(pc) * wp[2]
               + up(ps) * wp[3] + ps * wp[4] + down(ps) * wp[5] + b2)
        out_ref[0, :, 2048 * c: 2048 * (c + 1)] = leaky(acc).astype(out_ref.dtype)


# ----------------------------- host-side helpers -----------------------------
def _center_expand_matrix(k, width):
    m = jnp.arange(k)[:, None]
    q = jnp.arange(width)[None, :]
    return (m == q // 16).astype(jnp.bfloat16)


def _side_expand_matrix(k, width, off):
    m = jnp.arange(k)[:, None]
    q = jnp.arange(width)[None, :]
    tgt = jnp.where(q % 16 < 8, q // 16 - 1 + off, q // 16 + 1 + off)
    return ((m == tgt) & (tgt >= 0) & (tgt < k)).astype(jnp.bfloat16)


def _phase_weight_vectors(w, width):
    """w: (3, 32) taps -> (6, width) per-output-lane taps (period 16)."""
    t = jnp.arange(width) % 16
    t_side = jnp.where(t < 8, t + 24, t - 8)
    rows = [w[2 - d][t + 8] for d in range(3)] + [w[2 - d][t_side] for d in range(3)]
    return jnp.stack(rows).astype(jnp.float32)


def _vmem_estimate(tT, F, out_itemsize):
    w1_len = 16 * tT + 2 * 16 * _HALO
    est = 2 * F * 256 * tT * out_itemsize          # double-buffered output blocks
    est += 2 * F * (tT + 2 * _HALO) * 4            # double-buffered input blocks
    est += 2 * 2 * (tT + 2 * _HALO) * w1_len * 2   # E1c/E1s (bf16)
    est += 2 * (128 + 130) * 2048 * 2              # E2c/E2s (bf16)
    est += 2 * 6 * (w1_len + 2048) * 4             # per-phase weight vectors
    est += F * w1_len * 4                          # intermediate scratch
    est += 6 * F * 2048 * 4                        # hoisted layer-2 weight planes
    est += 7 * F * max(w1_len, 2048) * 4           # live temporaries
    return est


def _pick_time_tile(t_pad, F, out_itemsize, batch):
    best = 8
    for cand in range(8, min(128, t_pad) + 1, 8):
        if t_pad % cand:
            continue
        if batch == 1 and t_pad >= 16 and t_pad // cand < 2:
            continue   # keep >=2 time tiles so v7x's second TensorCore has work
        if _vmem_estimate(cand, F, out_itemsize) <= _VMEM_BUDGET:
            best = cand
    return best


@functools.partial(jax.jit, static_argnames=("out_dtype",))
def spectrogram_upsampler(x, params, *, out_dtype=jnp.float32):
    """SpectrogramUpsampler.forward: x [B, F, T] -> [B, F, 256*T].

    out_dtype=float32 matches PyTorch numerics; bfloat16 halves the dominant
    HBM write traffic (accumulation is always float32).
    """
    B, F, T = x.shape
    t_pad = -(-T // 8) * 8
    xp = x if t_pad == T else jnp.pad(x, ((0, 0), (0, 0), (0, t_pad - T)))
    tT = _pick_time_tile(t_pad, F, jnp.dtype(out_dtype).itemsize, B)
    nJ = t_pad // tT
    w1_len = 16 * tT + 2 * 16 * _HALO

    # Non-overlapping (F, tT+16) tiles with an 8-frame halo baked in host-side.
    # This only touches the tiny input array (1/256 of the output).
    xt = jnp.transpose(xp.reshape(B, F, nJ, tT), (0, 2, 1, 3))          # (B,nJ,F,tT)
    zeros8 = jnp.zeros((B, 1, F, _HALO), xp.dtype)
    left = jnp.concatenate([zeros8, xt[:, :-1, :, tT - _HALO:]], axis=1)
    right = jnp.concatenate([xt[:, 1:, :, :_HALO], zeros8], axis=1)
    xext = jnp.concatenate([left, xt, right], axis=3)                   # (B,nJ,F,tT+16)

    w1 = params["w1"].astype(jnp.float32)[0, 0]                         # (3, 32)
    w2 = params["w2"].astype(jnp.float32)[0, 0]
    e1c = _center_expand_matrix(tT + 2 * _HALO, w1_len)
    e1s = _side_expand_matrix(tT + 2 * _HALO, w1_len, 0)
    e2c = _center_expand_matrix(128, 2048)
    e2s = _side_expand_matrix(130, 2048, 1)
    w1v = _phase_weight_vectors(w1, w1_len)
    w2v = _phase_weight_vectors(w2, 2048)
    biases = jnp.stack([params["b1"].reshape(()),
                        params["b2"].reshape(())]).astype(jnp.float32)

    kernel = functools.partial(_fused_upsampler_kernel, t_valid=T)
    out = pl.pallas_call(
        kernel,
        out_shape=jax.ShapeDtypeStruct((B, F, 256 * t_pad), out_dtype),
        grid=(B, nJ),
        in_specs=[
            pl.BlockSpec((1, 1, F, tT + 2 * _HALO), lambda b, j: (b, j, 0, 0)),
            pl.BlockSpec(e1c.shape, lambda b, j: (0, 0)),   # VMEM-resident consts
            pl.BlockSpec(e1s.shape, lambda b, j: (0, 0)),
            pl.BlockSpec(e2c.shape, lambda b, j: (0, 0)),
            pl.BlockSpec(e2s.shape, lambda b, j: (0, 0)),
            pl.BlockSpec(w1v.shape, lambda b, j: (0, 0)),
            pl.BlockSpec(w2v.shape, lambda b, j: (0, 0)),
            pl.BlockSpec(memory_space=pltpu.MemorySpace.SMEM),          # biases
        ],
        out_specs=pl.BlockSpec((1, F, 256 * tT), lambda b, j: (b, 0, j)),
        scratch_shapes=[pltpu.VMEM((F, w1_len), jnp.float32)],
        compiler_params=pltpu.CompilerParams(
            dimension_semantics=("parallel", "parallel"),
            vmem_limit_bytes=_VMEM_LIMIT),
    )(xext, e1c, e1s, e2c, e2s, w1v, w2v, biases)

    if t_pad != T:
        # TODO(synk): ragged T costs one XLA slice (extra output copy); could be
        # avoided with an in-kernel masked last block.
        out = out[:, :, :256 * T]
    return out


# ------------------ pure-JAX reference (correctness check) -------------------
def _ref_conv_transpose_leaky(x, weight, bias):
    x4 = x[:, None].astype(jnp.float32)                     # NCHW, C=1
    wf = weight.astype(jnp.float32)[:, :, ::-1, ::-1]        # spatial flip
    y = jax.lax.conv_general_dilated(
        x4, jnp.transpose(wf, (1, 0, 2, 3)),
        window_strides=(1, 1), padding=[(1, 1), (23, 23)],
        lhs_dilation=(1, 16),
        dimension_numbers=("NCHW", "OIHW", "NCHW"),
        precision=jax.lax.Precision.HIGHEST)
    y = y + bias.reshape(1, -1, 1, 1).astype(jnp.float32)
    return jnp.where(y > 0, y, NEG_SLOPE * y)[:, 0]


def _ref_forward(x, params):
    y = _ref_conv_transpose_leaky(x, params["w1"], params["b1"])
    return _ref_conv_transpose_leaky(y, params["w2"], params["b2"])


if __name__ == "__main__":
    key = jax.random.PRNGKey(0)
    k1, k2, kx, ky = jax.random.split(key, 4)

    # in_channels = out_channels = 1 (required by the unsqueeze/squeeze in forward)
    params = {
        "w1": 0.1 * jax.random.normal(k1, (1, 1, 3, 32), jnp.float32),
        "b1": jnp.array([0.05], jnp.float32),
        "w2": 0.1 * jax.random.normal(k2, (1, 1, 3, 32), jnp.float32),
        "b2": jnp.array([-0.03], jnp.float32),
    }

    # main case: batch=2, mel bins=16, frames=8 -> (2, 16, 2048)
    B, F, T = 2, 16, 8
    x = jax.random.normal(kx, (B, F, T), jnp.float32)
    ref = _ref_forward(x, params)

    out = jax.block_until_ready(spectrogram_upsampler(x, params))
    assert out.shape == (B, F, 256 * T), out.shape
    if not jnp.allclose(out, ref, atol=1e-3, rtol=1e-3):
        raise SystemExit("mismatch vs reference (float32)")

    out_bf16 = jax.block_until_ready(
        spectrogram_upsampler(x, params, out_dtype=jnp.bfloat16))
    if not jnp.allclose(out_bf16.astype(jnp.float32), ref, atol=3e-2, rtol=3e-2):
        raise SystemExit("mismatch vs reference (bfloat16 output)")

    # ragged case: T not a multiple of 8, odd mel-bin count, multi-chunk tile
    B2, F2, T2 = 2, 5, 12
    x2 = jax.random.normal(ky, (B2, F2, T2), jnp.float32)
    ref2 = _ref_forward(x2, params)
    out2 = jax.block_until_ready(spectrogram_upsampler(x2, params))
    assert out2.shape == (B2, F2, 256 * T2), out2.shape
    if not jnp.allclose(out2, ref2, atol=1e-3, rtol=1e-3):
        raise SystemExit("mismatch vs reference (ragged)")

    print("KERNEL_OK")
</pallas_src>

<mosaic_0001>
module attributes {stable_mosaic.version = 11 : i64} {
  func.func @_fused_upsampler_kernel(%arg0: i32, %arg1: i32, %arg2: memref<1x1x16x24xf32, #tpu.memory_space<vmem>>, %arg3: memref<24x384xbf16, #tpu.memory_space<vmem>>, %arg4: memref<24x384xbf16, #tpu.memory_space<vmem>>, %arg5: memref<128x2048xbf16, #tpu.memory_space<vmem>>, %arg6: memref<130x2048xbf16, #tpu.memory_space<vmem>>, %arg7: memref<6x384xf32, #tpu.memory_space<vmem>>, %arg8: memref<6x2048xf32, #tpu.memory_space<vmem>>, %arg9: memref<2xf32, #tpu.memory_space<smem>>, %arg10: memref<1x16x2048xf32, #tpu.memory_space<vmem>>, %arg11: memref<16x384xf32, #tpu.memory_space<vmem>>) attributes {dimension_semantics = [#tpu.dimension_semantics<parallel>, #tpu.dimension_semantics<parallel>], iteration_bounds = array<i64: 2, 1>, scalar_prefetch = 0 : i64, scratch_operands = 1 : i64, tpu.core_type = #tpu.core_type<tc>, window_params = [{transform_indices = @transform_0, window_bounds = array<i64: 1, 1, 16, 24>}, {pipeline_mode = #tpu.pipeline_mode<synchronous>, transform_indices = @transform_1, window_bounds = array<i64: 24, 384>}, {pipeline_mode = #tpu.pipeline_mode<synchronous>, transform_indices = @transform_2, window_bounds = array<i64: 24, 384>}, {pipeline_mode = #tpu.pipeline_mode<synchronous>, transform_indices = @transform_3, window_bounds = array<i64: 128, 2048>}, {pipeline_mode = #tpu.pipeline_mode<synchronous>, transform_indices = @transform_4, window_bounds = array<i64: 130, 2048>}, {pipeline_mode = #tpu.pipeline_mode<synchronous>, transform_indices = @transform_5, window_bounds = array<i64: 6, 384>}, {pipeline_mode = #tpu.pipeline_mode<synchronous>, transform_indices = @transform_6, window_bounds = array<i64: 6, 2048>}, {transform_indices = @transform_7, window_bounds = array<i64: 2>}, {transform_indices = @transform_8, window_bounds = array<i64: 1, 16, 2048>}]} {
    %c0 = arith.constant 0 : index
    %c0_0 = arith.constant 0 : index
    %c0_1 = arith.constant 0 : index
    %c0_2 = arith.constant 0 : index
    %0 = vector.load %arg2[%c0, %c0_0, %c0_1, %c0_2] : memref<1x1x16x24xf32, #tpu.memory_space<vmem>>, vector<1x1x16x24xf32>
    %1 = vector.shape_cast %0 : vector<1x1x16x24xf32> to vector<16x24xf32>
    %c0_3 = arith.constant 0 : index
    %c0_4 = arith.constant 0 : index
    %2 = vector.load %arg3[%c0_3, %c0_4] : memref<24x384xbf16, #tpu.memory_space<vmem>>, vector<24x384xbf16>
    %3 = arith.truncf %1 : vector<16x24xf32> to vector<16x24xbf16>
    %4 = arith.extf %3 : vector<16x24xbf16> to vector<16x24xf32>
    %5 = arith.subf %1, %4 : vector<16x24xf32>
    %6 = arith.truncf %5 : vector<16x24xf32> to vector<16x24xbf16>
    %cst = arith.constant dense<0.000000e+00> : vector<16x384xf32>
    %7 = tpu.matmul %3, %2, %cst {dimension_numbers = #tpu.dot_dimension_numbers<[1], [0], [0], [1], [0, 0, 1, 1], [], []>} : vector<16x24xbf16>, vector<24x384xbf16>, vector<16x384xf32> -> vector<16x384xf32>
    %cst_5 = arith.constant dense<0.000000e+00> : vector<16x384xf32>
    %8 = tpu.matmul %6, %2, %cst_5 {dimension_numbers = #tpu.dot_dimension_numbers<[1], [0], [0], [1], [0, 0, 1, 1], [], []>} : vector<16x24xbf16>, vector<24x384xbf16>, vector<16x384xf32> -> vector<16x384xf32>
    %9 = arith.addf %7, %8 : vector<16x384xf32>
    %c0_6 = arith.constant 0 : index
    %c0_7 = arith.constant 0 : index
    %10 = vector.load %arg4[%c0_6, %c0_7] : memref<24x384xbf16, #tpu.memory_space<vmem>>, vector<24x384xbf16>
    %11 = arith.truncf %1 : vector<16x24xf32> to vector<16x24xbf16>
    %12 = arith.extf %11 : vector<16x24xbf16> to vector<16x24xf32>
    %13 = arith.subf %1, %12 : vector<16x24xf32>
    %14 = arith.truncf %13 : vector<16x24xf32> to vector<16x24xbf16>
    %cst_8 = arith.constant dense<0.000000e+00> : vector<16x384xf32>
    %15 = tpu.matmul %11, %10, %cst_8 {dimension_numbers = #tpu.dot_dimension_numbers<[1], [0], [0], [1], [0, 0, 1, 1], [], []>} : vector<16x24xbf16>, vector<24x384xbf16>, vector<16x384xf32> -> vector<16x384xf32>
    %cst_9 = arith.constant dense<0.000000e+00> : vector<16x384xf32>
    %16 = tpu.matmul %14, %10, %cst_9 {dimension_numbers = #tpu.dot_dimension_numbers<[1], [0], [0], [1], [0, 0, 1, 1], [], []>} : vector<16x24xbf16>, vector<24x384xbf16>, vector<16x384xf32> -> vector<16x384xf32>
    %17 = arith.addf %15, %16 : vector<16x384xf32>
    %c0_10 = arith.constant 0 : index
    %c0_11 = arith.constant 0 : index
    %18 = vector.load %arg7[%c0_10, %c0_11] : memref<6x384xf32, #tpu.memory_space<vmem>>, vector<6x384xf32>
    %cst_12 = arith.constant 0.000000e+00 : f32
    %19 = vector.broadcast %cst_12 : f32 to vector<1x384xf32>
    %20 = vector.extract_strided_slice %9 {offsets = [0, 0], sizes = [15, 384], strides = [1, 1]} : vector<16x384xf32> to vector<15x384xf32>
    %21 = tpu.concatenate %19, %20 in 0 : vector<1x384xf32>, vector<15x384xf32> -> vector<16x384xf32>
    %22 = vector.extract_strided_slice %18 {offsets = [0, 0], sizes = [1, 384], strides = [1, 1]} : vector<6x384xf32> to vector<1x384xf32>
    %23 = vector.broadcast %22 : vector<1x384xf32> to vector<16x384xf32>
    %24 = arith.mulf %21, %23 : vector<16x384xf32>
    %25 = vector.extract_strided_slice %18 {offsets = [1, 0], sizes = [1, 384], strides = [1, 1]} : vector<6x384xf32> to vector<1x384xf32>
    %26 = vector.broadcast %25 : vector<1x384xf32> to vector<16x384xf32>
    %27 = arith.mulf %9, %26 : vector<16x384xf32>
    %28 = arith.addf %24, %27 : vector<16x384xf32>
    %29 = vector.extract_strided_slice %9 {offsets = [1, 0], sizes = [15, 384], strides = [1, 1]} : vector<16x384xf32> to vector<15x384xf32>
    %cst_13 = arith.constant 0.000000e+00 : f32
    %30 = vector.broadcast %cst_13 : f32 to vector<1x384xf32>
    %31 = tpu.concatenate %29, %30 in 0 : vector<15x384xf32>, vector<1x384xf32> -> vector<16x384xf32>
    %32 = vector.extract_strided_slice %18 {offsets = [2, 0], sizes = [1, 384], strides = [1, 1]} : vector<6x384xf32> to vector<1x384xf32>
    %33 = vector.broadcast %32 : vector<1x384xf32> to vector<16x384xf32>
    %34 = arith.mulf %31, %33 : vector<16x384xf32>
    %35 = arith.addf %28, %34 : vector<16x384xf32>
    %cst_14 = arith.constant 0.000000e+00 : f32
    %36 = vector.broadcast %cst_14 : f32 to vector<1x384xf32>
    %37 = vector.extract_strided_slice %17 {offsets = [0, 0], sizes = [15, 384], strides = [1, 1]} : vector<16x384xf32> to vector<15x384xf32>
    %38 = tpu.concatenate %36, %37 in 0 : vector<1x384xf32>, vector<15x384xf32> -> vector<16x384xf32>
    %39 = vector.extract_strided_slice %18 {offsets = [3, 0], sizes = [1, 384], strides = [1, 1]} : vector<6x384xf32> to vector<1x384xf32>
    %40 = vector.broadcast %39 : vector<1x384xf32> to vector<16x384xf32>
    %41 = arith.mulf %38, %40 : vector<16x384xf32>
    %42 = arith.addf %35, %41 : vector<16x384xf32>
    %43 = vector.extract_strided_slice %18 {offsets = [4, 0], sizes = [1, 384], strides = [1, 1]} : vector<6x384xf32> to vector<1x384xf32>
    %44 = vector.broadcast %43 : vector<1x384xf32> to vector<16x384xf32>
    %45 = arith.mulf %17, %44 : vector<16x384xf32>
    %46 = arith.addf %42, %45 : vector<16x384xf32>
    %47 = vector.extract_strided_slice %17 {offsets = [1, 0], sizes = [15, 384], strides = [1, 1]} : vector<16x384xf32> to vector<15x384xf32>
    %cst_15 = arith.constant 0.000000e+00 : f32
    %48 = vector.broadcast %cst_15 : f32 to vector<1x384xf32>
    %49 = tpu.concatenate %47, %48 in 0 : vector<15x384xf32>, vector<1x384xf32> -> vector<16x384xf32>
    %50 = vector.extract_strided_slice %18 {offsets = [5, 0], sizes = [1, 384], strides = [1, 1]} : vector<6x384xf32> to vector<1x384xf32>
    %51 = vector.broadcast %50 : vector<1x384xf32> to vector<16x384xf32>
    %52 = arith.mulf %49, %51 : vector<16x384xf32>
    %53 = arith.addf %46, %52 : vector<16x384xf32>
    %c0_16 = arith.constant 0 : index
    %54 = memref.load %arg9[%c0_16] : memref<2xf32, #tpu.memory_space<smem>>
    %55 = vector.broadcast %54 : f32 to vector<16x384xf32>
    %56 = arith.addf %53, %55 : vector<16x384xf32>
    %cst_17 = arith.constant 4.000000e-01 : f32
    %57 = vector.broadcast %cst_17 : f32 to vector<16x384xf32>
    %58 = arith.mulf %57, %56 : vector<16x384xf32>
    %59 = arith.maximumf %56, %58 : vector<16x384xf32>
    %60 = tpu.iota {dimensions = array<i32: 1>} : vector<16x384xi32>
    %c128_i32 = arith.constant 128 : i32
    %61 = arith.muli %c128_i32, %arg1 : i32
    %62 = vector.broadcast %61 : i32 to vector<16x384xi32>
    %63 = arith.addi %60, %62 : vector<16x384xi32>
    %c128_i32_18 = arith.constant 128 : i32
    %64 = vector.broadcast %c128_i32_18 : i32 to vector<16x384xi32>
    %65 = arith.subi %63, %64 : vector<16x384xi32>
    %c0_i32 = arith.constant 0 : i32
    %66 = vector.broadcast %c0_i32 : i32 to vector<16x384xi32>
    %67 = arith.cmpi sge, %65, %66 : vector<16x384xi32>
    %c128_i32_19 = arith.constant 128 : i32
    %68 = vector.broadcast %c128_i32_19 : i32 to vector<16x384xi32>
    %69 = arith.cmpi slt, %65, %68 : vector<16x384xi32>
    %70 = arith.andi %67, %69 : vector<16x384xi1>
    %cst_20 = arith.constant 0.000000e+00 : f32
    %71 = vector.broadcast %cst_20 : f32 to vector<16x384xf32>
    %72 = arith.select %70, %59, %71 : vector<16x384xi1>, vector<16x384xf32>
    %c0_21 = arith.constant 0 : index
    %c0_22 = arith.constant 0 : index
    %73 = vector.load %arg11[%c0_21, %c0_22] : memref<16x384xf32, #tpu.memory_space<vmem>>, vector<16x384xf32>
    tpu.vector_store %arg11[%c0_21, %c0_22], %72 {strides = array<i32>} : memref<16x384xf32, #tpu.memory_space<vmem>>, vector<16x384xf32>,
    %c0_23 = arith.constant 0 : index
    %c0_24 = arith.constant 0 : index
    %74 = vector.load %arg5[%c0_23, %c0_24] : memref<128x2048xbf16, #tpu.memory_space<vmem>>, vector<128x2048xbf16>
    %c0_25 = arith.constant 0 : index
    %c0_26 = arith.constant 0 : index
    %75 = vector.load %arg6[%c0_25, %c0_26] : memref<130x2048xbf16, #tpu.memory_space<vmem>>, vector<130x2048xbf16>
    %c0_27 = arith.constant 0 : index
    %c0_28 = arith.constant 0 : index
    %76 = vector.load %arg8[%c0_27, %c0_28] : memref<6x2048xf32, #tpu.memory_space<vmem>>, vector<6x2048xf32>
    %77 = vector.extract_strided_slice %76 {offsets = [0, 0], sizes = [1, 2048], strides = [1, 1]} : vector<6x2048xf32> to vector<1x2048xf32>
    %78 = vector.shape_cast %77 : vector<1x2048xf32> to vector<1x2048xf32>
    %79 = vector.broadcast %78 : vector<1x2048xf32> to vector<16x2048xf32>
    %80 = vector.extract_strided_slice %76 {offsets = [1, 0], sizes = [1, 2048], strides = [1, 1]} : vector<6x2048xf32> to vector<1x2048xf32>
    %81 = vector.shape_cast %80 : vector<1x2048xf32> to vector<1x2048xf32>
    %82 = vector.broadcast %81 : vector<1x2048xf32> to vector<16x2048xf32>
    %83 = vector.extract_strided_slice %76 {offsets = [2, 0], sizes = [1, 2048], strides = [1, 1]} : vector<6x2048xf32> to vector<1x2048xf32>
    %84 = vector.shape_cast %83 : vector<1x2048xf32> to vector<1x2048xf32>
    %85 = vector.broadcast %84 : vector<1x2048xf32> to vector<16x2048xf32>
    %86 = vector.extract_strided_slice %76 {offsets = [3, 0], sizes = [1, 2048], strides = [1, 1]} : vector<6x2048xf32> to vector<1x2048xf32>
    %87 = vector.shape_cast %86 : vector<1x2048xf32> to vector<1x2048xf32>
    %88 = vector.broadcast %87 : vector<1x2048xf32> to vector<16x2048xf32>
    %89 = vector.extract_strided_slice %76 {offsets = [4, 0], sizes = [1, 2048], strides = [1, 1]} : vector<6x2048xf32> to vector<1x2048xf32>
    %90 = vector.shape_cast %89 : vector<1x2048xf32> to vector<1x2048xf32>
    %91 = vector.broadcast %90 : vector<1x2048xf32> to vector<16x2048xf32>
    %92 = vector.extract_strided_slice %76 {offsets = [5, 0], sizes = [1, 2048], strides = [1, 1]} : vector<6x2048xf32> to vector<1x2048xf32>
    %93 = vector.shape_cast %92 : vector<1x2048xf32> to vector<1x2048xf32>
    %94 = vector.broadcast %93 : vector<1x2048xf32> to vector<16x2048xf32>
    %c1 = arith.constant 1 : index
    %95 = memref.load %arg9[%c1] : memref<2xf32, #tpu.memory_space<smem>>
    %c0_29 = arith.constant 0 : index
    %c128 = arith.constant 128 : index
    %96 = vector.load %arg11[%c0_29, %c128] : memref<16x384xf32, #tpu.memory_space<vmem>>, vector<16x128xf32>
    %c0_30 = arith.constant 0 : index
    %c127 = arith.constant 127 : index
    %97 = vector.load %arg11[%c0_30, %c127] : memref<16x384xf32, #tpu.memory_space<vmem>>, vector<16x130xf32>
    %98 = arith.truncf %96 : vector<16x128xf32> to vector<16x128xbf16>
    %99 = arith.extf %98 : vector<16x128xbf16> to vector<16x128xf32>
    %100 = arith.subf %96, %99 : vector<16x128xf32>
    %101 = arith.truncf %100 : vector<16x128xf32> to vector<16x128xbf16>
    %cst_31 = arith.constant dense<0.000000e+00> : vector<16x2048xf32>
    %102 = tpu.matmul %98, %74, %cst_31 {dimension_numbers = #tpu.dot_dimension_numbers<[1], [0], [0], [1], [0, 0, 1, 1], [], []>} : vector<16x128xbf16>, vector<128x2048xbf16>, vector<16x2048xf32> -> vector<16x2048xf32>
    %cst_32 = arith.constant dense<0.000000e+00> : vector<16x2048xf32>
    %103 = tpu.matmul %101, %74, %cst_32 {dimension_numbers = #tpu.dot_dimension_numbers<[1], [0], [0], [1], [0, 0, 1, 1], [], []>} : vector<16x128xbf16>, vector<128x2048xbf16>, vector<16x2048xf32> -> vector<16x2048xf32>
    %104 = arith.addf %102, %103 : vector<16x2048xf32>
    %105 = arith.truncf %97 : vector<16x130xf32> to vector<16x130xbf16>
    %106 = arith.extf %105 : vector<16x130xbf16> to vector<16x130xf32>
    %107 = arith.subf %97, %106 : vector<16x130xf32>
    %108 = arith.truncf %107 : vector<16x130xf32> to vector<16x130xbf16>
    %cst_33 = arith.constant dense<0.000000e+00> : vector<16x2048xf32>
    %109 = tpu.matmul %105, %75, %cst_33 {dimension_numbers = #tpu.dot_dimension_numbers<[1], [0], [0], [1], [0, 0, 1, 1], [], []>} : vector<16x130xbf16>, vector<130x2048xbf16>, vector<16x2048xf32> -> vector<16x2048xf32>
    %cst_34 = arith.constant dense<0.000000e+00> : vector<16x2048xf32>
    %110 = tpu.matmul %108, %75, %cst_34 {dimension_numbers = #tpu.dot_dimension_numbers<[1], [0], [0], [1], [0, 0, 1, 1], [], []>} : vector<16x130xbf16>, vector<130x2048xbf16>, vector<16x2048xf32> -> vector<16x2048xf32>
    %111 = arith.addf %109, %110 : vector<16x2048xf32>
    %cst_35 = arith.constant 0.000000e+00 : f32
    %112 = vector.broadcast %cst_35 : f32 to vector<1x2048xf32>
    %113 = vector.extract_strided_slice %104 {offsets = [0, 0], sizes = [15, 2048], strides = [1, 1]} : vector<16x2048xf32> to vector<15x2048xf32>
    %114 = tpu.concatenate %112, %113 in 0 : vector<1x2048xf32>, vector<15x2048xf32> -> vector<16x2048xf32>
    %115 = arith.mulf %114, %79 : vector<16x2048xf32>
    %116 = arith.mulf %104, %82 : vector<16x2048xf32>
    %117 = arith.addf %115, %116 : vector<16x2048xf32>
    %118 = vector.extract_strided_slice %104 {offsets = [1, 0], sizes = [15, 2048], strides = [1, 1]} : vector<16x2048xf32> to vector<15x2048xf32>
    %cst_36 = arith.constant 0.000000e+00 : f32
    %119 = vector.broadcast %cst_36 : f32 to vector<1x2048xf32>
    %120 = tpu.concatenate %118, %119 in 0 : vector<15x2048xf32>, vector<1x2048xf32> -> vector<16x2048xf32>
    %121 = arith.mulf %120, %85 : vector<16x2048xf32>
    %122 = arith.addf %117, %121 : vector<16x2048xf32>
    %cst_37 = arith.constant 0.000000e+00 : f32
    %123 = vector.broadcast %cst_37 : f32 to vector<1x2048xf32>
    %124 = vector.extract_strided_slice %111 {offsets = [0, 0], sizes = [15, 2048], strides = [1, 1]} : vector<16x2048xf32> to vector<15x2048xf32>
    %125 = tpu.concatenate %123, %124 in 0 : vector<1x2048xf32>, vector<15x2048xf32> -> vector<16x2048xf32>
    %126 = arith.mulf %125, %88 : vector<16x2048xf32>
    %127 = arith.addf %122, %126 : vector<16x2048xf32>
    %128 = arith.mulf %111, %91 : vector<16x2048xf32>
    %129 = arith.addf %127, %128 : vector<16x2048xf32>
    %130 = vector.extract_strided_slice %111 {offsets = [1, 0], sizes = [15, 2048], strides = [1, 1]} : vector<16x2048xf32> to vector<15x2048xf32>
    %cst_38 = arith.constant 0.000000e+00 : f32
    %131 = vector.broadcast %cst_38 : f32 to vector<1x2048xf32>
    %132 = tpu.concatenate %130, %131 in 0 : vector<15x2048xf32>, vector<1x2048xf32> -> vector<16x2048xf32>
    %133 = arith.mulf %132, %94 : vector<16x2048xf32>
    %134 = arith.addf %129, %133 : vector<16x2048xf32>
    %135 = vector.broadcast %95 : f32 to vector<16x2048xf32>
    %136 = arith.addf %134, %135 : vector<16x2048xf32>
    %cst_39 = arith.constant 4.000000e-01 : f32
    %137 = vector.broadcast %cst_39 : f32 to vector<16x2048xf32>
    %138 = arith.mulf %137, %136 : vector<16x2048xf32>
    %139 = arith.maximumf %136, %138 : vector<16x2048xf32>
    %c0_40 = arith.constant 0 : index
    %c0_41 = arith.constant 0 : index
    %c0_42 = arith.constant 0 : index
    %140 = vector.load %arg10[%c0_40, %c0_41, %c0_42] : memref<1x16x2048xf32, #tpu.memory_space<vmem>>, vector<1x16x2048xf32>
    %141 = vector.shape_cast %140 : vector<1x16x2048xf32> to vector<16x2048xf32>
    %142 = vector.shape_cast %139 : vector<16x2048xf32> to vector<1x16x2048xf32>
    tpu.vector_store %arg10[%c0_40, %c0_41, %c0_42], %142 {strides = array<i32>} : memref<1x16x2048xf32, #tpu.memory_space<vmem>>, vector<1x16x2048xf32>,
    return
  }
  func.func @transform_0(%arg0: i32, %arg1: i32) -> (i32, i32, i32, i32) {
    %c0_i32 = arith.constant 0 : i32
    %c0_i32_0 = arith.constant 0 : i32
    %c0_i32_1 = arith.constant 0 : i32
    return %arg0, %arg1, %c0_i32, %c0_i32_0 : i32, i32, i32, i32
  }
  func.func @transform_1(%arg0: i32, %arg1: i32) -> (i32, i32) {
    %c0_i32 = arith.constant 0 : i32
    %c0_i32_0 = arith.constant 0 : i32
    %c0_i32_1 = arith.constant 0 : i32
    return %c0_i32, %c0_i32_0 : i32, i32
  }
  func.func @transform_2(%arg0: i32, %arg1: i32) -> (i32, i32) {
    %c0_i32 = arith.constant 0 : i32
    %c0_i32_0 = arith.constant 0 : i32
    %c0_i32_1 = arith.constant 0 : i32
    return %c0_i32, %c0_i32_0 : i32, i32
  }
  func.func @transform_3(%arg0: i32, %arg1: i32) -> (i32, i32) {
    %c0_i32 = arith.constant 0 : i32
    %c0_i32_0 = arith.constant 0 : i32
    %c0_i32_1 = arith.constant 0 : i32
    return %c0_i32, %c0_i32_0 : i32, i32
  }
  func.func @transform_4(%arg0: i32, %arg1: i32) -> (i32, i32) {
    %c0_i32 = arith.constant 0 : i32
    %c0_i32_0 = arith.constant 0 : i32
    %c0_i32_1 = arith.constant 0 : i32
    return %c0_i32, %c0_i32_0 : i32, i32
  }
  func.func @transform_5(%arg0: i32, %arg1: i32) -> (i32, i32) {
    %c0_i32 = arith.constant 0 : i32
    %c0_i32_0 = arith.constant 0 : i32
    %c0_i32_1 = arith.constant 0 : i32
    return %c0_i32, %c0_i32_0 : i32, i32
  }
  func.func @transform_6(%arg0: i32, %arg1: i32) -> (i32, i32) {
    %c0_i32 = arith.constant 0 : i32
    %c0_i32_0 = arith.constant 0 : i32
    %c0_i32_1 = arith.constant 0 : i32
    return %c0_i32, %c0_i32_0 : i32, i32
  }
  func.func @transform_7(%arg0: i32, %arg1: i32) -> i32 {
    %c0_i32 = arith.constant 0 : i32
    %c0_i32_0 = arith.constant 0 : i32
    return %c0_i32 : i32
  }
  func.func @transform_8(%arg0: i32, %arg1: i32) -> (i32, i32, i32) {
    %c0_i32 = arith.constant 0 : i32
    %c0_i32_0 = arith.constant 0 : i32
    return %arg0, %c0_i32, %arg1 : i32, i32, i32
  }
}

</mosaic_0001>

<bundles_post_ra>
// kernel: spectrogram_upsampler.1
= control target key start
LH: loop header
LB: loop body
LE: loop exit
PB: predicated region body
PF: predicated region fallthrough
CT: control target
= control target key end

     0   :  { %13 = vsyncpa [#allocation5], 0  ;;  %s9510_s0 = inlined_call_operand.vmem [shape: f32[2,1,16,24], index: 0, kind: input, shape index: {}]   ;;  %s9511_s1 = inlined_call_operand.vmem [shape: bf16[24,384], index: 1, kind: input, shape index: {}]   ;;  %s9512_s2 = inlined_call_operand.vmem [shape: bf16[24,384], index: 2, kind: input, shape index: {}]   ;;  %s9513_s3 = inlined_call_operand.vmem [shape: bf16[128,2048], index: 3, kind: input, shape index: {}]   ;;  %s9514_s4 = inlined_call_operand.vmem [shape: bf16[130,2048], index: 4, kind: input, shape index: {}]   ;;  %s9515_s5 = inlined_call_operand.vmem [shape: f32[6,384], index: 5, kind: input, shape index: {}]   ;;  %s9516_s6 = inlined_call_operand.vmem [shape: f32[6,2048], index: 6, kind: input, shape index: {}]   ;;  %s9517_s7 = inlined_call_operand.vmem [shape: f32[2], index: 7, kind: input, shape index: {}]   ;;  %s9518_s8 = inlined_call_operand.hbm [shape: f32[2,16,2048], index: 8, kind: output, shape index: {}]  }
   0x1   :  { %14 = vsyncpa [#allocation4], 0 }
   0x2   :  { %16 = vsyncpa [#allocation4 + $0x1], 0  ;;  %s6307_s27 = smov 0   ;;  %s6309_s28 = smov 0  }
   0x3   :  { %s6311_s29 = smov 0   ;;  %s6313_s30 = smov 0  }
   0x4   :  { %s6315_s9 = smov 0   ;;  %s6317_s10 = smov 0  }
   0x5 LB: > { %s5570_s11 = sadd.s32 4294967295, %s6251_s10   ;;  %s5571_s12 = sadd.s32 4294967294, %s6251_s10   ;;  %s6251_s10 = sphi %s6317_s10, %s22_s10   ;;  %s6247_s9 = sphi %s6315_s9, %s10242_s9   ;;  %s6243_s30 = sphi %s6313_s30, %s10241_s30   ;;  %s6239_s29 = sphi %s6311_s29, %s10240_s29   ;;  %s6235_s28 = sphi %s6309_s28, %s10239_s28   ;;  %s6231_s27 = sphi %s6307_s27, %s10238_s27  }
   0x6   : > { %s34_s13 = sadd.s32 1, %s6247_s9  ;;  %s218_s14 = sadd.s32 1, %s6239_s29 }
   0x7   : > { %p36_p0 = scmp.ge.s32.totalorder %s34_s13, 2  ;;  %p228_p1 = scmp.ne.s32.totalorder %s6239_s29, %s6235_s28 }
   0x8   : > { %p229_p2 = scmp.eq.s32.totalorder %s5570_s11, 1  ;;  %p234_p3 = scmp.ne.s32.totalorder %s6235_s28, %s6231_s27 }
   0x9   : > { %s10244_s13 = smov (%p36_p0, %s34_s13), 0  ;;  %p235_p5 = scmp.eq.s32.totalorder %s5571_s12, 1 }
   0xa   : > { %p6347_p4 = por %p229_p2, %p228_p1  ;;  %s213_s16 = ssub.s32 %s6247_s9, %s10244_s13 }
   0xb   : > { %p5572_p6 = scmp.ge.s32.totalorder %s6251_s10, 1  ;;  %p216_p7 = scmp.eq.s32.totalorder %s213_s16, 0 }
   0xc   : > { %p6354_p8 = por %p235_p5, %p234_p3  ;;  %p242_p9 = scmp.lt.s32.totalorder %s6251_s10, 3 }
   0xd   : > { %s6360_s18 = scalar_select %p216_p7, %s6239_s29, %s218_s14  }
   0xe   : > { %p6362_p10 = pnand %p5572_p6, %p242_p9  ;;  %p6366_p11 = scmp.eq.s32.totalorder %s5570_s11, 0 }
   0xf   : > { %s273_s23 = sshll.u32 %s9517_s7, 4  ;;  %s274_s23 = int_to_ptr.vmem [resolvable:$true] %s273_s23 }
  0x10   : > { %p6041_p12 = pneg %p6362_p10  ;;  %s6154_s24 = scalar_lea.vmem %s274_s23, 16 }
  0x11   : > { %p6155_p0 = scmp.ne.s32.totalorder %s274_s23, %s6154_s24  ;;  %p6162_p5 = scmp.lt.s32.totalorder %s274_s23, %s274_s23 }
  0x12   : > { %p6042_p13 = pnand %p6366_p11, %p6041_p12  ;;  %p6163_p6 = scmp.lt.s32.totalorder %s6154_s24, %s6154_s24 }
  0x14   : > { %p6156_p1 = pneg %p6042_p13  ;;  %p6164_p7 = por %p6163_p6, %p6162_p5 }
  0x16   : > { %p6157_p2 = pnand %p6156_p1, %p6155_p0 }
  0x18   : > { %p6158_p3 = pneg %p6157_p2 }
  0x1a   : > { %p6165_p9 = pnand %p6164_p7, %p6158_p3 }
  0x1c   : > { %6168 = shalt.err (!%p6165_p9)
}
  0x1d   : > { %s6253_s25 = smov [#allocation3]   ;;  %298 = sbr.rel (%p6362_p10) target bundleno = 1100 (0x44c), region = 52 }
  0x1e   : > { %6044 = dma.vmem_to_smem (!%p6042_p13), %s274_s23, 16, %s6253_s25, [#allocation5]  }
  0x24   : > { %6222 = dma.done.wait (%p6366_p11), [#allocation5], 16  }
  0x25   : > { %6224 = vsyncadd (%p6366_p11), [#allocation5], 4294967280 }
  0x26   : > { %304 = sfence }
  0x27   : > { %v6108_v0 = vld [vmem:[%s9511_s1 + $0x4] ss:$12 sps:$4 sm:$0xff]   ;;  %v6110_v1 = vld [vmem:[%s9511_s1] ss:$12 sps:$4 sm:$0xff]   ;;  %v354_v2 = vld [vmem:[%s9511_s1 + $0x18] sm:$0xff]  ;;  %vm390_vm0 = vcmask 1043456  }
  0x28   : > { %v9519_v3 = vmov 0   ;;  %p337_p10 = scmp.lt.s32.totalorder %s6243_s30, 1  ;;  %400 = vmatprep.subr.bf16.mxu0 %v6108_v0  ;;  %v5584_v4 = vcombine.high %v354_v2, %v354_v2  ;;  %v5583_v5 = vcombine.low %v354_v2, %v354_v2  ;;  %v6255_v6 = vmov 0.0   ;;  %v6118_v8 = vld [vmem:[%s9511_s1 + $0x8] ss:$12 sps:$4 sm:$0xff]   ;;  %v575_v21 = vld [vmem:[%s9512_s2 + $0x18] sm:$0xff] }
  0x29   : > { %432 = vmatprep.mubr.bf16.mxu0 %v9519_v3  ;;  %401 = vmatpush1.bf16.msra.mxu0 %v6110_v1  ;;  %v6119_v9 = vld [vmem:[%s9511_s1 + $0x20] ss:$0 sps:$4 sm:$0xff]   ;;  %vm6256_vm1 = vmmov 0   ;;  %vm386_vm2 = vcmask 195584   ;;  %v6115_v19 = vld [vmem:[%s9512_s2 + $0x4] ss:$12 sps:$4 sm:$0xff]   ;;  %v5596_v23 = vcombine.high %v575_v21, %v575_v21  ;;  %v5595_v24 = vcombine.low %v575_v21, %v575_v21 }
  0x2a   : > { %s338_s20 = scalar_select %p337_p10, %s6243_s30, 1  ;;  %5931 = vmatprep.subr.bf16.mxu1 %v6255_v6  ;;  %5586 = vmatprep.subr.msk.bf16.mxu0 %vm390_vm0, %v5584_v4  ;;  %v392_v7 = vsel %vm390_vm0, %v5583_v5, 0  ;;  %v398_v12 = vsel %vm390_vm0, %v6119_v9, 0  ;;  %v6120_v20 = vld [vmem:[%s9512_s2 + $0x8] ss:$12 sps:$4 sm:$0xff]   ;;  %v1058_v28 = vld [vmem:[%s9513_s3] sm:$0xff] }
  0x2b   : > { %5935 = vmatprep.mubr.msk.bf16.mxu1 %vm6256_vm1, %v6255_v6  ;;  %5932 = vmatpush3.bf16.msra.mxu1 %v6118_v8  ;;  %v6113_v22 = vld [vmem:[%s9512_s2] ss:$12 sps:$4 sm:$0xff]   ;;  %v602_v25 = vsel %vm390_vm0, %v5595_v24, 0  ;;  %vm787_vm3 = vcmask 1040384   ;;  %vm848_vm4 = vcmask 1046528   ;;  %s1005_s19 = sld [smem:[#allocation3]] }
  0x2c   : > { %s5917_s23 = sshll.u32 %s338_s20, 4  ;;  %5933 = vmatprep.subr.bf16.mxu1 %v6255_v6  ;;  %v6121_v26 = vld [vmem:[%s9512_s2 + $0x20] ss:$0 sps:$4 sm:$0xff]   ;;  %v1059_v30 = vld [vmem:[%s9513_s3 + $0x8] sm:$0xff]  ;;  %vm3776_vm5 = vcmask 15360   ;;  %vm3092_vm6 = vcmask 7168  }
  0x2d   : > { %s345_s12 = scalar_lea.vmem %s9510_s0, %s5917_s23  ;;  %403 = vmatpush1.bf16.msra.mxu0 %v392_v7  ;;  %v608_v27 = vsel %vm390_vm0, %v6121_v26, 0  ;;  %v1066_v29 = vld [vmem:[%s9513_s3 + $0x40] sm:$0xff]  ;;  %v1067_v33 = vld [vmem:[%s9513_s3 + $0x48] sm:$0xff]  ;;  %s6258_s23 = smov 1  }
  0x2e   : > { %v348_v10 = vld [vmem:[%s345_s12] sm:$0xff]  ;;  %v349_v11 = vld [vmem:[%s345_s12 + $0x8] sm:$0xff]  ;;  %487 = vmatprep.subr.bf16.mxu0 %v6108_v0  ;;  %v6463_v31 = vcombine.low %v1058_v28, %v1066_v29  ;;  %v6465_v32 = vcombine.high %v1058_v28, %v1066_v29  ;;  %v6470_v34 = vcombine.low %v1059_v30, %v1067_v33  ;;  %v6472_v35 = vcombine.high %v1059_v30, %v1067_v33  ;;  %s334_s12 = sand.u32 1, %s6235_s28   ;;  %s5918_s22 = sshll.u32 %s6243_s30, 12 }
  0x2f   : > { %v356_v13 = vpack.c.bf16 %v349_v11, %v348_v10  ;;  %5934 = vmatpush3.bf16.msra.mxu1 %v398_v12  ;;  %v1074_v36 = vld [vmem:[%s9513_s3 + $0x80] sm:$0xff]  ;;  %v1075_v38 = vld [vmem:[%s9513_s3 + $0x88] sm:$0xff]  ;;  %s5577_s14 = sshll.u32 %s334_s12, 8  ;;  %s9456_s11 = scalar_lea.hbm %s9518_s8, %s5918_s22 }
  0x30   : > { %5939 = vmatprep.subr.bf16.mxu1 %v6255_v6  ;;  %v1082_v37 = vld [vmem:[%s9513_s3 + $0xc0] sm:$0xff]  ;;  %v1083_v40 = vld [vmem:[%s9513_s3 + $0xc8] sm:$0xff]  ;;  %s9090_s16 = scalar_lea.vmem [#allocation6], %s5577_s14  ;;  %s9464_s14 = scalar_lea.sflag [#allocation4], %s334_s12 }
  0x31   : > { %v357_v14 = vunpack.c.l.bf16 %v356_v13  ;;  %v358_v15 = vunpack.c.h.bf16 %v356_v13  ;;  %v6489_v39 = vcombine.high %v1074_v36, %v1082_v37  ;;  %v6494_v41 = vcombine.low %v1074_v36, %v1082_v37  ;;  %v1090_v44 = vld [vmem:[%s9513_s3 + $0x100] sm:$0xff]  ;;  %v1091_v46 = vld [vmem:[%s9513_s3 + $0x108] sm:$0xff]  ;;  %s5476_s24 = sshll.u32 %s9090_s16, 4  ;;  %s9458_s24 = int_to_ptr.vmem [resolvable:$true] %s5476_s24 }
  0x32   : > { %v6496_v42 = vcombine.low %v1075_v38, %v1083_v40  ;;  %v6498_v43 = vcombine.high %v1075_v38, %v1083_v40  ;;  %v1098_v45 = vld [vmem:[%s9513_s3 + $0x140] sm:$0xff]  ;;  %v1099_v48 = vld [vmem:[%s9513_s3 + $0x148] sm:$0xff]  ;;  %v1060_v40 = vld [vmem:[%s9513_s3 + $0x10] sm:$0xff]  ;;  %s6169_s30 = scalar_lea.vmem %s9458_s24, 4096 }
  0x33   : > { %v359_v16 = vsub.f32 %v348_v10, %v357_v14  ;;  %v360_v17 = vsub.f32 %v349_v11, %v358_v15  ;;  %v6513_v47 = vcombine.high %v1090_v44, %v1098_v45  ;;  %v6518_v49 = vcombine.low %v1090_v44, %v1098_v45  ;;  %v1106_v52 = vld [vmem:[%s9513_s3 + $0x180] sm:$0xff]  ;;  %v1107_v54 = vld [vmem:[%s9513_s3 + $0x188] sm:$0xff]  ;;  %v1068_v44 = vld [vmem:[%s9513_s3 + $0x50] sm:$0xff]  ;;  %p6170_p11 = scmp.ne.s32.totalorder %s9458_s24, %s6169_s30 }
  0x34   : > { %v6520_v50 = vcombine.low %v1091_v46, %v1099_v48  ;;  %v6523_v51 = vcombine.high %v1091_v46, %v1099_v48  ;;  %v1114_v53 = vld [vmem:[%s9513_s3 + $0x1c0] sm:$0xff]  ;;  %v1115_v56 = vld [vmem:[%s9513_s3 + $0x1c8] sm:$0xff]  ;;  %v1061_v45 = vld [vmem:[%s9513_s3 + $0x18] sm:$0xff]  ;;  %v6662_v46 = vcombine.high %v1060_v40, %v1068_v44 }
  0x35   : > { %v361_v18 = vpack.c.bf16 %v360_v17, %v359_v16  ;;  %v6536_v55 = vcombine.high %v1106_v52, %v1114_v53  ;;  %v6542_v57 = vcombine.low %v1106_v52, %v1114_v53  ;;  %v6544_v58 = vcombine.low %v1107_v54, %v1115_v56  ;;  %v1122_v60 = vld [vmem:[%s9513_s3 + $0x200] sm:$0xff]  ;;  %v1123_v62 = vld [vmem:[%s9513_s3 + $0x208] sm:$0xff]  ;;  %v1069_v48 = vld [vmem:[%s9513_s3 + $0x58] sm:$0xff]  ;;  %p6171_p12 = pnand %p6170_p11, %p6347_p4 }
  0x36   : > { %v6546_v59 = vcombine.high %v1107_v54, %v1115_v56  ;;  %v1130_v61 = vld [vmem:[%s9513_s3 + $0x240] sm:$0xff]  ;;  %v1131_v0 = vld [vmem:[%s9513_s3 + $0x248] sm:$0xff]  ;;  %9755 = vst [vmem:[#allocation10_spill] sm:$0xff] %v6662_v46  ;;  %v6668_v52 = vcombine.low %v1060_v40, %v1068_v44  ;;  %v6670_v53 = vcombine.low %v1061_v45, %v1069_v48  ;;  %v6672_v54 = vcombine.high %v1061_v45, %v1069_v48 }
  0x37   : > { %5587 = vmatmul.mubr.msk.bf16.vlgmr.msra.gmra.mrb[0].mxu0 %vm386_vm2, %v361_v18  ;;  %5936 = vmatmul.mubr.msk.bf16.vlgmr.msra.gmra.mrb[0].mxu1 %vm386_vm2, %v361_v18  ;;  %v6560_v63 = vcombine.high %v1122_v60, %v1130_v61  ;;  %v6568_v2 = vcombine.low %v1123_v62, %v1131_v0  ;;  %v1138_v5 = vld [vmem:[%s9513_s3 + $0x280] sm:$0xff]  ;;  %v1171_v29 = vld [vmem:[%s9513_s3 + $0x388] sm:$0xff]  ;;  %p6172_p13 = pneg %p6171_p12 }
  0x38   : > { %488 = vmatpush1.bf16.msra.mxu0 %v6110_v1  ;;  %519 = vmatprep.mubr.bf16.mxu0 %v9519_v3  ;;  %v6566_v1 = vcombine.low %v1122_v60, %v1130_v61  ;;  %v1178_v28 = vld [vmem:[%s9513_s3 + $0x3c0] sm:$0xff]  ;;  %v1179_v33 = vld [vmem:[%s9513_s3 + $0x3c8] sm:$0xff]  ;;  %9756 = vst [vmem:[#allocation11_spill] sm:$0xff] %v6672_v54  ;;  %v810_v60 = vlaneseq }
  0x39   : > { %5589 = vmatprep.subr.msk.bf16.mxu0 %vm390_vm0, %v5584_v4  ;;  %5940 = vmatpush3.bf16.msra.mxu1 %v6118_v8  ;;  %v6570_v4 = vcombine.high %v1123_v62, %v1131_v0  ;;  %v9521_v8 = vmov 0.0|0.0   ;;  %v6646_v37 = vcombine.low %v1171_v29, %v1179_v33  ;;  %v6648_v38 = vcombine.high %v1171_v29, %v1179_v33 }
  0x3a   : > { %5941 = vmatprep.subr.bf16.mxu1 %v6255_v6  ;;  %5943 = vmatprep.mubr.msk.bf16.mxu1 %vm6256_vm1, %v6255_v6  ;;  %v3068_v9 = vunpack.c.l.bf16 %v9521_v8  ;;  %v3071_v10 = vunpack.c.h.bf16 %v9521_v8 }
  0x3b   : > { %9754 = vst [vmem:[#allocation9_spill] sm:$0xff] %v6646_v37 }
  0x3c   : > { %490 = vmatpush1.bf16.msra.mxu0 %v392_v7  ;;  %v1139_v7 = vld [vmem:[%s9513_s3 + $0x288] sm:$0xff]  ;;  %v3074_v16 = vsub.f32 0.0, %v3068_v9  ;;  %v3077_v17 = vsub.f32 0.0, %v3071_v10 }
  0x3d   : > { %610 = vmatprep.subr.bf16.mxu0 %v6115_v19  ;;  %5942 = vmatpush3.bf16.msra.mxu1 %v398_v12  ;;  %v1147_v12 = vld [vmem:[%s9513_s3 + $0x2c8] sm:$0xff] }
  0x3e   : > { %5947 = vmatprep.subr.bf16.mxu1 %v6255_v6  ;;  %v6594_v14 = vcombine.low %v1139_v7, %v1147_v12  ;;  %v6596_v15 = vcombine.high %v1139_v7, %v1147_v12  ;;  %v6610_v21 = vpack.c.bf16 %v3077_v17, %v3074_v16  ;;  %v779_v10 = vld [vmem:[%s9515_s5 + $0x8] sm:$0x3f] }
  0x40   : > { %5944 = vmatmul.mubr.msk.bf16.vlgmr.msra.gmra.mrb[4].mxu1 %vm386_vm2, %v356_v13  ;;  %3086 = vrot.lane.b32.xlu1 %v6610_v21, %s6258_s23 }
  0x41   : > { %5948 = vmatpush3.bf16.msra.mxu1 %v6120_v20  ;;  %5951 = vmatprep.mubr.msk.bf16.mxu1 %vm6256_vm1, %v6255_v6 }
  0x42   : > { %5949 = vmatprep.subr.bf16.mxu1 %v6255_v6 }
  0x43   : > { %5590 = vmatmul.mubr.msk.bf16.vlgmr.msra.gmra.mrb[0].mxu0 %vm386_vm2, %v356_v13 }
  0x44   : > { %611 = vmatpush1.bf16.msra.mxu0 %v6113_v22  ;;  %642 = vmatprep.mubr.bf16.mxu0 %v9519_v3 }
  0x45   : > { %5598 = vmatprep.subr.msk.bf16.mxu0 %vm390_vm0, %v5596_v23  ;;  %5950 = vmatpush3.bf16.msra.mxu1 %v608_v27 }
  0x46   : > { %5955 = vmatprep.subr.bf16.mxu1 %v6255_v6 }
  0x48   : > { %613 = vmatpush1.bf16.msra.mxu0 %v602_v25  ;;  %5952 = vmatmul.mubr.msk.bf16.vlgmr.msra.gmra.mrb[8].mxu1 %vm386_vm2, %v361_v18 }
  0x49   : > { %694 = vmatprep.subr.bf16.mxu0 %v6115_v19  ;;  %5956 = vmatpush3.bf16.msra.mxu1 %v6120_v20  ;;  %v1162_v19 = vld [vmem:[%s9513_s3 + $0x340] sm:$0xff]  ;;  %v1155_v20 = vld [vmem:[%s9513_s3 + $0x308] sm:$0xff] }
  0x4a   : > { %5959 = vmatprep.mubr.msk.bf16.mxu1 %vm6256_vm1, %v6255_v6  ;;  %5957 = vmatprep.subr.bf16.mxu1 %v6255_v6  ;;  %v1146_v6 = vld [vmem:[%s9513_s3 + $0x2c0] sm:$0xff] }
  0x4b   : > { %5599 = vmatmul.mubr.msk.bf16.vlgmr.msra.gmra.mrb[4].mxu0 %vm386_vm2, %v361_v18  ;;  %v6586_v11 = vcombine.high %v1138_v5, %v1146_v6  ;;  %v1154_v18 = vld [vmem:[%s9513_s3 + $0x300] sm:$0xff] }
  0x4c   : > { %695 = vmatpush1.bf16.msra.mxu0 %v6113_v22  ;;  %726 = vmatprep.mubr.bf16.mxu0 %v9519_v3  ;;  %v6612_v22 = vcombine.high %v1154_v18, %v1162_v19  ;;  %v6618_v24 = vcombine.low %v1154_v18, %v1162_v19 }
  0x4d   : > { %5601 = vmatprep.subr.msk.bf16.mxu0 %vm390_vm0, %v5596_v23  ;;  %5958 = vmatpush3.bf16.msra.mxu1 %v608_v27  ;;  %v1163_v23 = vld [vmem:[%s9513_s3 + $0x348] sm:$0xff]  ;;  %v1170_v27 = vld [vmem:[%s9513_s3 + $0x380] sm:$0xff] }
  0x4e   : > { %2420 = vmatprep.subr.bf16.mxu1 %v6472_v35  ;;  %v6622_v26 = vcombine.high %v1155_v20, %v1163_v23  ;;  %v6638_v30 = vcombine.high %v1170_v27, %v1178_v28  ;;  %v6644_v36 = vcombine.low %v1170_v27, %v1178_v28 }
  0x50   : > { %697 = vmatpush1.bf16.msra.mxu0 %v602_v25  ;;  %5960 = vmatmul.mubr.msk.bf16.vlgmr.msra.gmra.mrb[12].mxu1 %vm386_vm2, %v356_v13  ;;  %v6620_v25 = vcombine.low %v1155_v20, %v1163_v23 }
  0x51   : > { %2377 = vmatprep.subr.bf16.mxu0 %v6465_v32  ;;  %2421 = vmatpush1.bf16.msra.mxu1 %v6470_v34 }
  0x52   : > { %2452 = vmatprep.mubr.bf16.mxu1 %v9519_v3  ;;  %2422 = vmatprep.subr.bf16.mxu1 %v6498_v43 }
  0x55   : > { %2423 = vmatpush1.bf16.msra.mxu1 %v6496_v42 }
  0x56   : > { %2424 = vmatprep.subr.bf16.mxu1 %v6523_v51 }
  0x57   : > { %5602 = vmatmul.mubr.msk.bf16.vlgmr.msra.gmra.mrb[4].mxu0 %vm386_vm2, %v356_v13  ;;  %v6592_v13 = vcombine.low %v1138_v5, %v1146_v6  ;;  %v811_v5 = vshrl.u32 %v810_v60, 7 }
  0x58   : > { %2409 = vmatprep.mubr.bf16.mxu0 %v9519_v3  ;;  %2378 = vmatpush1.bf16.msra.mxu0 %v6463_v31 }
  0x59   : > { %2379 = vmatprep.subr.bf16.mxu0 %v6489_v39  ;;  %2425 = vmatpush1.bf16.msra.mxu1 %v6520_v50  ;;  %v6676_v6 = vsub.s32 0, %v811_v5  ;;  %v6678_v7 = vsub.s32 1, %v811_v5  ;;  %v6683_v16 = vsub.s32 2, %v811_v5 }
  0x5a   : > { %2426 = vmatprep.subr.bf16.mxu1 %v6546_v59 }
  0x5b   : > { %9757 = vst [vmem:[#allocation12_spill] sm:$0xff] %v6676_v6  ;;  %9758 = vst [vmem:[#allocation13_spill] sm:$0xff] %v6678_v7  ;;  %v813_v23 = vrot.slane %v779_v10, %v6676_v6  ;;  %v831_v27 = vrot.slane %v779_v10, %v6678_v7  ;;  %v874_v40 = vrot.slane %v779_v10, %v6683_v16  ;;  %v6692_v7 = vsub.s32 3, %v811_v5 }
  0x5c   : > { %2380 = vmatpush1.bf16.msra.mxu0 %v6494_v41  ;;  %9759 = vst [vmem:[#allocation14_spill] sm:$0xff] %v6683_v16  ;;  %v6694_v6 = vsub.s32 4, %v811_v5 }
  0x5d   : > { %2381 = vmatprep.subr.bf16.mxu0 %v6513_v47  ;;  %2427 = vmatpush1.bf16.msra.mxu1 %v6544_v58  ;;  %9760 = vst [vmem:[#allocation15_spill] sm:$0xff] %v6692_v7 }
  0x5e   : > { %2428 = vmatprep.subr.bf16.mxu1 %v6570_v4  ;;  %9761 = vst [vmem:[#allocation16_spill] sm:$0xff] %v6694_v6 }
  0x60   : > { %2382 = vmatpush1.bf16.msra.mxu0 %v6518_v49 }
  0x61   : > { %2383 = vmatprep.subr.bf16.mxu0 %v6536_v55  ;;  %2429 = vmatpush1.bf16.msra.mxu1 %v6568_v2 }
  0x62   : > { %2430 = vmatprep.subr.bf16.mxu1 %v6596_v15 }
  0x64   : > { %2384 = vmatpush1.bf16.msra.mxu0 %v6542_v57 }
  0x65   : > { %2385 = vmatprep.subr.bf16.mxu0 %v6560_v63  ;;  %2431 = vmatpush1.bf16.msra.mxu1 %v6594_v14 }
  0x66   : > { %2432 = vmatprep.subr.bf16.mxu1 %v6622_v26 }
  0x68   : > { %2386 = vmatpush1.bf16.msra.mxu0 %v6566_v1 }
  0x69   : > { %2387 = vmatprep.subr.bf16.mxu0 %v6586_v11  ;;  %2433 = vmatpush1.bf16.msra.mxu1 %v6620_v25 }
  0x6a   : > { %2434 = vmatprep.subr.bf16.mxu1 %v6648_v38 }
  0x6c   : > { %2388 = vmatpush1.bf16.msra.mxu0 %v6592_v13 }
  0x6d   : > { %2389 = vmatprep.subr.bf16.mxu0 %v6612_v22  ;;  %2435 = vmatpush1.bf16.msra.mxu1 %v6646_v37 }
  0x6e   : > { %2506 = vmatprep.subr.bf16.mxu1 %v6672_v54 }
  0x70   : > { %2390 = vmatpush1.bf16.msra.mxu0 %v6618_v24 }
  0x71   : > { %2391 = vmatprep.subr.bf16.mxu0 %v6638_v30 }
  0x74   : > { %2392 = vmatpush1.bf16.msra.mxu0 %v6644_v36 }
  0x75   : > { %2463 = vmatprep.subr.bf16.mxu0 %v6662_v46 }
 0x10a   : > { %v477_v56 = vpop.f32.mrb[0].mxu1 }
 0x10b   : > { %v5937_v61 = vpop.f32.mrb[1].mxu1 }
 0x10c   : > { %v480_v62 = vpop.f32.mrb[2].mxu1 }
 0x10d   : > { %v5938_v0 = vpop.f32.mrb[3].mxu1 }
 0x113   : > { %v564_v9 = vpop.f32.mrb[4].mxu1 }
 0x114   : > { %v5945_v12 = vpop.f32.mrb[5].mxu1 }
 0x115   : > { %v567_v17 = vpop.f32.mrb[6].mxu1 }
 0x116   : > { %v521_v18 = vpop.f32.mrb[0].mxu0  ;;  %v5946_v19 = vpop.f32.mrb[7].mxu1 }
 0x117   : > { %v523_v20 = vpop.f32.mrb[1].mxu0 }
 0x118   : > { %v789_v28 = vrot.slane %v523_v20, 7  ;;  %v525_v29 = vpop.f32.mrb[2].mxu0  ;;  %v852_v45 = vrot.slane %v523_v20, 1  ;;  %v837_v61 = vmul.f32 %v831_v27, %v523_v20 }
 0x119   : > { %v527_v33 = vpop.f32.mrb[3].mxu0 }
 0x11a   : > { %v804_v44 = vsel %vm787_vm3, 0.0, %v789_v28  ;;  %v793_v48 = vrot.slane %v527_v33, 7  ;;  %v853_v56 = vrot.slane %v527_v33, 1  ;;  %v840_v18 = vmul.f32 %v831_v27, %v527_v33 }
 0x11b   : > { %v819_v60 = vmul.f32 %v813_v23, %v804_v44 }
 0x11c   : > { %v794_v62 = vsel %vm787_vm3, %v789_v28, %v793_v48  ;;  %v854_v0 = vsel %vm848_vm4, %v852_v45, %v853_v56  ;;  %v865_v9 = vsel %vm848_vm4, %v853_v56, 0.0  ;;  %v922_v28 = vrot.slane %v779_v10, %v6692_v7 }
 0x11d   : > { %v843_v12 = vadd.f32 %v837_v61, %v819_v60  ;;  %v822_v17 = vmul.f32 %v813_v23, %v794_v62  ;;  %v880_v19 = vmul.f32 %v874_v40, %v854_v0  ;;  %v883_v3 = vmul.f32 %v874_v40, %v865_v9 }
 0x11e   : > { %v6697_v48 = vsub.s32 5, %v811_v5  ;;  %v946_v23 = vrot.slane %v779_v10, %v6694_v6  ;;  %v1006_v7 = vstv %s1005_s19 }
 0x11f   : > { %v846_v29 = vadd.f32 %v840_v18, %v822_v17  ;;  %v886_v8 = vadd.f32 %v880_v19, %v843_v12 }
 0x120   : > { %9762 = vst [vmem:[#allocation17_spill] sm:$0xff] %v6697_v48  ;;  %v988_v62 = vrot.slane %v779_v10, %v6697_v48 }
 0x121   : > { %v889_v16 = vadd.f32 %v883_v3, %v846_v29 }
 0x12a   : > { %v728_v44 = vpop.f32.mrb[4].mxu0 }
 0x12b   : > { %v730_v20 = vpop.f32.mrb[5].mxu0 }
 0x12c   : > { %v898_v45 = vrot.slane %v730_v20, 7  ;;  %v732_v56 = vpop.f32.mrb[6].mxu0  ;;  %v966_v40 = vrot.slane %v730_v20, 1  ;;  %v952_v12 = vmul.f32 %v946_v23, %v730_v20 }
 0x12d   : > { %v734_v27 = vpop.f32.mrb[7].mxu0 }
 0x12e   : > { %v913_v33 = vsel %vm787_vm3, 0.0, %v898_v45  ;;  %v902_v3 = vrot.slane %v734_v27, 7  ;;  %v967_v60 = vrot.slane %v734_v27, 1  ;;  %v955_v44 = vmul.f32 %v946_v23, %v734_v27 }
 0x12f   : > { %v928_v61 = vmul.f32 %v922_v28, %v913_v33  ;;  %v9763_v23 = vmov 0.0|0.0  }
 0x130   : > { %v903_v0 = vsel %vm787_vm3, %v898_v45, %v902_v3  ;;  %v968_v9 = vsel %vm848_vm4, %v966_v40, %v967_v60  ;;  %v979_v18 = vsel %vm848_vm4, %v967_v60, 0.0 }
 0x131   : > { %v934_v5 = vadd.f32 %v928_v61, %v886_v8  ;;  %v931_v17 = vmul.f32 %v922_v28, %v903_v0  ;;  %v994_v56 = vmul.f32 %v988_v62, %v968_v9  ;;  %v997_v54 = vmul.f32 %v988_v62, %v979_v18  ;;  %v1092_v61 = vld [vmem:[%s9513_s3 + $0x110] sm:$0xff]  ;;  %v1093_v0 = vld [vmem:[%s9513_s3 + $0x118] sm:$0xff] }
 0x132   : > { %v1100_v62 = vld [vmem:[%s9513_s3 + $0x150] sm:$0xff]  ;;  %v1101_v9 = vld [vmem:[%s9513_s3 + $0x158] sm:$0xff] }
 0x133   : > { %v958_v19 = vadd.f32 %v952_v12, %v934_v5  ;;  %v937_v29 = vadd.f32 %v931_v17, %v889_v16  ;;  %v1076_v16 = vld [vmem:[%s9513_s3 + $0x90] sm:$0xff]  ;;  %v6754_v17 = vcombine.high %v1092_v61, %v1100_v62  ;;  %v6757_v18 = vcombine.high %v1093_v0, %v1101_v9 }
 0x135   : > { %v961_v6 = vadd.f32 %v955_v44, %v937_v29  ;;  %v1000_v46 = vadd.f32 %v994_v56, %v958_v19  ;;  %v1108_v19 = vld [vmem:[%s9513_s3 + $0x190] sm:$0xff]  ;;  %v9764_v44 = vmov 0   ;;  %v1109_v56 = vld [vmem:[%s9513_s3 + $0x198] sm:$0xff] }
 0x136   : > { %v1116_v29 = vld [vmem:[%s9513_s3 + $0x1d0] sm:$0xff] }
 0x137   : > { %v1003_v33 = vadd.f32 %v997_v54, %v961_v6  ;;  %v1008_v37 = vadd.f32 %v1006_v7, %v1000_v46  ;;  %v1084_v46 = vld [vmem:[%s9513_s3 + $0xd0] sm:$0xff]  ;;  %v1077_v6 = vld [vmem:[%s9513_s3 + $0x98] sm:$0xff] }
 0x138   : > { %v6727_v27 = vcombine.high %v1076_v16, %v1084_v46  ;;  %v6748_v5 = vcombine.low %v1076_v16, %v1084_v46  ;;  %v1133_v16 = vld [vmem:[%s9513_s3 + $0x258] sm:$0xff]  ;;  %v6802_v46 = vcombine.low %v1108_v19, %v1116_v29 }
 0x139   : > { %v1011_v10 = vadd.f32 %v1006_v7, %v1003_v33  ;;  %v1014_v48 = vmul.f32 0.4, %v1008_v37  ;;  %v1085_v7 = vld [vmem:[%s9513_s3 + $0xd8] sm:$0xff] }
 0x13a   : > { %v6729_v60 = vcombine.high %v1077_v6, %v1085_v7  ;;  %v6752_v12 = vcombine.low %v1077_v6, %v1085_v7  ;;  %v1117_v33 = vld [vmem:[%s9513_s3 + $0x1d8] sm:$0xff]  ;;  %9766 = vst [vmem:[#allocation19_spill] sm:$0xff] %v6802_v46  ;;  %v1140_v7 = vld [vmem:[%s9513_s3 + $0x290] sm:$0xff] }
 0x13b   : > { %v1017_v45 = vmul.f32 0.4, %v1011_v10  ;;  %v1020_v3 = vmax.f32 %v1008_v37, %v1014_v48 }
 0x13d   : > { %v1023_v40 = vmax.f32 %v1011_v10, %v1017_v45  ;;  %v6776_v10 = vcombine.low %v1092_v61, %v1100_v62  ;;  %v6780_v45 = vcombine.low %v1093_v0, %v1101_v9  ;;  %v1141_v61 = vld [vmem:[%s9513_s3 + $0x298] sm:$0xff] }
 0x13e   : > { %v1149_v62 = vld [vmem:[%s9513_s3 + $0x2d8] sm:$0xff] }
 0x13f   : > { %v6705_v8 = vpack.c.bf16 %v1023_v40, %v1020_v3 }
 0x141   : > { %v1732_v20 = vunpack.c.l.bf16 %v6705_v8  ;;  %v1733_v28 = vunpack.c.h.bf16 %v6705_v8  ;;  %4177 = vrot.lane.b32.xlu1 %v6705_v8, %s6258_s23 }
 0x143   : > { %v1734_v54 = vsub.f32 %v1020_v3, %v1732_v20  ;;  %v1735_v37 = vsub.f32 %v1023_v40, %v1733_v28  ;;  %v6785_v3 = vcombine.high %v1109_v56, %v1117_v33  ;;  %v1124_v40 = vld [vmem:[%s9513_s3 + $0x210] sm:$0xff]  ;;  %v1125_v28 = vld [vmem:[%s9513_s3 + $0x218] sm:$0xff] }
 0x144   : > { %v1132_v20 = vld [vmem:[%s9513_s3 + $0x250] sm:$0xff]  ;;  %v6811_v6 = vcombine.high %v1125_v28, %v1133_v16  ;;  %v6830_v9 = vcombine.low %v1125_v28, %v1133_v16  ;;  %v6854_v16 = vcombine.low %v1141_v61, %v1149_v62 }
 0x145   : > { %v6723_v48 = vpack.c.bf16 %v1735_v37, %v1734_v54  ;;  %4175 = vrot.lane.b32.xlu1 %v9763_v23, %s6258_s23  ;;  %9765 = vst [vmem:[#allocation18_spill] sm:$0xff] %v6785_v3  ;;  %v6806_v54 = vcombine.low %v1109_v56, %v1117_v33  ;;  %v6808_v37 = vcombine.high %v1124_v40, %v1132_v20  ;;  %v1156_v56 = vld [vmem:[%s9513_s3 + $0x310] sm:$0xff] }
 0x146   : > { %9769 = vst [vmem:[#allocation22_spill] sm:$0xff] %v6811_v6  ;;  %v6826_v0 = vcombine.low %v1124_v40, %v1132_v20  ;;  %9771 = vst [vmem:[#allocation24_spill] sm:$0xff] %v6830_v9  ;;  %v1164_v33 = vld [vmem:[%s9513_s3 + $0x350] sm:$0xff]  ;;  %v1157_v40 = vld [vmem:[%s9513_s3 + $0x318] sm:$0xff] }
 0x147   : > { %3088 = vrot.lane.b32.xlu0 %v6723_v48, %s6258_s23  ;;  %2410 = vmatmul.mubr.bf16.vlgmr.msra.gmra.mrb[8].mxu0 %v6723_v48  ;;  %9767 = vst [vmem:[#allocation20_spill] sm:$0xff] %v6806_v54  ;;  %9768 = vst [vmem:[#allocation21_spill] sm:$0xff] %v6808_v37  ;;  %v1165_v20 = vld [vmem:[%s9513_s3 + $0x358] sm:$0xff] }
 0x148   : > { %2453 = vmatmul.mubr.bf16.vlgmr.msra.gmra.mrb[16].mxu1 %v6723_v48  ;;  %2464 = vmatpush1.bf16.msra.mxu0 %v6668_v52  ;;  %9770 = vst [vmem:[#allocation23_spill] sm:$0xff] %v6826_v0  ;;  %9775 = vst [vmem:[#allocation28_spill] sm:$0xff] %v6854_v16 }
 0x149   : > { %2507 = vmatpush1.bf16.msra.mxu1 %v6670_v53  ;;  %2465 = vmatprep.subr.bf16.mxu0 %v6727_v27 }
 0x14a   : > { %2508 = vmatprep.subr.bf16.mxu1 %v6729_v60  ;;  %2495 = vmatprep.mubr.bf16.mxu0 %v9764_v44 }
 0x14b   : > { %3090 = vrot.lane.b32.xlu0 %v6610_v21, %s6258_s23  ;;  %2538 = vmatprep.mubr.bf16.mxu1 %v9764_v44  ;;  %v6782_v21 = vcombine.high %v1108_v19, %v1116_v29  ;;  %v6835_v29 = vcombine.high %v1141_v61, %v1149_v62  ;;  %v1181_v61 = vld [vmem:[%s9513_s3 + $0x3d8] sm:$0xff]  ;;  %v6874_v62 = vcombine.low %v1156_v56, %v1164_v33 }
 0x14c   : > { %2466 = vmatpush1.bf16.msra.mxu0 %v6748_v5 }
 0x14d   : > { %2509 = vmatpush1.bf16.msra.mxu1 %v6752_v12  ;;  %2467 = vmatprep.subr.bf16.mxu0 %v6754_v17  ;;  %9773 = vst [vmem:[#allocation26_spill] sm:$0xff] %v6835_v29  ;;  %9778 = vst [vmem:[#allocation31_spill] sm:$0xff] %v6874_v62 }
 0x14e   : > { %2510 = vmatprep.subr.bf16.mxu1 %v6757_v18 }
 0x14f   : > { %4179 = vrot.lane.b32.xlu0 %v9763_v23, %s6258_s23  ;;  %v1148_v23 = vld [vmem:[%s9513_s3 + $0x2d0] sm:$0xff]  ;;  %s5607_s23 = sld [smem:[#allocation3 + $0x1]] }
 0x150   : > { %2468 = vmatpush1.bf16.msra.mxu0 %v6776_v10  ;;  %v6832_v19 = vcombine.high %v1140_v7, %v1148_v23  ;;  %v6850_v28 = vcombine.low %v1140_v7, %v1148_v23  ;;  %v1180_v7 = vld [vmem:[%s9513_s3 + $0x3d0] sm:$0xff]  ;;  %v1173_v23 = vld [vmem:[%s9513_s3 + $0x398] sm:$0xff] }
 0x151   : > { %2511 = vmatpush1.bf16.msra.mxu1 %v6780_v45  ;;  %2469 = vmatprep.subr.bf16.mxu0 %v6782_v21 }
 0x152   : > { %2512 = vmatprep.subr.bf16.mxu1 %v6785_v3  ;;  %9772 = vst [vmem:[#allocation25_spill] sm:$0xff] %v6832_v19  ;;  %9774 = vst [vmem:[#allocation27_spill] sm:$0xff] %v6850_v28 }
 0x154   : > { %2470 = vmatpush1.bf16.msra.mxu0 %v6802_v46 }
 0x155   : > { %2513 = vmatpush1.bf16.msra.mxu1 %v6806_v54  ;;  %2471 = vmatprep.subr.bf16.mxu0 %v6808_v37  ;;  %v6859_v37 = vcombine.high %v1157_v40, %v1165_v20  ;;  %v1172_v54 = vld [vmem:[%s9513_s3 + $0x390] sm:$0xff] }
 0x156   : > { %2514 = vmatprep.subr.bf16.mxu1 %v6811_v6  ;;  %v6856_v6 = vcombine.high %v1156_v56, %v1164_v33  ;;  %v1070_v56 = vld [vmem:[%s9513_s3 + $0x60] sm:$0xff]  ;;  %v1063_v33 = vld [vmem:[%s9513_s3 + $0x28] sm:$0xff] }
 0x157   : > { %9777 = vst [vmem:[#allocation30_spill] sm:$0xff] %v6859_v37 }
 0x158   : > { %2472 = vmatpush1.bf16.msra.mxu0 %v6826_v0  ;;  %9776 = vst [vmem:[#allocation29_spill] sm:$0xff] %v6856_v6  ;;  %v1062_v0 = vld [vmem:[%s9513_s3 + $0x20] sm:$0xff] }
 0x159   : > { %2515 = vmatpush1.bf16.msra.mxu1 %v6830_v9  ;;  %2473 = vmatprep.subr.bf16.mxu0 %v6832_v19  ;;  %v6880_v19 = vcombine.high %v1172_v54, %v1180_v7  ;;  %v6883_v9 = vcombine.high %v1173_v23, %v1181_v61 }
 0x15a   : > { %2516 = vmatprep.subr.bf16.mxu1 %v6835_v29  ;;  %v6878_v29 = vcombine.low %v1157_v40, %v1165_v20  ;;  %v1071_v40 = vld [vmem:[%s9513_s3 + $0x68] sm:$0xff]  ;;  %v6898_v20 = vcombine.low %v1172_v54, %v1180_v7  ;;  %v1086_v54 = vld [vmem:[%s9513_s3 + $0xe0] sm:$0xff] }
 0x15b   : > { %9780 = vst [vmem:[#allocation33_spill] sm:$0xff] %v6880_v19  ;;  %9781 = vst [vmem:[#allocation34_spill] sm:$0xff] %v6883_v9  ;;  %v1079_v7 = vld [vmem:[%s9513_s3 + $0xa8] sm:$0xff] }
 0x15c   : > { %2474 = vmatpush1.bf16.msra.mxu0 %v6850_v28  ;;  %9779 = vst [vmem:[#allocation32_spill] sm:$0xff] %v6878_v29  ;;  %9782 = vst [vmem:[#allocation35_spill] sm:$0xff] %v6898_v20  ;;  %v1078_v28 = vld [vmem:[%s9513_s3 + $0xa0] sm:$0xff] }
 0x15d   : > { %2517 = vmatpush1.bf16.msra.mxu1 %v6854_v16  ;;  %2475 = vmatprep.subr.bf16.mxu0 %v6856_v6  ;;  %v6904_v6 = vcombine.high %v1062_v0, %v1070_v56  ;;  %v6907_v16 = vcombine.high %v1063_v33, %v1071_v40 }
 0x15e   : > { %2518 = vmatprep.subr.bf16.mxu1 %v6859_v37  ;;  %v6902_v37 = vcombine.low %v1173_v23, %v1181_v61  ;;  %v1087_v23 = vld [vmem:[%s9513_s3 + $0xe8] sm:$0xff]  ;;  %v6922_v61 = vcombine.low %v1062_v0, %v1070_v56  ;;  %v1102_v0 = vld [vmem:[%s9513_s3 + $0x160] sm:$0xff] }
 0x15f   : > { %9784 = vst [vmem:[#allocation37_spill] sm:$0xff] %v6904_v6  ;;  %9785 = vst [vmem:[#allocation38_spill] sm:$0xff] %v6907_v16  ;;  %v1095_v56 = vld [vmem:[%s9513_s3 + $0x128] sm:$0xff] }
 0x160   : > { %2476 = vmatpush1.bf16.msra.mxu0 %v6874_v62  ;;  %9783 = vst [vmem:[#allocation36_spill] sm:$0xff] %v6902_v37  ;;  %9786 = vst [vmem:[#allocation39_spill] sm:$0xff] %v6922_v61  ;;  %v1094_v62 = vld [vmem:[%s9513_s3 + $0x120] sm:$0xff] }
 0x161   : > { %2519 = vmatpush1.bf16.msra.mxu1 %v6878_v29  ;;  %2477 = vmatprep.subr.bf16.mxu0 %v6880_v19  ;;  %v6928_v19 = vcombine.high %v1078_v28, %v1086_v54  ;;  %v6931_v29 = vcombine.high %v1079_v7, %v1087_v23 }
 0x162   : > { %2520 = vmatprep.subr.bf16.mxu1 %v6883_v9  ;;  %v6926_v9 = vcombine.low %v1063_v33, %v1071_v40  ;;  %v1103_v33 = vld [vmem:[%s9513_s3 + $0x168] sm:$0xff]  ;;  %v6948_v40 = vcombine.low %v1078_v28, %v1086_v54  ;;  %v1118_v28 = vld [vmem:[%s9513_s3 + $0x1e0] sm:$0xff] }
 0x163   : > { %9788 = vst [vmem:[#allocation41_spill] sm:$0xff] %v6928_v19  ;;  %9789 = vst [vmem:[#allocation42_spill] sm:$0xff] %v6931_v29  ;;  %v1111_v54 = vld [vmem:[%s9513_s3 + $0x1a8] sm:$0xff] }
 0x164   : > { %2478 = vmatpush1.bf16.msra.mxu0 %v6898_v20  ;;  %9787 = vst [vmem:[#allocation40_spill] sm:$0xff] %v6926_v9  ;;  %9790 = vst [vmem:[#allocation43_spill] sm:$0xff] %v6948_v40  ;;  %v1110_v20 = vld [vmem:[%s9513_s3 + $0x1a0] sm:$0xff] }
 0x165   : > { %2521 = vmatpush1.bf16.msra.mxu1 %v6902_v37  ;;  %2549 = vmatprep.subr.bf16.mxu0 %v6904_v6  ;;  %v6954_v6 = vcombine.high %v1094_v62, %v1102_v0  ;;  %v6957_v37 = vcombine.high %v1095_v56, %v1103_v33 }
 0x166   : > { %2592 = vmatprep.subr.bf16.mxu1 %v6907_v16  ;;  %v6952_v16 = vcombine.low %v1079_v7, %v1087_v23  ;;  %v1119_v7 = vld [vmem:[%s9513_s3 + $0x1e8] sm:$0xff]  ;;  %v6974_v23 = vcombine.low %v1094_v62, %v1102_v0  ;;  %v1134_v62 = vld [vmem:[%s9513_s3 + $0x260] sm:$0xff] }
 0x167   : > { %2496 = vmatmul.mubr.bf16.vlgmr.msra.gmra.mrb[12].mxu0 %v6723_v48  ;;  %9792 = vst [vmem:[#allocation45_spill] sm:$0xff] %v6954_v6  ;;  %9793 = vst [vmem:[#allocation46_spill] sm:$0xff] %v6957_v37  ;;  %v1127_v0 = vld [vmem:[%s9513_s3 + $0x228] sm:$0xff] }
 0x168   : > { %2539 = vmatmul.mubr.bf16.vlgmr.msra.gmra.mrb[20].mxu1 %v6723_v48  ;;  %2550 = vmatpush1.bf16.msra.mxu0 %v6922_v61  ;;  %9791 = vst [vmem:[#allocation44_spill] sm:$0xff] %v6952_v16  ;;  %9794 = vst [vmem:[#allocation47_spill] sm:$0xff] %v6974_v23  ;;  %v1126_v61 = vld [vmem:[%s9513_s3 + $0x220] sm:$0xff] }
 0x169   : > { %2593 = vmatpush1.bf16.msra.mxu1 %v6926_v9  ;;  %2551 = vmatprep.subr.bf16.mxu0 %v6928_v19  ;;  %v6980_v19 = vcombine.high %v1110_v20, %v1118_v28  ;;  %v6983_v9 = vcombine.high %v1111_v54, %v1119_v7 }
 0x16a   : > { %2594 = vmatprep.subr.bf16.mxu1 %v6931_v29  ;;  %2581 = vmatprep.mubr.bf16.mxu0 %v9764_v44  ;;  %v6978_v29 = vcombine.low %v1095_v56, %v1103_v33  ;;  %v1135_v56 = vld [vmem:[%s9513_s3 + $0x268] sm:$0xff]  ;;  %v687_v33 = vpop.f32.mrb[8].mxu1 }
 0x16b   : > { %2624 = vmatprep.mubr.bf16.mxu1 %v9764_v44  ;;  %9796 = vst [vmem:[#allocation49_spill] sm:$0xff] %v6980_v19  ;;  %9797 = vst [vmem:[#allocation50_spill] sm:$0xff] %v6983_v9  ;;  %v7007_v3 = vcombine.high %v1127_v0, %v1135_v56  ;;  %v1142_v33 = vld [vmem:[%s9513_s3 + $0x2a0] sm:$0xff] }
 0x16c   : > { %2552 = vmatpush1.bf16.msra.mxu0 %v6948_v40  ;;  %9795 = vst [vmem:[#allocation48_spill] sm:$0xff] %v6978_v29  ;;  %v7004_v40 = vcombine.high %v1126_v61, %v1134_v62 }
 0x16d   : > { %2595 = vmatpush1.bf16.msra.mxu1 %v6952_v16  ;;  %2553 = vmatprep.subr.bf16.mxu0 %v6954_v6  ;;  %v5953_v6 = vpop.f32.mrb[9].mxu1  ;;  %v7002_v16 = vcombine.low %v1111_v54, %v1119_v7  ;;  %9801 = vst [vmem:[#allocation54_spill] sm:$0xff] %v7007_v3  ;;  %v7022_v54 = vcombine.low %v1126_v61, %v1134_v62  ;;  %v1166_v61 = vld [vmem:[%s9513_s3 + $0x360] sm:$0xff]  ;;  %v1159_v62 = vld [vmem:[%s9513_s3 + $0x328] sm:$0xff] }
 0x16e   : > { %2596 = vmatprep.subr.bf16.mxu1 %v6957_v37  ;;  %v6998_v37 = vcombine.low %v1110_v20, %v1118_v28  ;;  %9800 = vst [vmem:[#allocation53_spill] sm:$0xff] %v7004_v40  ;;  %v690_v46 = vpop.f32.mrb[10].mxu1  ;;  %v1150_v6 = vld [vmem:[%s9513_s3 + $0x2e0] sm:$0xff]  ;;  %v1143_v28 = vld [vmem:[%s9513_s3 + $0x2a8] sm:$0xff]  ;;  %v7026_v7 = vcombine.low %v1127_v0, %v1135_v56 }
 0x16f   : > { %9799 = vst [vmem:[#allocation52_spill] sm:$0xff] %v7002_v16  ;;  %v5954_v20 = vpop.f32.mrb[11].mxu1  ;;  %v1151_v46 = vld [vmem:[%s9513_s3 + $0x2e8] sm:$0xff] }
 0x170   : > { %2554 = vmatpush1.bf16.msra.mxu0 %v6974_v23  ;;  %9798 = vst [vmem:[#allocation51_spill] sm:$0xff] %v6998_v37  ;;  %v7031_v20 = vcombine.high %v1143_v28, %v1151_v46  ;;  %v1167_v0 = vld [vmem:[%s9513_s3 + $0x368] sm:$0xff]  ;;  %v771_v56 = vpop.f32.mrb[12].mxu1 }
 0x171   : > { %2597 = vmatpush1.bf16.msra.mxu1 %v6978_v29  ;;  %2555 = vmatprep.subr.bf16.mxu0 %v6980_v19  ;;  %v1158_v19 = vld [vmem:[%s9513_s3 + $0x320] sm:$0xff]  ;;  %v7055_v23 = vcombine.high %v1159_v62, %v1167_v0 }
 0x172   : > { %2598 = vmatprep.subr.bf16.mxu1 %v6983_v9  ;;  %v7028_v9 = vcombine.high %v1142_v33, %v1150_v6  ;;  %9803 = vst [vmem:[#allocation56_spill] sm:$0xff] %v7031_v20  ;;  %v1174_v56 = vld [vmem:[%s9513_s3 + $0x3a0] sm:$0xff] }
 0x173   : > { %9807 = vst [vmem:[#allocation60_spill] sm:$0xff] %v7055_v23 }
 0x174   : > { %2556 = vmatpush1.bf16.msra.mxu0 %v6998_v37  ;;  %9802 = vst [vmem:[#allocation55_spill] sm:$0xff] %v7028_v9  ;;  %v7052_v37 = vcombine.high %v1158_v19, %v1166_v61 }
 0x175   : > { %2599 = vmatpush1.bf16.msra.mxu1 %v7002_v16  ;;  %2557 = vmatprep.subr.bf16.mxu0 %v7004_v40  ;;  %v5961_v40 = vpop.f32.mrb[13].mxu1  ;;  %v7050_v16 = vcombine.low %v1143_v28, %v1151_v46  ;;  %v7070_v28 = vcombine.low %v1158_v19, %v1166_v61  ;;  %v7074_v46 = vcombine.low %v1159_v62, %v1167_v0  ;;  %v1072_v19 = vld [vmem:[%s9513_s3 + $0x70] sm:$0xff]  ;;  %v1065_v61 = vld [vmem:[%s9513_s3 + $0x38] sm:$0xff] }
 0x176   : > { %2600 = vmatprep.subr.bf16.mxu1 %v7007_v3  ;;  %v7046_v3 = vcombine.low %v1142_v33, %v1150_v6  ;;  %9806 = vst [vmem:[#allocation59_spill] sm:$0xff] %v7052_v37  ;;  %v774_v29 = vpop.f32.mrb[14].mxu1  ;;  %v1182_v40 = vld [vmem:[%s9513_s3 + $0x3e0] sm:$0xff]  ;;  %v1175_v6 = vld [vmem:[%s9513_s3 + $0x3a8] sm:$0xff]  ;;  %v1073_v62 = vld [vmem:[%s9513_s3 + $0x78] sm:$0xff] }
 0x177   : > { %9805 = vst [vmem:[#allocation58_spill] sm:$0xff] %v7050_v16  ;;  %v5962_v33 = vpop.f32.mrb[15].mxu1  ;;  %v1183_v29 = vld [vmem:[%s9513_s3 + $0x3e8] sm:$0xff]  ;;  %9808 = vst [vmem:[#allocation61_spill] sm:$0xff] %v7070_v28  ;;  %v7094_v0 = vcombine.low %v1174_v56, %v1182_v40 }
 0x178   : > { %2558 = vmatpush1.bf16.msra.mxu0 %v7022_v54  ;;  %9804 = vst [vmem:[#allocation57_spill] sm:$0xff] %v7046_v3  ;;  %9809 = vst [vmem:[#allocation62_spill] sm:$0xff] %v7074_v46  ;;  %v7079_v33 = vcombine.high %v1175_v6, %v1183_v29 }
 0x179   : > { %2601 = vmatpush1.bf16.msra.mxu1 %v7026_v7  ;;  %2559 = vmatprep.subr.bf16.mxu0 %v7028_v9  ;;  %v1064_v9 = vld [vmem:[%s9513_s3 + $0x30] sm:$0xff]  ;;  %9812 = vst [vmem:[#allocation65_spill] sm:$0xff] %v7094_v0 }
 0x17a   : > { %2602 = vmatprep.subr.bf16.mxu1 %v7031_v20  ;;  %v7076_v20 = vcombine.high %v1174_v56, %v1182_v40  ;;  %9811 = vst [vmem:[#allocation64_spill] sm:$0xff] %v7079_v33  ;;  %v1088_v56 = vld [vmem:[%s9513_s3 + $0xf0] sm:$0xff]  ;;  %v1081_v40 = vld [vmem:[%s9513_s3 + $0xb8] sm:$0xff] }
 0x17c   : > { %2560 = vmatpush1.bf16.msra.mxu0 %v7046_v3  ;;  %9810 = vst [vmem:[#allocation63_spill] sm:$0xff] %v7076_v20  ;;  %v1080_v3 = vld [vmem:[%s9513_s3 + $0xb0] sm:$0xff] }
 0x17d   : > { %2603 = vmatpush1.bf16.msra.mxu1 %v7050_v16  ;;  %2561 = vmatprep.subr.bf16.mxu0 %v7052_v37  ;;  %v7100_v37 = vcombine.high %v1064_v9, %v1072_v19  ;;  %v7103_v16 = vcombine.high %v1065_v61, %v1073_v62 }
 0x17e   : > { %2604 = vmatprep.subr.bf16.mxu1 %v7055_v23  ;;  %v7098_v23 = vcombine.low %v1175_v6, %v1183_v29  ;;  %v1089_v6 = vld [vmem:[%s9513_s3 + $0xf8] sm:$0xff]  ;;  %v7118_v29 = vcombine.low %v1064_v9, %v1072_v19  ;;  %v1104_v9 = vld [vmem:[%s9513_s3 + $0x170] sm:$0xff] }
 0x17f   : > { %9814 = vst [vmem:[#allocation67_spill] sm:$0xff] %v7100_v37  ;;  %9815 = vst [vmem:[#allocation68_spill] sm:$0xff] %v7103_v16  ;;  %v1097_v19 = vld [vmem:[%s9513_s3 + $0x138] sm:$0xff] }
 0x180   : > { %2562 = vmatpush1.bf16.msra.mxu0 %v7070_v28  ;;  %9813 = vst [vmem:[#allocation66_spill] sm:$0xff] %v7098_v23  ;;  %9816 = vst [vmem:[#allocation69_spill] sm:$0xff] %v7118_v29  ;;  %v1096_v28 = vld [vmem:[%s9513_s3 + $0x130] sm:$0xff] }
 0x181   : > { %2605 = vmatpush1.bf16.msra.mxu1 %v7074_v46  ;;  %2563 = vmatprep.subr.bf16.mxu0 %v7076_v20  ;;  %v7124_v20 = vcombine.high %v1080_v3, %v1088_v56  ;;  %v7127_v46 = vcombine.high %v1081_v40, %v1089_v6 }
 0x182   : > { %2606 = vmatprep.subr.bf16.mxu1 %v7079_v33  ;;  %v7122_v33 = vcombine.low %v1065_v61, %v1073_v62  ;;  %v1105_v61 = vld [vmem:[%s9513_s3 + $0x178] sm:$0xff]  ;;  %v7144_v62 = vcombine.low %v1080_v3, %v1088_v56  ;;  %v1120_v3 = vld [vmem:[%s9513_s3 + $0x1f0] sm:$0xff] }
 0x183   : > { %9818 = vst [vmem:[#allocation71_spill] sm:$0xff] %v7124_v20  ;;  %9819 = vst [vmem:[#allocation72_spill] sm:$0xff] %v7127_v46  ;;  %v1113_v56 = vld [vmem:[%s9513_s3 + $0x1b8] sm:$0xff] }
 0x184   : > { %2564 = vmatpush1.bf16.msra.mxu0 %v7094_v0  ;;  %9817 = vst [vmem:[#allocation70_spill] sm:$0xff] %v7122_v33  ;;  %9820 = vst [vmem:[#allocation73_spill] sm:$0xff] %v7144_v62  ;;  %v1112_v0 = vld [vmem:[%s9513_s3 + $0x1b0] sm:$0xff] }
 0x185   : > { %2607 = vmatpush1.bf16.msra.mxu1 %v7098_v23  ;;  %2635 = vmatprep.subr.bf16.mxu0 %v7100_v37  ;;  %v7150_v37 = vcombine.high %v1096_v28, %v1104_v9  ;;  %v7153_v23 = vcombine.high %v1097_v19, %v1105_v61 }
 0x186   : > { %2678 = vmatprep.subr.bf16.mxu1 %v7103_v16  ;;  %v7148_v16 = vcombine.low %v1081_v40, %v1089_v6  ;;  %v1121_v40 = vld [vmem:[%s9513_s3 + $0x1f8] sm:$0xff]  ;;  %v7170_v6 = vcombine.low %v1096_v28, %v1104_v9  ;;  %v1136_v28 = vld [vmem:[%s9513_s3 + $0x270] sm:$0xff] }
 0x187   : > { %2582 = vmatmul.mubr.bf16.vlgmr.msra.gmra.mrb[16].mxu0 %v6723_v48  ;;  %9822 = vst [vmem:[#allocation75_spill] sm:$0xff] %v7150_v37  ;;  %9823 = vst [vmem:[#allocation76_spill] sm:$0xff] %v7153_v23  ;;  %v1129_v9 = vld [vmem:[%s9513_s3 + $0x238] sm:$0xff] }
 0x188   : > { %2625 = vmatmul.mubr.bf16.vlgmr.msra.gmra.mrb[24].mxu1 %v6723_v48  ;;  %2636 = vmatpush1.bf16.msra.mxu0 %v7118_v29  ;;  %9821 = vst [vmem:[#allocation74_spill] sm:$0xff] %v7148_v16  ;;  %9824 = vst [vmem:[#allocation77_spill] sm:$0xff] %v7170_v6  ;;  %v1128_v29 = vld [vmem:[%s9513_s3 + $0x230] sm:$0xff] }
 0x189   : > { %2679 = vmatpush1.bf16.msra.mxu1 %v7122_v33  ;;  %2637 = vmatprep.subr.bf16.mxu0 %v7124_v20  ;;  %v7176_v20 = vcombine.high %v1112_v0, %v1120_v3  ;;  %v7179_v33 = vcombine.high %v1113_v56, %v1121_v40 }
 0x18a   : > { %2680 = vmatprep.subr.bf16.mxu1 %v7127_v46  ;;  %2667 = vmatprep.mubr.bf16.mxu0 %v9764_v44  ;;  %v7174_v46 = vcombine.low %v1097_v19, %v1105_v61  ;;  %v1137_v19 = vld [vmem:[%s9513_s3 + $0x278] sm:$0xff]  ;;  %v7194_v61 = vcombine.low %v1112_v0, %v1120_v3  ;;  %v1152_v0 = vld [vmem:[%s9513_s3 + $0x2f0] sm:$0xff] }
 0x18b   : > { %2710 = vmatprep.mubr.bf16.mxu1 %v9764_v44  ;;  %9826 = vst [vmem:[#allocation79_spill] sm:$0xff] %v7176_v20  ;;  %9827 = vst [vmem:[#allocation80_spill] sm:$0xff] %v7179_v33  ;;  %v1145_v3 = vld [vmem:[%s9513_s3 + $0x2b8] sm:$0xff] }
 0x18c   : > { %2638 = vmatpush1.bf16.msra.mxu0 %v7144_v62  ;;  %9825 = vst [vmem:[#allocation78_spill] sm:$0xff] %v7174_v46  ;;  %9828 = vst [vmem:[#allocation81_spill] sm:$0xff] %v7194_v61  ;;  %v1144_v62 = vld [vmem:[%s9513_s3 + $0x2b0] sm:$0xff] }
 0x18d   : > { %2681 = vmatpush1.bf16.msra.mxu1 %v7148_v16  ;;  %2639 = vmatprep.subr.bf16.mxu0 %v7150_v37  ;;  %v7200_v37 = vcombine.high %v1128_v29, %v1136_v28  ;;  %v7203_v16 = vcombine.high %v1129_v9, %v1137_v19 }
 0x18e   : > { %2682 = vmatprep.subr.bf16.mxu1 %v7153_v23  ;;  %v7198_v23 = vcombine.low %v1113_v56, %v1121_v40  ;;  %v1153_v56 = vld [vmem:[%s9513_s3 + $0x2f8] sm:$0xff]  ;;  %v7218_v40 = vcombine.low %v1128_v29, %v1136_v28  ;;  %v1168_v29 = vld [vmem:[%s9513_s3 + $0x370] sm:$0xff] }
 0x18f   : > { %9830 = vst [vmem:[#allocation83_spill] sm:$0xff] %v7200_v37  ;;  %9831 = vst [vmem:[#allocation84_spill] sm:$0xff] %v7203_v16  ;;  %v1161_v28 = vld [vmem:[%s9513_s3 + $0x338] sm:$0xff] }
 0x190   : > { %2640 = vmatpush1.bf16.msra.mxu0 %v7170_v6  ;;  %9829 = vst [vmem:[#allocation82_spill] sm:$0xff] %v7198_v23  ;;  %9832 = vst [vmem:[#allocation85_spill] sm:$0xff] %v7218_v40  ;;  %v1160_v6 = vld [vmem:[%s9513_s3 + $0x330] sm:$0xff] }
 0x191   : > { %2683 = vmatpush1.bf16.msra.mxu1 %v7174_v46  ;;  %2641 = vmatprep.subr.bf16.mxu0 %v7176_v20  ;;  %v7224_v20 = vcombine.high %v1144_v62, %v1152_v0  ;;  %v7227_v46 = vcombine.high %v1145_v3, %v1153_v56 }
 0x192   : > { %2684 = vmatprep.subr.bf16.mxu1 %v7179_v33  ;;  %v7222_v33 = vcombine.low %v1129_v9, %v1137_v19  ;;  %v1169_v9 = vld [vmem:[%s9513_s3 + $0x378] sm:$0xff]  ;;  %v7242_v19 = vcombine.low %v1144_v62, %v1152_v0  ;;  %v1184_v62 = vld [vmem:[%s9513_s3 + $0x3f0] sm:$0xff] }
 0x193   : > { %9834 = vst [vmem:[#allocation87_spill] sm:$0xff] %v7224_v20  ;;  %9835 = vst [vmem:[#allocation88_spill] sm:$0xff] %v7227_v46  ;;  %v1177_v0 = vld [vmem:[%s9513_s3 + $0x3b8] sm:$0xff] }
 0x194   : > { %2642 = vmatpush1.bf16.msra.mxu0 %v7194_v61  ;;  %9833 = vst [vmem:[#allocation86_spill] sm:$0xff] %v7222_v33  ;;  %v1176_v61 = vld [vmem:[%s9513_s3 + $0x3b0] sm:$0xff] }
 0x195   : > { %2685 = vmatpush1.bf16.msra.mxu1 %v7198_v23  ;;  %2643 = vmatprep.subr.bf16.mxu0 %v7200_v37  ;;  %v7248_v37 = vcombine.high %v1160_v6, %v1168_v29  ;;  %v7251_v23 = vcombine.high %v1161_v28, %v1169_v9 }
 0x196   : > { %2686 = vmatprep.subr.bf16.mxu1 %v7203_v16  ;;  %v7246_v16 = vcombine.low %v1145_v3, %v1153_v56  ;;  %v1185_v3 = vld [vmem:[%s9513_s3 + $0x3f8] sm:$0xff]  ;;  %v7266_v56 = vcombine.low %v1160_v6, %v1168_v29  ;;  %v9880_v29 = vld [vmem:[#allocation59_spill] sm:$0xff] }
 0x197   : > { %v7282_v6 = vcombine.low %v1177_v0, %v1185_v3 }
 0x198   : > { %2644 = vmatpush1.bf16.msra.mxu0 %v7218_v40  ;;  %v7278_v40 = vcombine.low %v1176_v61, %v1184_v62 }
 0x199   : > { %2687 = vmatpush1.bf16.msra.mxu1 %v7222_v33  ;;  %2645 = vmatprep.subr.bf16.mxu0 %v7224_v20  ;;  %v7272_v20 = vcombine.high %v1176_v61, %v1184_v62  ;;  %v7275_v33 = vcombine.high %v1177_v0, %v1185_v3  ;;  %v9879_v61 = vld [vmem:[#allocation58_spill] sm:$0xff]  ;;  %v9884_v0 = vld [vmem:[#allocation63_spill] sm:$0xff] }
 0x19a   : > { %2688 = vmatprep.subr.bf16.mxu1 %v7227_v46  ;;  %v7270_v46 = vcombine.low %v1161_v28, %v1169_v9  ;;  %v9881_v28 = vld [vmem:[#allocation60_spill] sm:$0xff]  ;;  %v9882_v9 = vld [vmem:[#allocation61_spill] sm:$0xff]  ;;  %v9883_v62 = vld [vmem:[#allocation62_spill] sm:$0xff] }
 0x19b   : > { %v9887_v3 = vld [vmem:[#allocation66_spill] sm:$0xff] }
 0x19c   : > { %2646 = vmatpush1.bf16.msra.mxu0 %v7242_v19 }
 0x19d   : > { %2689 = vmatpush1.bf16.msra.mxu1 %v7246_v16  ;;  %2647 = vmatprep.subr.bf16.mxu0 %v7248_v37 }
 0x19e   : > { %2690 = vmatprep.subr.bf16.mxu1 %v7251_v23 }
 0x1a0   : > { %2648 = vmatpush1.bf16.msra.mxu0 %v7266_v56 }
 0x1a1   : > { %2691 = vmatpush1.bf16.msra.mxu1 %v7270_v46  ;;  %2649 = vmatprep.subr.bf16.mxu0 %v7272_v20 }
 0x1a2   : > { %2692 = vmatprep.subr.bf16.mxu1 %v7275_v33 }
 0x1a4   : > { %2650 = vmatpush1.bf16.msra.mxu0 %v7278_v40 }
 0x1a5   : > { %2693 = vmatpush1.bf16.msra.mxu1 %v7282_v6  ;;  %2721 = vmatprep.subr.bf16.mxu0 %v6465_v32  ;;  %v9837_v32 = vld [vmem:[#allocation10_spill] sm:$0xff] }
 0x1a6   : > { %2764 = vmatprep.subr.bf16.mxu1 %v6472_v35  ;;  %v9839_v35 = vld [vmem:[#allocation18_spill] sm:$0xff] }
 0x1a7   : > { %2668 = vmatmul.mubr.bf16.vlgmr.msra.gmra.mrb[20].mxu0 %v6723_v48 }
 0x1a8   : > { %2711 = vmatmul.mubr.bf16.vlgmr.msra.gmra.mrb[28].mxu1 %v6723_v48  ;;  %2722 = vmatpush1.bf16.msra.mxu0 %v6463_v31  ;;  %v9836_v31 = vld [vmem:[#allocation9_spill] sm:$0xff]  ;;  %v9869_v48 = vld [vmem:[#allocation48_spill] sm:$0xff] }
 0x1a9   : > { %2765 = vmatpush1.bf16.msra.mxu1 %v6470_v34  ;;  %2723 = vmatprep.subr.bf16.mxu0 %v6489_v39  ;;  %v9838_v34 = vld [vmem:[#allocation11_spill] sm:$0xff] }
 0x1aa   : > { %2766 = vmatprep.subr.bf16.mxu1 %v6498_v43  ;;  %2753 = vmatprep.mubr.bf16.mxu0 %v9764_v44  ;;  %v9840_v39 = vld [vmem:[#allocation19_spill] sm:$0xff]  ;;  %v9843_v43 = vld [vmem:[#allocation22_spill] sm:$0xff] }
 0x1ab   : > { %2796 = vmatprep.mubr.bf16.mxu1 %v9764_v44 }
 0x1ac   : > { %2724 = vmatpush1.bf16.msra.mxu0 %v6494_v41  ;;  %v9841_v41 = vld [vmem:[#allocation20_spill] sm:$0xff] }
 0x1ad   : > { %2767 = vmatpush1.bf16.msra.mxu1 %v6496_v42  ;;  %2725 = vmatprep.subr.bf16.mxu0 %v6513_v47  ;;  %v9842_v42 = vld [vmem:[#allocation21_spill] sm:$0xff]  ;;  %v9844_v47 = vld [vmem:[#allocation23_spill] sm:$0xff] }
 0x1ae   : > { %2768 = vmatprep.subr.bf16.mxu1 %v6523_v51  ;;  %v9847_v51 = vld [vmem:[#allocation26_spill] sm:$0xff] }
 0x1b0   : > { %2726 = vmatpush1.bf16.msra.mxu0 %v6518_v49  ;;  %v9845_v49 = vld [vmem:[#allocation24_spill] sm:$0xff] }
 0x1b1   : > { %2769 = vmatpush1.bf16.msra.mxu1 %v6520_v50  ;;  %2727 = vmatprep.subr.bf16.mxu0 %v6536_v55  ;;  %v9846_v50 = vld [vmem:[#allocation25_spill] sm:$0xff]  ;;  %v9848_v55 = vld [vmem:[#allocation27_spill] sm:$0xff] }
 0x1b2   : > { %2770 = vmatprep.subr.bf16.mxu1 %v6546_v59  ;;  %v9851_v59 = vld [vmem:[#allocation30_spill] sm:$0xff] }
 0x1b4   : > { %2728 = vmatpush1.bf16.msra.mxu0 %v6542_v57  ;;  %v9849_v57 = vld [vmem:[#allocation28_spill] sm:$0xff] }
 0x1b5   : > { %2771 = vmatpush1.bf16.msra.mxu1 %v6544_v58  ;;  %2729 = vmatprep.subr.bf16.mxu0 %v6560_v63  ;;  %v9850_v58 = vld [vmem:[#allocation29_spill] sm:$0xff]  ;;  %v9852_v63 = vld [vmem:[#allocation31_spill] sm:$0xff] }
 0x1b6   : > { %2772 = vmatprep.subr.bf16.mxu1 %v6570_v4  ;;  %v9855_v4 = vld [vmem:[#allocation34_spill] sm:$0xff] }
 0x1b8   : > { %2730 = vmatpush1.bf16.msra.mxu0 %v6566_v1  ;;  %v9853_v1 = vld [vmem:[#allocation32_spill] sm:$0xff] }
 0x1b9   : > { %2773 = vmatpush1.bf16.msra.mxu1 %v6568_v2  ;;  %2731 = vmatprep.subr.bf16.mxu0 %v6586_v11  ;;  %v9854_v2 = vld [vmem:[#allocation33_spill] sm:$0xff]  ;;  %v9856_v11 = vld [vmem:[#allocation35_spill] sm:$0xff] }
 0x1ba   : > { %2774 = vmatprep.subr.bf16.mxu1 %v6596_v15  ;;  %v9859_v15 = vld [vmem:[#allocation38_spill] sm:$0xff] }
 0x1bc   : > { %2732 = vmatpush1.bf16.msra.mxu0 %v6592_v13  ;;  %v9857_v13 = vld [vmem:[#allocation36_spill] sm:$0xff] }
 0x1bd   : > { %2775 = vmatpush1.bf16.msra.mxu1 %v6594_v14  ;;  %2733 = vmatprep.subr.bf16.mxu0 %v6612_v22  ;;  %v9858_v14 = vld [vmem:[#allocation37_spill] sm:$0xff]  ;;  %v9860_v22 = vld [vmem:[#allocation39_spill] sm:$0xff] }
 0x1be   : > { %2776 = vmatprep.subr.bf16.mxu1 %v6622_v26  ;;  %v9863_v26 = vld [vmem:[#allocation42_spill] sm:$0xff] }
 0x1c0   : > { %2734 = vmatpush1.bf16.msra.mxu0 %v6618_v24  ;;  %v9861_v24 = vld [vmem:[#allocation40_spill] sm:$0xff] }
 0x1c1   : > { %2777 = vmatpush1.bf16.msra.mxu1 %v6620_v25  ;;  %2735 = vmatprep.subr.bf16.mxu0 %v6638_v30  ;;  %v9862_v25 = vld [vmem:[#allocation41_spill] sm:$0xff]  ;;  %v9864_v30 = vld [vmem:[#allocation43_spill] sm:$0xff] }
 0x1c2   : > { %2778 = vmatprep.subr.bf16.mxu1 %v6648_v38  ;;  %v9866_v38 = vld [vmem:[#allocation45_spill] sm:$0xff] }
 0x1c4   : > { %2736 = vmatpush1.bf16.msra.mxu0 %v6644_v36  ;;  %v9865_v36 = vld [vmem:[#allocation44_spill] sm:$0xff] }
 0x1c5   : > { %2779 = vmatpush1.bf16.msra.mxu1 %v9836_v31  ;;  %2807 = vmatprep.subr.bf16.mxu0 %v9837_v32  ;;  %v9888_v31 = vld [vmem:[#allocation67_spill] sm:$0xff]  ;;  %v9889_v32 = vld [vmem:[#allocation68_spill] sm:$0xff] }
 0x1c6   : > { %2850 = vmatprep.subr.bf16.mxu1 %v9838_v34  ;;  %v9890_v34 = vld [vmem:[#allocation69_spill] sm:$0xff] }
 0x1c7   : > { %2754 = vmatmul.mubr.bf16.vlgmr.msra.gmra.mrb[8].mxu0 %v6705_v8 }
 0x1c8   : > { %2797 = vmatmul.mubr.bf16.vlgmr.msra.gmra.mrb[16].mxu1 %v6705_v8  ;;  %2808 = vmatpush1.bf16.msra.mxu0 %v6668_v52  ;;  %v9867_v52 = vld [vmem:[#allocation46_spill] sm:$0xff] }
 0x1c9   : > { %2851 = vmatpush1.bf16.msra.mxu1 %v6670_v53  ;;  %2809 = vmatprep.subr.bf16.mxu0 %v6727_v27  ;;  %v9868_v53 = vld [vmem:[#allocation47_spill] sm:$0xff]  ;;  %v9870_v27 = vld [vmem:[#allocation49_spill] sm:$0xff] }
 0x1ca   : > { %2852 = vmatprep.subr.bf16.mxu1 %v6729_v60  ;;  %2839 = vmatprep.mubr.bf16.mxu0 %v9764_v44  ;;  %v9871_v60 = vld [vmem:[#allocation50_spill] sm:$0xff] }
 0x1cb   : > { %2882 = vmatprep.mubr.bf16.mxu1 %v9764_v44 }
 0x1cc   : > { %2810 = vmatpush1.bf16.msra.mxu0 %v6748_v5  ;;  %v9872_v5 = vld [vmem:[#allocation51_spill] sm:$0xff] }
 0x1cd   : > { %2853 = vmatpush1.bf16.msra.mxu1 %v6752_v12  ;;  %2811 = vmatprep.subr.bf16.mxu0 %v6754_v17  ;;  %v9873_v12 = vld [vmem:[#allocation52_spill] sm:$0xff]  ;;  %v9874_v17 = vld [vmem:[#allocation53_spill] sm:$0xff] }
 0x1ce   : > { %2854 = vmatprep.subr.bf16.mxu1 %v6757_v18  ;;  %v9875_v18 = vld [vmem:[#allocation54_spill] sm:$0xff] }
 0x1d0   : > { %2812 = vmatpush1.bf16.msra.mxu0 %v6776_v10  ;;  %v9876_v10 = vld [vmem:[#allocation55_spill] sm:$0xff] }
 0x1d1   : > { %2855 = vmatpush1.bf16.msra.mxu1 %v6780_v45  ;;  %2813 = vmatprep.subr.bf16.mxu0 %v6782_v21  ;;  %v9877_v45 = vld [vmem:[#allocation56_spill] sm:$0xff]  ;;  %v9878_v21 = vld [vmem:[#allocation57_spill] sm:$0xff] }
 0x1d2   : > { %2856 = vmatprep.subr.bf16.mxu1 %v9839_v35  ;;  %v9891_v35 = vld [vmem:[#allocation70_spill] sm:$0xff] }
 0x1d4   : > { %2814 = vmatpush1.bf16.msra.mxu0 %v9840_v39  ;;  %v9892_v39 = vld [vmem:[#allocation71_spill] sm:$0xff] }
 0x1d5   : > { %2857 = vmatpush1.bf16.msra.mxu1 %v9841_v41  ;;  %2815 = vmatprep.subr.bf16.mxu0 %v9842_v42  ;;  %v9893_v41 = vld [vmem:[#allocation72_spill] sm:$0xff]  ;;  %v9894_v42 = vld [vmem:[#allocation73_spill] sm:$0xff] }
 0x1d6   : > { %2858 = vmatprep.subr.bf16.mxu1 %v9843_v43  ;;  %v9895_v43 = vld [vmem:[#allocation74_spill] sm:$0xff] }
 0x1d8   : > { %2816 = vmatpush1.bf16.msra.mxu0 %v9844_v47  ;;  %v9896_v47 = vld [vmem:[#allocation75_spill] sm:$0xff] }
 0x1d9   : > { %2859 = vmatpush1.bf16.msra.mxu1 %v9845_v49  ;;  %2817 = vmatprep.subr.bf16.mxu0 %v9846_v50  ;;  %v9897_v49 = vld [vmem:[#allocation76_spill] sm:$0xff]  ;;  %v9898_v50 = vld [vmem:[#allocation77_spill] sm:$0xff] }
 0x1da   : > { %2860 = vmatprep.subr.bf16.mxu1 %v9847_v51  ;;  %v9899_v51 = vld [vmem:[#allocation78_spill] sm:$0xff] }
 0x1dc   : > { %2818 = vmatpush1.bf16.msra.mxu0 %v9848_v55  ;;  %v9900_v55 = vld [vmem:[#allocation79_spill] sm:$0xff] }
 0x1dd   : > { %2861 = vmatpush1.bf16.msra.mxu1 %v9849_v57  ;;  %2819 = vmatprep.subr.bf16.mxu0 %v9850_v58  ;;  %v9901_v57 = vld [vmem:[#allocation80_spill] sm:$0xff]  ;;  %v9902_v58 = vld [vmem:[#allocation81_spill] sm:$0xff] }
 0x1de   : > { %2862 = vmatprep.subr.bf16.mxu1 %v9851_v59  ;;  %v9903_v59 = vld [vmem:[#allocation82_spill] sm:$0xff] }
 0x1e0   : > { %2820 = vmatpush1.bf16.msra.mxu0 %v9852_v63  ;;  %v9905_v63 = vld [vmem:[#allocation84_spill] sm:$0xff] }
 0x1e1   : > { %2863 = vmatpush1.bf16.msra.mxu1 %v9853_v1  ;;  %2821 = vmatprep.subr.bf16.mxu0 %v9854_v2  ;;  %v9906_v1 = vld [vmem:[#allocation85_spill] sm:$0xff]  ;;  %v9907_v2 = vld [vmem:[#allocation86_spill] sm:$0xff] }
 0x1e2   : > { %2864 = vmatprep.subr.bf16.mxu1 %v9855_v4  ;;  %v9908_v4 = vld [vmem:[#allocation87_spill] sm:$0xff] }
 0x1e4   : > { %2822 = vmatpush1.bf16.msra.mxu0 %v9856_v11  ;;  %v9909_v11 = vld [vmem:[#allocation88_spill] sm:$0xff] }
 0x1e5   : > { %2865 = vmatpush1.bf16.msra.mxu1 %v9857_v13  ;;  %2893 = vmatprep.subr.bf16.mxu0 %v9858_v14  ;;  %v1186_v13 = vld [vmem:[%s9514_s4] sm:$0xff] }
 0x1e6   : > { %2936 = vmatprep.subr.bf16.mxu1 %v9859_v15  ;;  %v1194_v14 = vld [vmem:[%s9514_s4 + $0x40] sm:$0xff]  ;;  %v7431_v15 = vpop.permute.xlu0 %3088 }
 0x1e7   : > { %2840 = vmatmul.mubr.bf16.vlgmr.msra.gmra.mrb[12].mxu0 %v6705_v8 }
 0x1e8   : > { %2883 = vmatmul.mubr.bf16.vlgmr.msra.gmra.mrb[20].mxu1 %v6705_v8  ;;  %2894 = vmatpush1.bf16.msra.mxu0 %v9860_v22  ;;  %v1202_v22 = vld [vmem:[%s9514_s4 + $0x80] sm:$0xff] }
 0x1e9   : > { %2937 = vmatpush1.bf16.msra.mxu1 %v9861_v24  ;;  %2895 = vmatprep.subr.bf16.mxu0 %v9862_v25  ;;  %v1210_v24 = vld [vmem:[%s9514_s4 + $0xc0] sm:$0xff] }
 0x1ea   : > { %2938 = vmatprep.subr.bf16.mxu1 %v9863_v26  ;;  %2925 = vmatprep.mubr.bf16.mxu0 %v9764_v44  ;;  %v1218_v26 = vld [vmem:[%s9514_s4 + $0x100] sm:$0xff] }
 0x1eb   : > { %2968 = vmatprep.mubr.bf16.mxu1 %v9764_v44 }
 0x1ec   : > { %2896 = vmatpush1.bf16.msra.mxu0 %v9864_v30  ;;  %v1226_v30 = vld [vmem:[%s9514_s4 + $0x140] sm:$0xff] }
 0x1ed   : > { %2939 = vmatpush1.bf16.msra.mxu1 %v9865_v36  ;;  %2897 = vmatprep.subr.bf16.mxu0 %v9866_v38  ;;  %v1219_v36 = vld [vmem:[%s9514_s4 + $0x108] sm:$0xff] }
 0x1ee   : > { %2940 = vmatprep.subr.bf16.mxu1 %v9867_v52  ;;  %v1227_v38 = vld [vmem:[%s9514_s4 + $0x148] sm:$0xff] }
 0x1f0   : > { %2898 = vmatpush1.bf16.msra.mxu0 %v9868_v53  ;;  %v7490_v53 = vcombine.low %v1202_v22, %v1210_v24 }
 0x1f1   : > { %2941 = vmatpush1.bf16.msra.mxu1 %v9869_v48  ;;  %2899 = vmatprep.subr.bf16.mxu0 %v9870_v27  ;;  %v7497_v27 = vcombine.high %v1218_v26, %v1226_v30 }
 0x1f2   : > { %2942 = vmatprep.subr.bf16.mxu1 %v9871_v60  ;;  %9914 = vst [vmem:[#allocation19_spill] sm:$0xff] %v7490_v53  ;;  %v7502_v60 = vcombine.high %v1219_v36, %v1227_v38 }
 0x1f3   : > { %9916 = vst [vmem:[#allocation21_spill] sm:$0xff] %v7497_v27 }
 0x1f4   : > { %2900 = vmatpush1.bf16.msra.mxu0 %v9872_v5  ;;  %9917 = vst [vmem:[#allocation22_spill] sm:$0xff] %v7502_v60  ;;  %v1242_v5 = vld [vmem:[%s9514_s4 + $0x1c0] sm:$0xff] }
 0x1f5   : > { %2943 = vmatpush1.bf16.msra.mxu1 %v9873_v12  ;;  %2901 = vmatprep.subr.bf16.mxu0 %v9874_v17  ;;  %v1235_v12 = vld [vmem:[%s9514_s4 + $0x188] sm:$0xff] }
 0x1f6   : > { %2944 = vmatprep.subr.bf16.mxu1 %v9875_v18  ;;  %v1243_v17 = vld [vmem:[%s9514_s4 + $0x1c8] sm:$0xff]  ;;  %v7518_v18 = vcombine.low %v1218_v26, %v1226_v30  ;;  %v1188_v26 = vld [vmem:[%s9514_s4 + $0x10] sm:$0xff] }
 0x1f7   : > { %v1196_v30 = vld [vmem:[%s9514_s4 + $0x50] sm:$0xff] }
 0x1f8   : > { %2902 = vmatpush1.bf16.msra.mxu0 %v7022_v54  ;;  %v9885_v54 = vld [vmem:[#allocation64_spill] sm:$0xff]  ;;  %9918 = vst [vmem:[#allocation23_spill] sm:$0xff] %v7518_v18 }
 0x1f9   : > { %2945 = vmatpush1.bf16.msra.mxu1 %v7026_v7  ;;  %2903 = vmatprep.subr.bf16.mxu0 %v9876_v10  ;;  %v9886_v7 = vld [vmem:[#allocation65_spill] sm:$0xff]  ;;  %v7522_v10 = vcombine.low %v1219_v36, %v1227_v38  ;;  %v1189_v36 = vld [vmem:[%s9514_s4 + $0x18] sm:$0xff] }
 0x1fa   : > { %2946 = vmatprep.subr.bf16.mxu1 %v9877_v45  ;;  %v1197_v38 = vld [vmem:[%s9514_s4 + $0x58] sm:$0xff] }
 0x1fb   : > { %9919 = vst [vmem:[#allocation24_spill] sm:$0xff] %v7522_v10 }
 0x1fc   : > { %2904 = vmatpush1.bf16.msra.mxu0 %v9878_v21  ;;  %v7527_v21 = vcombine.high %v1235_v12, %v1243_v17 }
 0x1fd   : > { %2947 = vmatpush1.bf16.msra.mxu1 %v9879_v61  ;;  %2905 = vmatprep.subr.bf16.mxu0 %v9880_v29  ;;  %v1250_v61 = vld [vmem:[%s9514_s4 + $0x200] sm:$0xff] }
 0x1fe   : > { %2948 = vmatprep.subr.bf16.mxu1 %v9881_v28  ;;  %9921 = vst [vmem:[#allocation26_spill] sm:$0xff] %v7527_v21  ;;  %v1258_v29 = vld [vmem:[%s9514_s4 + $0x240] sm:$0xff]  ;;  %v1251_v28 = vld [vmem:[%s9514_s4 + $0x208] sm:$0xff] }
 0x200   : > { %2906 = vmatpush1.bf16.msra.mxu0 %v9882_v9  ;;  %v1259_v9 = vld [vmem:[%s9514_s4 + $0x248] sm:$0xff] }
 0x201   : > { %2949 = vmatpush1.bf16.msra.mxu1 %v9883_v62  ;;  %2907 = vmatprep.subr.bf16.mxu0 %v9884_v0  ;;  %v7546_v0 = vcombine.low %v1235_v12, %v1243_v17  ;;  %v7669_v17 = vcombine.high %v1189_v36, %v1197_v38 }
 0x202   : > { %2950 = vmatprep.subr.bf16.mxu1 %v9885_v54  ;;  %v7548_v54 = vcombine.high %v1250_v61, %v1258_v29 }
 0x203   : > { %9923 = vst [vmem:[#allocation28_spill] sm:$0xff] %v7546_v0  ;;  %9945 = vst [vmem:[#allocation50_spill] sm:$0xff] %v7669_v17 }
 0x204   : > { %2908 = vmatpush1.bf16.msra.mxu0 %v9886_v7  ;;  %9924 = vst [vmem:[#allocation29_spill] sm:$0xff] %v7548_v54  ;;  %v7551_v7 = vcombine.high %v1251_v28, %v1259_v9 }
 0x205   : > { %2951 = vmatpush1.bf16.msra.mxu1 %v9887_v3  ;;  %2979 = vmatprep.subr.bf16.mxu0 %v9888_v31  ;;  %v1266_v3 = vld [vmem:[%s9514_s4 + $0x280] sm:$0xff] }
 0x206   : > { %3022 = vmatprep.subr.bf16.mxu1 %v9889_v32  ;;  %9925 = vst [vmem:[#allocation30_spill] sm:$0xff] %v7551_v7  ;;  %v1274_v31 = vld [vmem:[%s9514_s4 + $0x2c0] sm:$0xff]  ;;  %v1267_v32 = vld [vmem:[%s9514_s4 + $0x288] sm:$0xff] }
 0x207   : > { %2926 = vmatmul.mubr.bf16.vlgmr.msra.gmra.mrb[16].mxu0 %v6705_v8 }
 0x208   : > { %2969 = vmatmul.mubr.bf16.vlgmr.msra.gmra.mrb[24].mxu1 %v6705_v8  ;;  %2980 = vmatpush1.bf16.msra.mxu0 %v9890_v34  ;;  %v1275_v34 = vld [vmem:[%s9514_s4 + $0x2c8] sm:$0xff] }
 0x209   : > { %3023 = vmatpush1.bf16.msra.mxu1 %v9891_v35  ;;  %2981 = vmatprep.subr.bf16.mxu0 %v9892_v39  ;;  %v7566_v35 = vcombine.low %v1250_v61, %v1258_v29  ;;  %v7570_v39 = vcombine.low %v1251_v28, %v1259_v9  ;;  %v1204_v61 = vld [vmem:[%s9514_s4 + $0x90] sm:$0xff]  ;;  %v7678_v28 = vcombine.low %v1188_v26, %v1196_v30  ;;  %v1205_v9 = vld [vmem:[%s9514_s4 + $0x98] sm:$0xff] }
 0x20a   : > { %3024 = vmatprep.subr.bf16.mxu1 %v9893_v41  ;;  %3011 = vmatprep.mubr.bf16.mxu0 %v9764_v44  ;;  %v7572_v41 = vcombine.high %v1266_v3, %v1274_v31  ;;  %v1212_v29 = vld [vmem:[%s9514_s4 + $0xd0] sm:$0xff] }
 0x20b   : > { %3054 = vmatprep.mubr.bf16.mxu1 %v9764_v44  ;;  %v9904_v44 = vld [vmem:[#allocation83_spill] sm:$0xff]  ;;  %9926 = vst [vmem:[#allocation31_spill] sm:$0xff] %v7566_v35  ;;  %9927 = vst [vmem:[#allocation32_spill] sm:$0xff] %v7570_v39 }
 0x20c   : > { %2982 = vmatpush1.bf16.msra.mxu0 %v9894_v42  ;;  %9928 = vst [vmem:[#allocation33_spill] sm:$0xff] %v7572_v41  ;;  %v7575_v42 = vcombine.high %v1267_v32, %v1275_v34  ;;  %9946 = vst [vmem:[#allocation51_spill] sm:$0xff] %v7678_v28 }
 0x20d   : > { %3025 = vmatpush1.bf16.msra.mxu1 %v9895_v43  ;;  %2983 = vmatprep.subr.bf16.mxu0 %v9896_v47  ;;  %v1282_v43 = vld [vmem:[%s9514_s4 + $0x300] sm:$0xff] }
 0x20e   : > { %3026 = vmatprep.subr.bf16.mxu1 %v9897_v49  ;;  %9929 = vst [vmem:[#allocation34_spill] sm:$0xff] %v7575_v42  ;;  %v1290_v47 = vld [vmem:[%s9514_s4 + $0x340] sm:$0xff]  ;;  %v1283_v49 = vld [vmem:[%s9514_s4 + $0x308] sm:$0xff] }
 0x210   : > { %2984 = vmatpush1.bf16.msra.mxu0 %v9898_v50  ;;  %v1291_v50 = vld [vmem:[%s9514_s4 + $0x348] sm:$0xff] }
 0x211   : > { %3027 = vmatpush1.bf16.msra.mxu1 %v9899_v51  ;;  %2985 = vmatprep.subr.bf16.mxu0 %v9900_v55  ;;  %v7590_v51 = vcombine.low %v1266_v3, %v1274_v31  ;;  %v7594_v55 = vcombine.low %v1267_v32, %v1275_v34  ;;  %v1213_v3 = vld [vmem:[%s9514_s4 + $0xd8] sm:$0xff]  ;;  %v3087_v31 = vpop.permute.xlu1 %3086  ;;  %v7688_v32 = vcombine.low %v1189_v36, %v1197_v38 }
 0x212   : > { %3028 = vmatprep.subr.bf16.mxu1 %v9901_v57  ;;  %v7596_v57 = vcombine.high %v1282_v43, %v1290_v47  ;;  %v7692_v34 = vsel %vm3092_vm6, %v3087_v31, %v7431_v15  ;;  %v1261_v31 = vld [vmem:[%s9514_s4 + $0x258] sm:$0xff] }
 0x213   : > { %9930 = vst [vmem:[#allocation35_spill] sm:$0xff] %v7590_v51  ;;  %9931 = vst [vmem:[#allocation36_spill] sm:$0xff] %v7594_v55 }
 0x214   : > { %2986 = vmatpush1.bf16.msra.mxu0 %v9902_v58  ;;  %9932 = vst [vmem:[#allocation37_spill] sm:$0xff] %v7596_v57  ;;  %v7599_v58 = vcombine.high %v1283_v49, %v1291_v50  ;;  %9947 = vst [vmem:[#allocation52_spill] sm:$0xff] %v7688_v32 }
 0x215   : > { %3029 = vmatpush1.bf16.msra.mxu1 %v9903_v59  ;;  %2987 = vmatprep.subr.bf16.mxu0 %v9904_v44  ;;  %v1298_v59 = vld [vmem:[%s9514_s4 + $0x380] sm:$0xff]  ;;  %9948 = vst [vmem:[#allocation53_spill] sm:$0xff] %v7692_v34 }
 0x216   : > { %3030 = vmatprep.subr.bf16.mxu1 %v9905_v63  ;;  %9933 = vst [vmem:[#allocation38_spill] sm:$0xff] %v7599_v58  ;;  %v1306_v44 = vld [vmem:[%s9514_s4 + $0x3c0] sm:$0xff]  ;;  %v1299_v63 = vld [vmem:[%s9514_s4 + $0x388] sm:$0xff] }
 0x218   : > { %2988 = vmatpush1.bf16.msra.mxu0 %v9906_v1  ;;  %v1307_v1 = vld [vmem:[%s9514_s4 + $0x3c8] sm:$0xff] }
 0x219   : > { %3031 = vmatpush1.bf16.msra.mxu1 %v9907_v2  ;;  %2989 = vmatprep.subr.bf16.mxu0 %v9908_v4  ;;  %v7614_v2 = vcombine.low %v1282_v43, %v1290_v47  ;;  %v7618_v4 = vcombine.low %v1283_v49, %v1291_v50  ;;  %v7695_v43 = vcombine.high %v1204_v61, %v1212_v29  ;;  %v1220_v47 = vld [vmem:[%s9514_s4 + $0x110] sm:$0xff] }
 0x21a   : > { %3032 = vmatprep.subr.bf16.mxu1 %v9909_v11  ;;  %v7620_v11 = vcombine.high %v1298_v59, %v1306_v44  ;;  %v1228_v49 = vld [vmem:[%s9514_s4 + $0x150] sm:$0xff]  ;;  %v7704_v50 = vcombine.high %v1205_v9, %v1213_v3 }
 0x21b   : > { %9934 = vst [vmem:[#allocation39_spill] sm:$0xff] %v7614_v2  ;;  %9935 = vst [vmem:[#allocation40_spill] sm:$0xff] %v7618_v4 }
 0x21c   : > { %2990 = vmatpush1.bf16.msra.mxu0 %v7242_v19  ;;  %v1187_v19 = vld [vmem:[%s9514_s4 + $0x8] sm:$0xff]  ;;  %9936 = vst [vmem:[#allocation41_spill] sm:$0xff] %v7620_v11  ;;  %9949 = vst [vmem:[#allocation54_spill] sm:$0xff] %v7695_v43 }
 0x21d   : > { %3033 = vmatpush1.bf16.msra.mxu1 %v7246_v16  ;;  %2991 = vmatprep.subr.bf16.mxu0 %v7248_v37  ;;  %v1195_v37 = vld [vmem:[%s9514_s4 + $0x48] sm:$0xff]  ;;  %v7442_v16 = vcombine.high %v1186_v13, %v1194_v14  ;;  %9950 = vst [vmem:[#allocation55_spill] sm:$0xff] %v7704_v50 }
 0x21e   : > { %3034 = vmatprep.subr.bf16.mxu1 %v7251_v23  ;;  %v7445_v23 = vcombine.high %v1187_v19, %v1195_v37  ;;  %v7464_v25 = vcombine.low %v1187_v19, %v1195_v37  ;;  %v1315_v19 = vld [vmem:[%s9514_s4 + $0x408] sm:$0x11]  ;;  %v7632_v37 = vcombine.low %v1298_v59, %v1306_v44  ;;  %v1229_v59 = vld [vmem:[%s9514_s4 + $0x158] sm:$0xff]  ;;  %v7714_v44 = vcombine.low %v1204_v61, %v1212_v29  ;;  %v1252_v29 = vld [vmem:[%s9514_s4 + $0x210] sm:$0xff] }
 0x220   : > { %2992 = vmatpush1.bf16.msra.mxu0 %v7266_v56  ;;  %v7454_v56 = vcombine.low %v1186_v13, %v1194_v14  ;;  %9911 = vst [vmem:[#allocation10_spill] sm:$0xff] %v7464_v25  ;;  %v7623_v13 = vcombine.high %v1299_v63, %v1307_v1  ;;  %v1314_v14 = vld [vmem:[%s9514_s4 + $0x400] sm:$0x11]  ;;  %9938 = vst [vmem:[#allocation43_spill] sm:$0xff] %v7632_v37 }
 0x221   : > { %3035 = vmatpush1.bf16.msra.mxu1 %v7270_v46  ;;  %2993 = vmatprep.subr.bf16.mxu0 %v7272_v20  ;;  %v1203_v20 = vld [vmem:[%s9514_s4 + $0x88] sm:$0xff]  ;;  %9951 = vst [vmem:[#allocation56_spill] sm:$0xff] %v7714_v44 }
 0x222   : > { %3036 = vmatprep.subr.bf16.mxu1 %v7275_v33  ;;  %9910 = vst [vmem:[#allocation9_spill] sm:$0xff] %v7454_v56  ;;  %v1211_v46 = vld [vmem:[%s9514_s4 + $0xc8] sm:$0xff]  ;;  %v3091_v33 = vpop.permute.xlu0 %3090  ;;  %9937 = vst [vmem:[#allocation42_spill] sm:$0xff] %v7623_v13 }
 0x223   : > { %v7486_v52 = vsel %vm3092_vm6, %v7431_v15, %v3091_v33  ;;  %v7495_v48 = vcombine.low %v1203_v20, %v1211_v46  ;;  %v5866_v33 = vcombine.low %v1315_v19, %v1315_v19  ;;  %v1221_v15 = vld [vmem:[%s9514_s4 + $0x118] sm:$0xff] }
 0x224   : > { %2994 = vmatpush1.bf16.msra.mxu0 %v7278_v40  ;;  %v7467_v40 = vcombine.high %v1202_v22, %v1210_v24  ;;  %v7636_v22 = vcombine.low %v1299_v63, %v1307_v1  ;;  %v7638_v24 = vcombine.high %v1314_v14, %v1314_v14  ;;  %v7719_v63 = vcombine.low %v1205_v9, %v1213_v3  ;;  %v1260_v9 = vld [vmem:[%s9514_s4 + $0x250] sm:$0xff]  ;;  %v1253_v3 = vld [vmem:[%s9514_s4 + $0x218] sm:$0xff] }
 0x225   : > { %3037 = vmatpush1.bf16.msra.mxu1 %v7282_v6  ;;  %3828 = vmatprep.subr.bf16.mxu0 %v7442_v16  ;;  %v7476_v6 = vcombine.high %v1203_v20, %v1211_v46  ;;  %9915 = vst [vmem:[#allocation20_spill] sm:$0xff] %v7495_v48  ;;  %v5864_v20 = vcombine.low %v1314_v14, %v1314_v14  ;;  %v7667_v12 = vsel %vm787_vm3, %v5866_v33, 0  ;;  %v1237_v33 = vld [vmem:[%s9514_s4 + $0x198] sm:$0xff] }
 0x226   : > { %3871 = vmatprep.subr.bf16.mxu1 %v7445_v23  ;;  %9912 = vst [vmem:[#allocation11_spill] sm:$0xff] %v7467_v40  ;;  %9939 = vst [vmem:[#allocation44_spill] sm:$0xff] %v7636_v22  ;;  %v7641_v46 = vcombine.high %v1315_v19, %v1315_v19  ;;  %v7721_v1 = vcombine.high %v1220_v47, %v1228_v49  ;;  %v7726_v14 = vcombine.high %v1221_v15, %v1229_v59  ;;  %v1236_v19 = vld [vmem:[%s9514_s4 + $0x190] sm:$0xff] }
 0x227   : > { %3012 = vmatmul.mubr.bf16.vlgmr.msra.gmra.mrb[20].mxu0 %v6705_v8  ;;  %9913 = vst [vmem:[#allocation18_spill] sm:$0xff] %v7476_v6  ;;  %9940 = vst [vmem:[#allocation45_spill] sm:$0xff] %v7638_v24  ;;  %v7746_v36 = vcombine.low %v1221_v15, %v1229_v59  ;;  %v7772_v15 = vcombine.high %v1252_v29, %v1260_v9  ;;  %v7775_v59 = vcombine.high %v1253_v3, %v1261_v31 }
 0x228   : > { %3055 = vmatmul.mubr.bf16.vlgmr.msra.gmra.mrb[28].mxu1 %v6705_v8  ;;  %3829 = vmatpush1.bf16.msra.mxu0 %v7454_v56  ;;  %v1234_v8 = vld [vmem:[%s9514_s4 + $0x180] sm:$0xff]  ;;  %9941 = vst [vmem:[#allocation46_spill] sm:$0xff] %v7641_v46  ;;  %9944 = vst [vmem:[#allocation49_spill] sm:$0xff] %v7667_v12 }
 0x229   : > { %5881 = vmatprep.mubr.msk.bf16.mxu0 %vm3776_vm5, %v7486_v52  ;;  %3872 = vmatpush1.bf16.msra.mxu1 %v7464_v25  ;;  %v7524_v45 = vcombine.high %v1234_v8, %v1242_v5  ;;  %v7542_v62 = vcombine.low %v1234_v8, %v1242_v5  ;;  %v7660_v8 = vsel %vm787_vm3, %v5864_v20, 0  ;;  %v7662_v5 = vcombine.high %v1188_v26, %v1196_v30  ;;  %v1244_v20 = vld [vmem:[%s9514_s4 + $0x1d0] sm:$0xff]  ;;  %v1245_v26 = vld [vmem:[%s9514_s4 + $0x1d8] sm:$0xff] }
 0x22a   : > { %5883 = vmatprep.mubr.msk.bf16.mxu1 %vm3776_vm5, %v7486_v52  ;;  %3830 = vmatprep.subr.bf16.mxu0 %v7467_v40  ;;  %9942 = vst [vmem:[#allocation47_spill] sm:$0xff] %v7660_v8  ;;  %9952 = vst [vmem:[#allocation57_spill] sm:$0xff] %v7719_v63  ;;  %v7742_v30 = vcombine.low %v1220_v47, %v1228_v49  ;;  %v7748_v38 = vcombine.high %v1236_v19, %v1244_v20 }
 0x22b   : > { %3873 = vmatprep.subr.bf16.mxu1 %v7476_v6  ;;  %9920 = vst [vmem:[#allocation25_spill] sm:$0xff] %v7524_v45  ;;  %9922 = vst [vmem:[#allocation27_spill] sm:$0xff] %v7542_v62  ;;  %v7751_v61 = vcombine.high %v1237_v33, %v1245_v26  ;;  %v7766_v47 = vcombine.low %v1236_v19, %v1244_v20  ;;  %v7770_v49 = vcombine.low %v1237_v33, %v1245_v26  ;;  %v1276_v19 = vld [vmem:[%s9514_s4 + $0x2d0] sm:$0xff]  ;;  %v1269_v20 = vld [vmem:[%s9514_s4 + $0x298] sm:$0xff] }
 0x22c   : > { %3831 = vmatpush1.bf16.msra.mxu0 %v7490_v53  ;;  %9943 = vst [vmem:[#allocation48_spill] sm:$0xff] %v7662_v5  ;;  %9953 = vst [vmem:[#allocation58_spill] sm:$0xff] %v7721_v1  ;;  %v1277_v33 = vld [vmem:[%s9514_s4 + $0x2d8] sm:$0xff]  ;;  %v7790_v26 = vcombine.low %v1252_v29, %v1260_v9  ;;  %v1292_v29 = vld [vmem:[%s9514_s4 + $0x350] sm:$0xff] }
 0x22d   : > { %3874 = vmatpush1.bf16.msra.mxu1 %v7495_v48  ;;  %3832 = vmatprep.subr.bf16.mxu0 %v7497_v27  ;;  %9954 = vst [vmem:[#allocation59_spill] sm:$0xff] %v7726_v14  ;;  %9955 = vst [vmem:[#allocation60_spill] sm:$0xff] %v7742_v30  ;;  %v1285_v9 = vld [vmem:[%s9514_s4 + $0x318] sm:$0xff] }
 0x22e   : > { %3875 = vmatprep.subr.bf16.mxu1 %v7502_v60  ;;  %9956 = vst [vmem:[#allocation61_spill] sm:$0xff] %v7746_v36  ;;  %9957 = vst [vmem:[#allocation62_spill] sm:$0xff] %v7748_v38 }
 0x22f   : > { %9958 = vst [vmem:[#allocation63_spill] sm:$0xff] %v7751_v61  ;;  %9959 = vst [vmem:[#allocation64_spill] sm:$0xff] %v7766_v47 }
 0x230   : > { %3833 = vmatpush1.bf16.msra.mxu0 %v7518_v18  ;;  %9960 = vst [vmem:[#allocation65_spill] sm:$0xff] %v7770_v49  ;;  %9961 = vst [vmem:[#allocation66_spill] sm:$0xff] %v7772_v15 }
 0x231   : > { %3876 = vmatpush1.bf16.msra.mxu1 %v7522_v10  ;;  %3834 = vmatprep.subr.bf16.mxu0 %v7524_v45  ;;  %9962 = vst [vmem:[#allocation67_spill] sm:$0xff] %v7775_v59  ;;  %9963 = vst [vmem:[#allocation68_spill] sm:$0xff] %v7790_v26 }
 0x232   : > { %3877 = vmatprep.subr.bf16.mxu1 %v7527_v21 }
 0x234   : > { %3835 = vmatpush1.bf16.msra.mxu0 %v7542_v62 }
 0x235   : > { %3878 = vmatpush1.bf16.msra.mxu1 %v7546_v0  ;;  %3836 = vmatprep.subr.bf16.mxu0 %v7548_v54 }
 0x236   : > { %3879 = vmatprep.subr.bf16.mxu1 %v7551_v7 }
 0x238   : > { %3837 = vmatpush1.bf16.msra.mxu0 %v7566_v35  ;;  %v8308_v35 = vld [vmem:[%s9514_s4 + $0x3f8] sm:$0xff] }
 0x239   : > { %3880 = vmatpush1.bf16.msra.mxu1 %v7570_v39  ;;  %3838 = vmatprep.subr.bf16.mxu0 %v7572_v41  ;;  %v8284_v41 = vld [vmem:[%s9514_s4 + $0x3b0] sm:$0xff]  ;;  %v8303_v39 = vld [vmem:[%s9514_s4 + $0x3b8] sm:$0xff] }
 0x23a   : > { %3881 = vmatprep.subr.bf16.mxu1 %v7575_v42  ;;  %v1297_v42 = vld [vmem:[%s9514_s4 + $0x378] sm:$0xff] }
 0x23c   : > { %3839 = vmatpush1.bf16.msra.mxu0 %v7590_v51  ;;  %v1296_v51 = vld [vmem:[%s9514_s4 + $0x370] sm:$0xff] }
 0x23d   : > { %3882 = vmatpush1.bf16.msra.mxu1 %v7594_v55  ;;  %3840 = vmatprep.subr.bf16.mxu0 %v7596_v57  ;;  %v1273_v57 = vld [vmem:[%s9514_s4 + $0x2b8] sm:$0xff]  ;;  %v1288_v55 = vld [vmem:[%s9514_s4 + $0x330] sm:$0xff] }
 0x23e   : > { %3883 = vmatprep.subr.bf16.mxu1 %v7599_v58  ;;  %v1280_v58 = vld [vmem:[%s9514_s4 + $0x2f0] sm:$0xff] }
 0x240   : > { %3841 = vmatpush1.bf16.msra.mxu0 %v7614_v2 }
 0x241   : > { %3884 = vmatpush1.bf16.msra.mxu1 %v7618_v4  ;;  %3842 = vmatprep.subr.bf16.mxu0 %v7620_v11  ;;  %v1265_v11 = vld [vmem:[%s9514_s4 + $0x278] sm:$0xff]  ;;  %v10031_v4 = vld [vmem:[#allocation14_spill] sm:$0xff] }
 0x242   : > { %3885 = vmatprep.subr.bf16.mxu1 %v7623_v13  ;;  %v1257_v13 = vld [vmem:[%s9514_s4 + $0x238] sm:$0xff] }
 0x244   : > { %3843 = vmatpush1.bf16.msra.mxu0 %v7632_v37 }
 0x245   : > { %3886 = vmatpush1.bf16.msra.mxu1 %v7636_v22  ;;  %5880 = vmatprep.subr.msk.bf16.mxu0 %vm787_vm3, %v7638_v24  ;;  %v1256_v24 = vld [vmem:[%s9514_s4 + $0x230] sm:$0xff] }
 0x246   : > { %5882 = vmatprep.subr.msk.bf16.mxu1 %vm787_vm3, %v7641_v46  ;;  %v1249_v46 = vld [vmem:[%s9514_s4 + $0x1f8] sm:$0xff]  ;;  %v1264_v22 = vld [vmem:[%s9514_s4 + $0x270] sm:$0xff] }
 0x248   : > { %3845 = vmatpush1.bf16.msra.mxu0 %v7660_v8 }
 0x249   : > { %3888 = vmatpush1.bf16.msra.mxu1 %v7667_v12  ;;  %3914 = vmatprep.subr.bf16.mxu0 %v7662_v5 }
 0x24a   : > { %3957 = vmatprep.subr.bf16.mxu1 %v7669_v17 }
 0x24b   : > { %3861 = vmatmul.mubr.bf16.vlgmr.msra.gmra.mrb[24].mxu0 %v7692_v34 }
 0x24c   : > { %3904 = vmatmul.mubr.bf16.vlgmr.msra.gmra.mrb[32].mxu1 %v7692_v34  ;;  %3915 = vmatpush1.bf16.msra.mxu0 %v7678_v28 }
 0x24d   : > { %5885 = vmatprep.mubr.msk.bf16.mxu0 %vm3776_vm5, %v7486_v52  ;;  %3958 = vmatpush1.bf16.msra.mxu1 %v7688_v32  ;;  %v1225_v32 = vld [vmem:[%s9514_s4 + $0x138] sm:$0xff] }
 0x24e   : > { %5887 = vmatprep.mubr.msk.bf16.mxu1 %vm3776_vm5, %v7486_v52  ;;  %3916 = vmatprep.subr.bf16.mxu0 %v7695_v43  ;;  %v1232_v43 = vld [vmem:[%s9514_s4 + $0x170] sm:$0xff] }
 0x24f   : > { %3959 = vmatprep.subr.bf16.mxu1 %v7704_v50 }
 0x250   : > { %3917 = vmatpush1.bf16.msra.mxu0 %v7714_v44 }
 0x251   : > { %3960 = vmatpush1.bf16.msra.mxu1 %v7719_v63  ;;  %3918 = vmatprep.subr.bf16.mxu0 %v7721_v1 }
 0x252   : > { %3961 = vmatprep.subr.bf16.mxu1 %v7726_v14  ;;  %v1268_v14 = vld [vmem:[%s9514_s4 + $0x290] sm:$0xff] }
 0x254   : > { %3919 = vmatpush1.bf16.msra.mxu0 %v7742_v30  ;;  %v1284_v30 = vld [vmem:[%s9514_s4 + $0x310] sm:$0xff] }
 0x255   : > { %3962 = vmatpush1.bf16.msra.mxu1 %v7746_v36  ;;  %3920 = vmatprep.subr.bf16.mxu0 %v7748_v38  ;;  %v7796_v38 = vcombine.high %v1268_v14, %v1276_v19  ;;  %v7799_v36 = vcombine.high %v1269_v20, %v1277_v33 }
 0x256   : > { %3963 = vmatprep.subr.bf16.mxu1 %v7751_v61  ;;  %v7794_v61 = vcombine.low %v1253_v3, %v1261_v31  ;;  %v1293_v3 = vld [vmem:[%s9514_s4 + $0x358] sm:$0xff]  ;;  %v7814_v31 = vcombine.low %v1268_v14, %v1276_v19  ;;  %v1308_v14 = vld [vmem:[%s9514_s4 + $0x3d0] sm:$0xff] }
 0x257   : > { %9965 = vst [vmem:[#allocation70_spill] sm:$0xff] %v7796_v38  ;;  %9966 = vst [vmem:[#allocation71_spill] sm:$0xff] %v7799_v36  ;;  %v1301_v19 = vld [vmem:[%s9514_s4 + $0x398] sm:$0xff] }
 0x258   : > { %3921 = vmatpush1.bf16.msra.mxu0 %v7766_v47  ;;  %9964 = vst [vmem:[#allocation69_spill] sm:$0xff] %v7794_v61  ;;  %9967 = vst [vmem:[#allocation72_spill] sm:$0xff] %v7814_v31  ;;  %v1300_v47 = vld [vmem:[%s9514_s4 + $0x390] sm:$0xff] }
 0x259   : > { %3964 = vmatpush1.bf16.msra.mxu1 %v7770_v49  ;;  %3922 = vmatprep.subr.bf16.mxu0 %v7772_v15  ;;  %v7820_v15 = vcombine.high %v1284_v30, %v1292_v29  ;;  %v7823_v49 = vcombine.high %v1285_v9, %v1293_v3 }
 0x25a   : > { %3965 = vmatprep.subr.bf16.mxu1 %v7775_v59  ;;  %v7818_v59 = vcombine.low %v1269_v20, %v1277_v33  ;;  %v1309_v20 = vld [vmem:[%s9514_s4 + $0x3d8] sm:$0xff]  ;;  %v7838_v33 = vcombine.low %v1284_v30, %v1292_v29  ;;  %v7856_v29 = vcombine.low %v1300_v47, %v1308_v14 }
 0x25b   : > { %9969 = vst [vmem:[#allocation74_spill] sm:$0xff] %v7820_v15  ;;  %9970 = vst [vmem:[#allocation75_spill] sm:$0xff] %v7823_v49  ;;  %v1317_v30 = vld [vmem:[%s9514_s4 + $0x418] sm:$0x11] }
 0x25c   : > { %3923 = vmatpush1.bf16.msra.mxu0 %v7790_v26  ;;  %9968 = vst [vmem:[#allocation73_spill] sm:$0xff] %v7818_v59  ;;  %9971 = vst [vmem:[#allocation76_spill] sm:$0xff] %v7838_v33  ;;  %v1316_v26 = vld [vmem:[%s9514_s4 + $0x410] sm:$0x11] }
 0x25d   : > { %3966 = vmatpush1.bf16.msra.mxu1 %v7794_v61  ;;  %3924 = vmatprep.subr.bf16.mxu0 %v7796_v38  ;;  %v7844_v38 = vcombine.high %v1300_v47, %v1308_v14  ;;  %v7847_v61 = vcombine.high %v1301_v19, %v1309_v20  ;;  %9975 = vst [vmem:[#allocation80_spill] sm:$0xff] %v7856_v29  ;;  %v1198_v47 = vld [vmem:[%s9514_s4 + $0x60] sm:$0xff]  ;;  %v1191_v14 = vld [vmem:[%s9514_s4 + $0x28] sm:$0xff] }
 0x25e   : > { %3967 = vmatprep.subr.bf16.mxu1 %v7799_v36  ;;  %v7842_v36 = vcombine.low %v1285_v9, %v1293_v3  ;;  %v7860_v9 = vcombine.low %v1301_v19, %v1309_v20  ;;  %v7862_v3 = vcombine.high %v1316_v26, %v1316_v26 }
 0x25f   : > { %9973 = vst [vmem:[#allocation78_spill] sm:$0xff] %v7844_v38  ;;  %9974 = vst [vmem:[#allocation79_spill] sm:$0xff] %v7847_v61 }
 0x260   : > { %3925 = vmatpush1.bf16.msra.mxu0 %v7814_v31  ;;  %9972 = vst [vmem:[#allocation77_spill] sm:$0xff] %v7842_v36  ;;  %9976 = vst [vmem:[#allocation81_spill] sm:$0xff] %v7860_v9  ;;  %v1254_v31 = vld [vmem:[%s9514_s4 + $0x220] sm:$0xff] }
 0x261   : > { %3968 = vmatpush1.bf16.msra.mxu1 %v7818_v59  ;;  %3926 = vmatprep.subr.bf16.mxu0 %v7820_v15  ;;  %9977 = vst [vmem:[#allocation82_spill] sm:$0xff] %v7862_v3  ;;  %v7865_v15 = vcombine.high %v1317_v30, %v1317_v30  ;;  %v5870_v59 = vcombine.low %v1317_v30, %v1317_v30 }
 0x262   : > { %3969 = vmatprep.subr.bf16.mxu1 %v7823_v49  ;;  %v5868_v49 = vcombine.low %v1316_v26, %v1316_v26  ;;  %v1199_v26 = vld [vmem:[%s9514_s4 + $0x68] sm:$0xff] }
 0x263   : > { %9978 = vst [vmem:[#allocation83_spill] sm:$0xff] %v7865_v15  ;;  %v7891_v30 = vsel %vm787_vm3, %v5870_v59, 0  ;;  %v1215_v59 = vld [vmem:[%s9514_s4 + $0xe8] sm:$0xff] }
 0x264   : > { %3927 = vmatpush1.bf16.msra.mxu0 %v7838_v33  ;;  %v1190_v33 = vld [vmem:[%s9514_s4 + $0x20] sm:$0xff]  ;;  %v7884_v19 = vsel %vm787_vm3, %v5868_v49, 0  ;;  %9981 = vst [vmem:[#allocation86_spill] sm:$0xff] %v7891_v30 }
 0x265   : > { %3970 = vmatpush1.bf16.msra.mxu1 %v7842_v36  ;;  %3928 = vmatprep.subr.bf16.mxu0 %v7844_v38  ;;  %9979 = vst [vmem:[#allocation84_spill] sm:$0xff] %v7884_v19  ;;  %v7886_v20 = vcombine.high %v1190_v33, %v1198_v47  ;;  %v7902_v49 = vcombine.low %v1190_v33, %v1198_v47  ;;  %v1222_v33 = vld [vmem:[%s9514_s4 + $0x120] sm:$0xff] }
 0x266   : > { %3971 = vmatprep.subr.bf16.mxu1 %v7847_v61  ;;  %v7893_v61 = vcombine.high %v1191_v14, %v1199_v26  ;;  %v1230_v47 = vld [vmem:[%s9514_s4 + $0x160] sm:$0xff] }
 0x267   : > { %9980 = vst [vmem:[#allocation85_spill] sm:$0xff] %v7886_v20  ;;  %9983 = vst [vmem:[#allocation88_spill] sm:$0xff] %v7902_v49 }
 0x268   : > { %3929 = vmatpush1.bf16.msra.mxu0 %v7856_v29  ;;  %9982 = vst [vmem:[#allocation87_spill] sm:$0xff] %v7893_v61  ;;  %v7912_v29 = vcombine.low %v1191_v14, %v1199_v26  ;;  %v1223_v14 = vld [vmem:[%s9514_s4 + $0x128] sm:$0xff] }
 0x269   : > { %3972 = vmatpush1.bf16.msra.mxu1 %v7860_v9  ;;  %5884 = vmatprep.subr.msk.bf16.mxu0 %vm787_vm3, %v7862_v3  ;;  %v1206_v9 = vld [vmem:[%s9514_s4 + $0xa0] sm:$0xff]  ;;  %v1231_v26 = vld [vmem:[%s9514_s4 + $0x168] sm:$0xff] }
 0x26a   : > { %5886 = vmatprep.subr.msk.bf16.mxu1 %vm787_vm3, %v7865_v15  ;;  %v1214_v3 = vld [vmem:[%s9514_s4 + $0xe0] sm:$0xff]  ;;  %v1207_v15 = vld [vmem:[%s9514_s4 + $0xa8] sm:$0xff]  ;;  %9984 = vst [vmem:[#allocation89_spill] sm:$0xff] %v7912_v29  ;;  %v7946_v36 = vcombine.high %v1223_v14, %v1231_v26 }
 0x26b   : > { %v7915_v38 = vcombine.high %v1206_v9, %v1214_v3 }
 0x26c   : > { %3931 = vmatpush1.bf16.msra.mxu0 %v7884_v19  ;;  %v7924_v19 = vcombine.high %v1207_v15, %v1215_v59  ;;  %9990 = vst [vmem:[#allocation95_spill] sm:$0xff] %v7946_v36 }
 0x26d   : > { %3974 = vmatpush1.bf16.msra.mxu1 %v7891_v30  ;;  %4000 = vmatprep.subr.bf16.mxu0 %v7886_v20  ;;  %9985 = vst [vmem:[#allocation90_spill] sm:$0xff] %v7915_v38  ;;  %v7939_v20 = vcombine.low %v1207_v15, %v1215_v59  ;;  %v7941_v30 = vcombine.high %v1222_v33, %v1230_v47  ;;  %v1239_v15 = vld [vmem:[%s9514_s4 + $0x1a8] sm:$0xff] }
 0x26e   : > { %4043 = vmatprep.subr.bf16.mxu1 %v7893_v61  ;;  %9986 = vst [vmem:[#allocation91_spill] sm:$0xff] %v7924_v19  ;;  %v7934_v61 = vcombine.low %v1206_v9, %v1214_v3  ;;  %v1238_v9 = vld [vmem:[%s9514_s4 + $0x1a0] sm:$0xff]  ;;  %v1247_v59 = vld [vmem:[%s9514_s4 + $0x1e8] sm:$0xff] }
 0x26f   : > { %3947 = vmatmul.mubr.bf16.vlgmr.msra.gmra.mrb[28].mxu0 %v7692_v34  ;;  %9988 = vst [vmem:[#allocation93_spill] sm:$0xff] %v7939_v20  ;;  %9989 = vst [vmem:[#allocation94_spill] sm:$0xff] %v7941_v30  ;;  %v1246_v3 = vld [vmem:[%s9514_s4 + $0x1e0] sm:$0xff] }
 0x270   : > { %3990 = vmatmul.mubr.bf16.vlgmr.msra.gmra.mrb[36].mxu1 %v7692_v34  ;;  %4001 = vmatpush1.bf16.msra.mxu0 %v7902_v49  ;;  %9987 = vst [vmem:[#allocation92_spill] sm:$0xff] %v7934_v61  ;;  %v7968_v49 = vcombine.high %v1238_v9, %v1246_v3 }
 0x271   : > { %5889 = vmatprep.mubr.msk.bf16.mxu0 %vm3776_vm5, %v7486_v52  ;;  %4044 = vmatpush1.bf16.msra.mxu1 %v7912_v29  ;;  %v7966_v29 = vcombine.low %v1223_v14, %v1231_v26  ;;  %v1263_v14 = vld [vmem:[%s9514_s4 + $0x268] sm:$0xff]  ;;  %v7986_v26 = vcombine.low %v1238_v9, %v1246_v3  ;;  %v1278_v9 = vld [vmem:[%s9514_s4 + $0x2e0] sm:$0xff] }
 0x272   : > { %5891 = vmatprep.mubr.msk.bf16.mxu1 %vm3776_vm5, %v7486_v52  ;;  %4002 = vmatprep.subr.bf16.mxu0 %v7915_v38  ;;  %v7962_v38 = vcombine.low %v1222_v33, %v1230_v47  ;;  %9993 = vst [vmem:[#allocation98_spill] sm:$0xff] %v7968_v49  ;;  %v1262_v33 = vld [vmem:[%s9514_s4 + $0x260] sm:$0xff]  ;;  %v1255_v47 = vld [vmem:[%s9514_s4 + $0x228] sm:$0xff] }
 0x273   : > { %4045 = vmatprep.subr.bf16.mxu1 %v7924_v19  ;;  %9992 = vst [vmem:[#allocation97_spill] sm:$0xff] %v7966_v29  ;;  %v7971_v19 = vcombine.high %v1239_v15, %v1247_v59  ;;  %9995 = vst [vmem:[#allocation100_spill] sm:$0xff] %v7986_v26  ;;  %v1271_v3 = vld [vmem:[%s9514_s4 + $0x2a8] sm:$0xff] }
 0x274   : > { %4003 = vmatpush1.bf16.msra.mxu0 %v7934_v61  ;;  %9991 = vst [vmem:[#allocation96_spill] sm:$0xff] %v7962_v38  ;;  %v1270_v61 = vld [vmem:[%s9514_s4 + $0x2a0] sm:$0xff] }
 0x275   : > { %4046 = vmatpush1.bf16.msra.mxu1 %v7939_v20  ;;  %4004 = vmatprep.subr.bf16.mxu0 %v7941_v30  ;;  %9994 = vst [vmem:[#allocation99_spill] sm:$0xff] %v7971_v19  ;;  %v7992_v30 = vcombine.high %v1254_v31, %v1262_v33  ;;  %v7995_v20 = vcombine.high %v1255_v47, %v1263_v14 }
 0x276   : > { %4047 = vmatprep.subr.bf16.mxu1 %v7946_v36  ;;  %v7990_v36 = vcombine.low %v1239_v15, %v1247_v59  ;;  %v1279_v15 = vld [vmem:[%s9514_s4 + $0x2e8] sm:$0xff]  ;;  %v8010_v59 = vcombine.low %v1254_v31, %v1262_v33  ;;  %v1294_v31 = vld [vmem:[%s9514_s4 + $0x360] sm:$0xff] }
 0x277   : > { %9997 = vst [vmem:[#allocation102_spill] sm:$0xff] %v7992_v30  ;;  %9998 = vst [vmem:[#allocation103_spill] sm:$0xff] %v7995_v20  ;;  %v1287_v33 = vld [vmem:[%s9514_s4 + $0x328] sm:$0xff] }
 0x278   : > { %4005 = vmatpush1.bf16.msra.mxu0 %v7962_v38  ;;  %9996 = vst [vmem:[#allocation101_spill] sm:$0xff] %v7990_v36  ;;  %9999 = vst [vmem:[#allocation104_spill] sm:$0xff] %v8010_v59  ;;  %v1286_v38 = vld [vmem:[%s9514_s4 + $0x320] sm:$0xff] }
 0x279   : > { %4048 = vmatpush1.bf16.msra.mxu1 %v7966_v29  ;;  %4006 = vmatprep.subr.bf16.mxu0 %v7968_v49  ;;  %v8016_v49 = vcombine.high %v1270_v61, %v1278_v9  ;;  %v8019_v29 = vcombine.high %v1271_v3, %v1279_v15 }
 0x27a   : > { %4049 = vmatprep.subr.bf16.mxu1 %v7971_v19  ;;  %v8014_v19 = vcombine.low %v1255_v47, %v1263_v14  ;;  %v1295_v47 = vld [vmem:[%s9514_s4 + $0x368] sm:$0xff]  ;;  %v8034_v14 = vcombine.low %v1270_v61, %v1278_v9  ;;  %v1310_v61 = vld [vmem:[%s9514_s4 + $0x3e0] sm:$0xff] }
 0x27b   : > { %10001 = vst [vmem:[#allocation106_spill] sm:$0xff] %v8016_v49  ;;  %10002 = vst [vmem:[#allocation107_spill] sm:$0xff] %v8019_v29  ;;  %v1303_v9 = vld [vmem:[%s9514_s4 + $0x3a8] sm:$0xff] }
 0x27c   : > { %4007 = vmatpush1.bf16.msra.mxu0 %v7986_v26  ;;  %10000 = vst [vmem:[#allocation105_spill] sm:$0xff] %v8014_v19  ;;  %10003 = vst [vmem:[#allocation108_spill] sm:$0xff] %v8034_v14  ;;  %v1302_v26 = vld [vmem:[%s9514_s4 + $0x3a0] sm:$0xff] }
 0x27d   : > { %4050 = vmatpush1.bf16.msra.mxu1 %v7990_v36  ;;  %4008 = vmatprep.subr.bf16.mxu0 %v7992_v30  ;;  %v8040_v30 = vcombine.high %v1286_v38, %v1294_v31  ;;  %v8043_v36 = vcombine.high %v1287_v33, %v1295_v47 }
 0x27e   : > { %4051 = vmatprep.subr.bf16.mxu1 %v7995_v20  ;;  %v8038_v20 = vcombine.low %v1271_v3, %v1279_v15  ;;  %v1311_v3 = vld [vmem:[%s9514_s4 + $0x3e8] sm:$0xff]  ;;  %v8058_v15 = vcombine.low %v1286_v38, %v1294_v31  ;;  %v8076_v31 = vcombine.low %v1302_v26, %v1310_v61 }
 0x27f   : > { %10005 = vst [vmem:[#allocation110_spill] sm:$0xff] %v8040_v30  ;;  %10006 = vst [vmem:[#allocation111_spill] sm:$0xff] %v8043_v36  ;;  %v1319_v38 = vld [vmem:[%s9514_s4 + $0x428] sm:$0x11] }
 0x280   : > { %4009 = vmatpush1.bf16.msra.mxu0 %v8010_v59  ;;  %10004 = vst [vmem:[#allocation109_spill] sm:$0xff] %v8038_v20  ;;  %10007 = vst [vmem:[#allocation112_spill] sm:$0xff] %v8058_v15  ;;  %v1318_v59 = vld [vmem:[%s9514_s4 + $0x420] sm:$0x11] }
 0x281   : > { %4052 = vmatpush1.bf16.msra.mxu1 %v8014_v19  ;;  %4010 = vmatprep.subr.bf16.mxu0 %v8016_v49  ;;  %v8064_v49 = vcombine.high %v1302_v26, %v1310_v61  ;;  %v8067_v19 = vcombine.high %v1303_v9, %v1311_v3  ;;  %10011 = vst [vmem:[#allocation116_spill] sm:$0xff] %v8076_v31  ;;  %v1200_v26 = vld [vmem:[%s9514_s4 + $0x70] sm:$0xff]  ;;  %v1193_v61 = vld [vmem:[%s9514_s4 + $0x38] sm:$0xff] }
 0x282   : > { %4053 = vmatprep.subr.bf16.mxu1 %v8019_v29  ;;  %v8062_v29 = vcombine.low %v1287_v33, %v1295_v47  ;;  %v8080_v33 = vcombine.low %v1303_v9, %v1311_v3  ;;  %v8082_v47 = vcombine.high %v1318_v59, %v1318_v59 }
 0x283   : > { %10009 = vst [vmem:[#allocation114_spill] sm:$0xff] %v8064_v49  ;;  %10010 = vst [vmem:[#allocation115_spill] sm:$0xff] %v8067_v19 }
 0x284   : > { %4011 = vmatpush1.bf16.msra.mxu0 %v8034_v14  ;;  %10008 = vst [vmem:[#allocation113_spill] sm:$0xff] %v8062_v29  ;;  %10012 = vst [vmem:[#allocation117_spill] sm:$0xff] %v8080_v33  ;;  %v1224_v14 = vld [vmem:[%s9514_s4 + $0x130] sm:$0xff] }
 0x285   : > { %4054 = vmatpush1.bf16.msra.mxu1 %v8038_v20  ;;  %4012 = vmatprep.subr.bf16.mxu0 %v8040_v30  ;;  %10013 = vst [vmem:[#allocation118_spill] sm:$0xff] %v8082_v47  ;;  %v8085_v30 = vcombine.high %v1319_v38, %v1319_v38  ;;  %v5874_v20 = vcombine.low %v1319_v38, %v1319_v38  ;;  %v1208_v38 = vld [vmem:[%s9514_s4 + $0xb0] sm:$0xff] }
 0x286   : > { %4055 = vmatprep.subr.bf16.mxu1 %v8043_v36  ;;  %v5872_v36 = vcombine.low %v1318_v59, %v1318_v59  ;;  %v1201_v59 = vld [vmem:[%s9514_s4 + $0x78] sm:$0xff]  ;;  %v8195_v5 = vcombine.low %v1224_v14, %v1232_v43  ;;  %v8197_v12 = vcombine.high %v1224_v14, %v1232_v43 }
 0x287   : > { %10014 = vst [vmem:[#allocation119_spill] sm:$0xff] %v8085_v30  ;;  %v8145_v63 = vcombine.low %v1193_v61, %v1201_v59 }
 0x288   : > { %4013 = vmatpush1.bf16.msra.mxu0 %v8058_v15  ;;  %v1192_v15 = vld [vmem:[%s9514_s4 + $0x30] sm:$0xff]  ;;  %v8104_v9 = vsel %vm787_vm3, %v5872_v36, 0  ;;  %v8120_v36 = vsel %vm787_vm3, %v5874_v20, 0  ;;  %v1325_v20 = vld [vmem:[%s9516_s6 + $0x18] sm:$0x3f]  ;;  %10027 = vst [vmem:[#allocation130_spill] sm:$0xff] %v8195_v5 }
 0x289   : > { %4056 = vmatpush1.bf16.msra.mxu1 %v8062_v29  ;;  %4014 = vmatprep.subr.bf16.mxu0 %v8064_v49  ;;  %10015 = vst [vmem:[#allocation120_spill] sm:$0xff] %v8104_v9  ;;  %v8106_v3 = vcombine.high %v1192_v15, %v1200_v26  ;;  %10017 = vst [vmem:[#allocation122_spill] sm:$0xff] %v8120_v36  ;;  %v1322_v49 = vld [vmem:[%s9516_s6] sm:$0x3f]  ;;  %v1324_v29 = vld [vmem:[%s9516_s6 + $0x10] sm:$0x3f]  ;;  %v8143_v1 = vcombine.low %v1192_v15, %v1200_v26 }
 0x28a   : > { %4057 = vmatprep.subr.bf16.mxu1 %v8067_v19  ;;  %v1216_v19 = vld [vmem:[%s9514_s4 + $0xf0] sm:$0xff]  ;;  %10020 = vst [vmem:[#allocation125_spill] sm:$0xff] %v8145_v63  ;;  %v10025_v26 = vld [vmem:[#allocation12_spill] sm:$0xff]  ;;  %10028 = vst [vmem:[#allocation131_spill] sm:$0xff] %v8197_v12 }
 0x28b   : > { %10016 = vst [vmem:[#allocation121_spill] sm:$0xff] %v8106_v3  ;;  %10019 = vst [vmem:[#allocation124_spill] sm:$0xff] %v8143_v1  ;;  %v8147_v44 = vcombine.low %v1208_v38, %v1216_v19  ;;  %v8149_v50 = vcombine.high %v1208_v38, %v1216_v19  ;;  %v8216_v14 = vrot.slane %v1325_v20, %v10025_v26 }
 0x28c   : > { %4015 = vmatpush1.bf16.msra.mxu0 %v8076_v31  ;;  %v1217_v31 = vld [vmem:[%s9514_s4 + $0xf8] sm:$0xff] }
 0x28d   : > { %4058 = vmatpush1.bf16.msra.mxu1 %v8080_v33  ;;  %5888 = vmatprep.subr.msk.bf16.mxu0 %vm787_vm3, %v8082_v47  ;;  %v1209_v33 = vld [vmem:[%s9514_s4 + $0xb8] sm:$0xff]  ;;  %v8122_v47 = vcombine.high %v1193_v61, %v1201_v59  ;;  %10021 = vst [vmem:[#allocation126_spill] sm:$0xff] %v8147_v44  ;;  %10022 = vst [vmem:[#allocation127_spill] sm:$0xff] %v8149_v50  ;;  %v8167_v61 = vrot.slane %v1322_v49, %v10025_v26  ;;  %v10026_v59 = vld [vmem:[#allocation13_spill] sm:$0xff] }
 0x28e   : > { %5890 = vmatprep.subr.msk.bf16.mxu1 %vm787_vm3, %v8085_v30  ;;  %v1323_v30 = vld [vmem:[%s9516_s6 + $0x8] sm:$0x3f]  ;;  %v8162_v15 = vcombine.low %v1209_v33, %v1217_v31  ;;  %v8164_v19 = vcombine.high %v1209_v33, %v1217_v31  ;;  %v8171_v38 = vrot.slane %v1322_v49, %v10026_v59  ;;  %v8174_v28 = vrot.slane %v1324_v29, %v10026_v59  ;;  %v1240_v31 = vld [vmem:[%s9514_s4 + $0x1b0] sm:$0xff] }
 0x28f   : > { %10018 = vst [vmem:[#allocation123_spill] sm:$0xff] %v8122_v47  ;;  %v8177_v17 = vrot.slane %v1323_v30, %v10026_v59  ;;  %v1248_v33 = vld [vmem:[%s9514_s4 + $0x1f0] sm:$0xff]  ;;  %v8213_v43 = vrot.slane %v1323_v30, %v10025_v26  ;;  %v8239_v2 = vrot.slane %v1323_v30, %v10031_v4 }
 0x290   : > { %4017 = vmatpush1.bf16.msra.mxu0 %v8104_v9  ;;  %v1233_v9 = vld [vmem:[%s9514_s4 + $0x178] sm:$0xff]  ;;  %10023 = vst [vmem:[#allocation128_spill] sm:$0xff] %v8162_v15  ;;  %10024 = vst [vmem:[#allocation129_spill] sm:$0xff] %v8164_v19  ;;  %v8256_v30 = vcombine.low %v1240_v31, %v1248_v33 }
 0x291   : > { %4060 = vmatpush1.bf16.msra.mxu1 %v8120_v36  ;;  %4086 = vmatprep.subr.bf16.mxu0 %v8106_v3  ;;  %v8180_v3 = vrot.slane %v1325_v20, %v10026_v59  ;;  %v8193_v36 = vrot.slane %v1324_v29, %v10025_v26  ;;  %v8199_v8 = vcombine.low %v1225_v32, %v1233_v9 }
 0x292   : > { %4129 = vmatprep.subr.bf16.mxu1 %v8122_v47  ;;  %v1241_v47 = vld [vmem:[%s9514_s4 + $0x1b8] sm:$0xff]  ;;  %v8218_v37 = vcombine.high %v1225_v32, %v1233_v9  ;;  %v8233_v32 = vrot.slane %v1322_v49, %v10031_v4  ;;  %v8236_v9 = vrot.slane %v1324_v29, %v10031_v4  ;;  %v8254_v29 = vrot.slane %v1325_v20, %v10031_v4 }
 0x293   : > { %4033 = vmatmul.mubr.bf16.vlgmr.msra.gmra.mrb[32].mxu0 %v7692_v34  ;;  %10029 = vst [vmem:[#allocation132_spill] sm:$0xff] %v8199_v8  ;;  %v8258_v49 = vcombine.high %v1240_v31, %v1248_v33  ;;  %v8270_v20 = vcombine.low %v1241_v47, %v1249_v46  ;;  %v8274_v31 = vcombine.low %v1256_v24, %v1264_v22 }
 0x294   : > { %4076 = vmatmul.mubr.bf16.vlgmr.msra.gmra.mrb[40].mxu1 %v7692_v34  ;;  %4087 = vmatpush1.bf16.msra.mxu0 %v8143_v1  ;;  %10030 = vst [vmem:[#allocation133_spill] sm:$0xff] %v8218_v37  ;;  %v1272_v1 = vld [vmem:[%s9514_s4 + $0x2b0] sm:$0xff]  ;;  %v8276_v33 = vcombine.high %v1256_v24, %v1264_v22  ;;  %v8294_v22 = vcombine.high %v1257_v13, %v1265_v11 }
 0x295   : > { %5893 = vmatprep.mubr.msk.bf16.mxu0 %vm3776_vm5, %v7486_v52  ;;  %4130 = vmatpush1.bf16.msra.mxu1 %v8145_v63  ;;  %v1281_v63 = vld [vmem:[%s9514_s4 + $0x2f8] sm:$0xff]  ;;  %10032 = vst [vmem:[#allocation134_spill] sm:$0xff] %v8258_v49  ;;  %v8296_v24 = vcombine.low %v1272_v1, %v1280_v58 }
 0x296   : > { %5895 = vmatprep.mubr.msk.bf16.mxu1 %vm3776_vm5, %v7486_v52  ;;  %4088 = vmatprep.subr.bf16.mxu0 %v8149_v50  ;;  %v1289_v52 = vld [vmem:[%s9514_s4 + $0x338] sm:$0xff]  ;;  %v8272_v50 = vcombine.high %v1241_v47, %v1249_v46  ;;  %v8292_v46 = vcombine.low %v1257_v13, %v1265_v11  ;;  %v8298_v47 = vcombine.high %v1272_v1, %v1280_v58 }
 0x297   : > { %4131 = vmatprep.subr.bf16.mxu1 %v8164_v19  ;;  %v8289_v19 = vld [vmem:[%s9514_s4 + $0x3f0] sm:$0xff]  ;;  %v8312_v11 = vcombine.low %v1273_v57, %v1281_v63  ;;  %v8314_v13 = vcombine.high %v1273_v57, %v1281_v63  ;;  %v8316_v58 = vcombine.low %v1288_v55, %v1296_v51  ;;  %v8321_v7 = vcombine.low %v1289_v52, %v1297_v42 }
 0x298   : > { %10033 = vst [vmem:[#allocation135_spill] sm:$0xff] %v8272_v50  ;;  %4089 = vmatpush1.bf16.msra.mxu0 %v8147_v44  ;;  %v8319_v44 = vcombine.high %v1288_v55, %v1296_v51  ;;  %v8323_v54 = vcombine.high %v1289_v52, %v1297_v42 }
 0x299   : > { %4132 = vmatpush1.bf16.msra.mxu1 %v8162_v15  ;;  %4090 = vmatprep.subr.bf16.mxu0 %v8197_v12  ;;  %10034 = vst [vmem:[#allocation136_spill] sm:$0xff] %v8316_v58  ;;  %10035 = vst [vmem:[#allocation137_spill] sm:$0xff] %v8321_v7  ;;  %v8327_v15 = vcombine.high %v8284_v41, %v8289_v19 }
 0x29a   : > { %v2755_v1 = vpop.f32.mrb[8].mxu0  ;;  %4133 = vmatprep.subr.bf16.mxu1 %v8218_v37  ;;  %v8334_v37 = vcombine.high %v8303_v39, %v8308_v35 }
 0x29b   : > { %10036 = vst [vmem:[#allocation138_spill] sm:$0xff] %v8327_v15  ;;  %v4563_v12 = vrot.slane %v2755_v1, 7  ;;  %v4691_v0 = vmul.f32 %v2755_v1, %v8171_v38  ;;  %v4755_v57 = vrot.slane %v2755_v1, 1  ;;  %v2798_v63 = vpop.f32.mrb[16].mxu1  ;;  %v8330_v62 = vpop.f32.mrb[9].mxu0 }
 0x29c   : > { %10037 = vst [vmem:[#allocation139_spill] sm:$0xff] %v8334_v37  ;;  %v4565_v51 = vrot.slane %v2798_v63, 7  ;;  %v4693_v55 = vmul.f32 %v2798_v63, %v8174_v28  ;;  %v4761_v42 = vrot.slane %v2798_v63, 1  ;;  %v4564_v52 = vrot.slane %v8330_v62, 7  ;;  %v8338_v21 = vpop.f32.mrb[17].mxu1  ;;  %v2759_v45 = vpop.f32.mrb[10].mxu0  ;;  %4091 = vmatpush1.bf16.msra.mxu0 %v8195_v5 }
 0x29d   : > { %v4643_v1 = vsel %vm787_vm3, 0.0, %v4563_v12  ;;  %v4692_v10 = vmul.f32 %v8330_v62, %v8177_v17  ;;  %v4758_v18 = vrot.slane %v8330_v62, 1  ;;  %v2802_v27 = vpop.f32.mrb[18].mxu1  ;;  %4134 = vmatpush1.bf16.msra.mxu1 %v8199_v8  ;;  %v2761_v63 = vpop.f32.mrb[11].mxu0  ;;  %4092 = vmatprep.subr.bf16.mxu0 %v8258_v49  ;;  %v4694_v6 = vmul.f32 %v8338_v21, %v8180_v3 }
 0x29e   : > { %v4659_v48 = vmul.f32 %v4643_v1, %v8167_v61  ;;  %v4645_v53 = vsel %vm787_vm3, 0.0, %v4565_v51  ;;  %v4644_v5 = vsel %vm787_vm3, 0.0, %v4564_v52  ;;  %v8353_v4 = vpop.f32.mrb[19].mxu1  ;;  %4135 = vmatprep.subr.bf16.mxu1 %v8272_v50  ;;  %v10038_v8 = vrot.slane %v8338_v21, 7 }
 0x29f   : > { %v4661_v62 = vmul.f32 %v4645_v53, %v8193_v36  ;;  %v4660_v60 = vmul.f32 %v4644_v5, %v8213_v43  ;;  %v4764_v1 = vrot.slane %v8338_v21, 1  ;;  %v4579_v59 = vrot.slane %v2759_v45, 7 }
 0x2a0   : > { %v4646_v49 = vsel %vm787_vm3, 0.0, %v10038_v8  ;;  %v4723_v40 = vadd.f32 %v4691_v0, %v4659_v48  ;;  %v4707_v26 = vmul.f32 %v2759_v45, %v8171_v38  ;;  %4093 = vmatpush1.bf16.msra.mxu0 %v8256_v30  ;;  %v4756_v34 = vrot.slane %v2759_v45, 1 }
 0x2a1   : > { %v4662_v25 = vmul.f32 %v4646_v49, %v8216_v14  ;;  %v4725_v56 = vadd.f32 %v4693_v55, %v4661_v62  ;;  %v4724_v50 = vadd.f32 %v4692_v10, %v4660_v60  ;;  %v4583_v53 = vrot.slane %v2802_v27, 7  ;;  %4136 = vmatpush1.bf16.msra.mxu1 %v8270_v20  ;;  %4094 = vmatprep.subr.bf16.mxu0 %v8276_v33 }
 0x2a2   : > { %v4580_v8 = vsel %vm787_vm3, %v4563_v12, %v4579_v59  ;;  %v4709_v48 = vmul.f32 %v2802_v27, %v8174_v28  ;;  %v4762_v0 = vrot.slane %v2802_v27, 1  ;;  %4137 = vmatprep.subr.bf16.mxu1 %v8294_v22  ;;  %v4757_v49 = vsel %vm848_vm4, %v4755_v57, %v4756_v34 }
 0x2a3   : > { %v8367_v5 = vadd.f32 %v4694_v6, %v4662_v25  ;;  %v4675_v38 = vmul.f32 %v4580_v8, %v8167_v61  ;;  %v4835_v60 = vsel %vm848_vm4, %v4756_v34, 0.0  ;;  %v4584_v10 = vsel %vm787_vm3, %v4565_v51, %v4583_v53 }
 0x2a4   : > { %v4851_v45 = vmul.f32 %v4757_v49, %v8233_v32  ;;  %v4867_v25 = vmul.f32 %v4835_v60, %v8233_v32  ;;  %v4677_v6 = vmul.f32 %v4584_v10, %v8193_v36  ;;  %v4763_v12 = vsel %vm848_vm4, %v4761_v42, %v4762_v0  ;;  %4095 = vmatpush1.bf16.msra.mxu0 %v8274_v31 }
 0x2a5   : > { %v4739_v27 = vadd.f32 %v4707_v26, %v4675_v38  ;;  %v4837_v28 = vsel %vm848_vm4, %v4762_v0, 0.0  ;;  %v4853_v61 = vmul.f32 %v4763_v12, %v8236_v9  ;;  %v4581_v59 = vrot.slane %v2761_v63, 7  ;;  %4138 = vmatpush1.bf16.msra.mxu1 %v8292_v46  ;;  %4096 = vmatprep.subr.bf16.mxu0 %v8298_v47  ;;  %v1320_v0 = vld [vmem:[%s9514_s4 + $0x430] sm:$0x11]  ;;  %v4180_v12 = vpop.permute.xlu0 %4179 }
 0x2a6   : > { %v4741_v34 = vadd.f32 %v4709_v48, %v4677_v6  ;;  %v4869_v57 = vmul.f32 %v4837_v28, %v8236_v9  ;;  %v4708_v32 = vmul.f32 %v2761_v63, %v8177_v17  ;;  %v4759_v36 = vrot.slane %v2761_v63, 1  ;;  %4139 = vmatprep.subr.bf16.mxu1 %v8314_v13  ;;  %v1328_v28 = vld [vmem:[%s9516_s6 + $0x30] sm:$0x3f] }
 0x2a7   : > { %v8388_v51 = vadd.f32 %v4867_v25, %v4739_v27  ;;  %v4582_v26 = vsel %vm787_vm3, %v4564_v52, %v4581_v59  ;;  %v4585_v55 = vrot.slane %v8353_v4, 7  ;;  %v4710_v42 = vmul.f32 %v8353_v4, %v8180_v3  ;;  %v8467_v27 = vpop.permute.xlu1 %4177 }
 0x2a8   : > { %v8394_v62 = vadd.f32 %v4869_v57, %v4741_v34  ;;  %v4676_v53 = vmul.f32 %v4582_v26, %v8213_v43  ;;  %v4760_v9 = vsel %vm848_vm4, %v4758_v18, %v4759_v36  ;;  %v4836_v17 = vsel %vm848_vm4, %v4759_v36, 0.0  ;;  %4097 = vmatpush1.bf16.msra.mxu0 %v8296_v24  ;;  %v1329_v34 = vld [vmem:[%s9516_s6 + $0x38] sm:$0x3f]  ;;  %v10057_v36 = vld [vmem:[#allocation13_spill] sm:$0xff] }
 0x2a9   : > { %10039 = vst [vmem:[#allocation140_spill] sm:$0xff] %v8388_v51  ;;  %v4852_v63 = vmul.f32 %v4760_v9, %v8239_v2  ;;  %v4868_v8 = vmul.f32 %v4836_v17, %v8239_v2  ;;  %v10041_v52 = vrot.slane %v8338_v21, 7  ;;  %v4765_v3 = vrot.slane %v8353_v4, 1  ;;  %4140 = vmatpush1.bf16.msra.mxu1 %v8312_v11  ;;  %4098 = vmatprep.subr.bf16.mxu0 %v8319_v44  ;;  %v10056_v57 = vld [vmem:[#allocation12_spill] sm:$0xff] }
 0x2aa   : > { %10040 = vst [vmem:[#allocation141_spill] sm:$0xff] %v8394_v62  ;;  %v4740_v43 = vadd.f32 %v4708_v32, %v4676_v53  ;;  %4141 = vmatprep.subr.bf16.mxu1 %v8323_v54  ;;  %v8413_v2 = vadd.f32 %v4851_v45, %v4723_v40  ;;  %v8415_v21 = vadd.f32 %v4853_v61, %v4725_v56  ;;  %v1327_v61 = vld [vmem:[%s9516_s6 + $0x28] sm:$0x3f] }
 0x2ab   : > { %v4586_v48 = vsel %vm787_vm3, %v10041_v52, %v4585_v55  ;;  %v4766_v38 = vsel %vm848_vm4, %v4764_v1, %v4765_v3  ;;  %v4838_v4 = vsel %vm848_vm4, %v4765_v3, 0.0  ;;  %v8421_v49 = vcombine.low %v8284_v41, %v8289_v19  ;;  %v10060_v3 = vld [vmem:[#allocation14_spill] sm:$0xff] }
 0x2ac   : > { %v4678_v18 = vmul.f32 %v4586_v48, %v8216_v14  ;;  %10042 = vst [vmem:[#allocation142_spill] sm:$0xff] %v8413_v2  ;;  %10043 = vst [vmem:[#allocation143_spill] sm:$0xff] %v8415_v21  ;;  %v1321_v14 = vld [vmem:[%s9514_s4 + $0x438] sm:$0x11]  ;;  %v8426_v60 = vadd.f32 %v4852_v63, %v4724_v50  ;;  %v8428_v10 = vadd.f32 %v4868_v8, %v4740_v43  ;;  %4099 = vmatpush1.bf16.msra.mxu0 %v8316_v58  ;;  %v10059_v48 = vld [vmem:[#allocation11_spill] sm:$0xff] }
 0x2ad   : > { %10044 = vst [vmem:[#allocation144_spill] sm:$0xff] %v8421_v49  ;;  %v4854_v56 = vmul.f32 %v4766_v38, %v8254_v29  ;;  %v4870_v45 = vmul.f32 %v4838_v4, %v8254_v29  ;;  %4142 = vmatpush1.bf16.msra.mxu1 %v8321_v7  ;;  %4100 = vmatprep.subr.bf16.mxu0 %v8327_v15  ;;  %v10061_v4 = vld [vmem:[#allocation18_spill] sm:$0xff] }
 0x2ae   : > { %10045 = vst [vmem:[#allocation145_spill] sm:$0xff] %v8426_v60  ;;  %10046 = vst [vmem:[#allocation146_spill] sm:$0xff] %v8428_v10  ;;  %v4742_v40 = vadd.f32 %v4710_v42, %v4678_v18  ;;  %v8437_v41 = vcombine.low %v8303_v39, %v8308_v35  ;;  %v8439_v19 = vcombine.high %v1320_v0, %v1320_v0  ;;  %4143 = vmatprep.subr.bf16.mxu1 %v8334_v37  ;;  %v10058_v42 = vld [vmem:[#allocation10_spill] sm:$0xff] }
 0x2af   : > { %v5876_v50 = vcombine.low %v1320_v0, %v1320_v0  ;;  %v8444_v25 = vcombine.high %v1321_v14, %v1321_v14  ;;  %v5878_v29 = vcombine.low %v1321_v14, %v1321_v14  ;;  %v8447_v6 = vadd.f32 %v4854_v56, %v8367_v5  ;;  %v1326_v5 = vld [vmem:[%s9516_s6 + $0x20] sm:$0x3f]  ;;  %v10065_v60 = vld [vmem:[#allocation22_spill] sm:$0xff] }
 0x2b0   : > { %10047 = vst [vmem:[#allocation147_spill] sm:$0xff] %v8437_v41  ;;  %10048 = vst [vmem:[#allocation148_spill] sm:$0xff] %v8439_v19  ;;  %v8441_v1 = vadd.f32 %v4870_v45, %v4742_v40  ;;  %4101 = vmatpush1.bf16.msra.mxu0 %v8421_v49  ;;  %v8478_v59 = vsel %vm3092_vm6, %v8467_v27, %v4180_v12  ;;  %v1357_v32 = vrot.slane %v1326_v5, %v10056_v57  ;;  %v10070_v37 = vld [vmem:[#allocation26_spill] sm:$0xff] }
 0x2b1   : > { %10050 = vst [vmem:[#allocation150_spill] sm:$0xff] %v8444_v25  ;;  %10051 = vst [vmem:[#allocation151_spill] sm:$0xff] %v8447_v6  ;;  %4144 = vmatpush1.bf16.msra.mxu1 %v8437_v41  ;;  %5892 = vmatprep.subr.msk.bf16.mxu0 %vm787_vm3, %v8439_v19  ;;  %v8454_v35 = vsel %vm787_vm3, %v5876_v50, 0  ;;  %v8459_v39 = vsel %vm787_vm3, %v5878_v29, 0  ;;  %v1421_v26 = vrot.slane %v1326_v5, %v10057_v36  ;;  %v10068_v41 = vld [vmem:[#allocation24_spill] sm:$0xff] }
 0x2b2   : > { %10049 = vst [vmem:[#allocation149_spill] sm:$0xff] %v8441_v1  ;;  %10052 = vst [vmem:[#allocation152_spill] sm:$0xff] %v8454_v35  ;;  %5894 = vmatprep.subr.msk.bf16.mxu1 %vm787_vm3, %v8444_v25  ;;  %v8489_v55 = vrot.slane %v1328_v28, %v10056_v57  ;;  %v8495_v53 = vrot.slane %v1328_v28, %v10057_v36  ;;  %v8498_v9 = vrot.slane %v1327_v61, %v10056_v57  ;;  %v10067_v25 = vld [vmem:[#allocation23_spill] sm:$0xff] }
 0x2b3   : > { %10053 = vst [vmem:[#allocation153_spill] sm:$0xff] %v8459_v39  ;;  %v8501_v17 = vrot.slane %v1327_v61, %v10057_v36  ;;  %v8506_v8 = vrot.slane %v1329_v34, %v10056_v57  ;;  %v8509_v52 = vrot.slane %v1329_v34, %v10057_v36  ;;  %v1485_v43 = vrot.slane %v1326_v5, %v10060_v3 }
 0x2b4   : > { %4103 = vmatpush1.bf16.msra.mxu0 %v8454_v35  ;;  %v1493_v14 = vrot.slane %v1328_v28, %v10060_v3  ;;  %v8518_v40 = vrot.slane %v1327_v61, %v10060_v3  ;;  %v8521_v56 = vrot.slane %v1329_v34, %v10060_v3  ;;  %v10063_v34 = vld [vmem:[#allocation20_spill] sm:$0xff] }
 0x2b5   : > { %4146 = vmatpush1.bf16.msra.mxu1 %v8459_v39  ;;  %4187 = vmatprep.subr.bf16.mxu0 %v7442_v16  ;;  %v10054_v16 = vld [vmem:[#allocation53_spill] sm:$0xff] }
 0x2b6   : > { %4230 = vmatprep.subr.bf16.mxu1 %v7445_v23  ;;  %v10055_v23 = vld [vmem:[#allocation9_spill] sm:$0xff] }
 0x2b7   : > { %4119 = vmatmul.mubr.bf16.vlgmr.msra.gmra.mrb[36].mxu0 %v10054_v16 }
 0x2b8   : > { %4162 = vmatmul.mubr.bf16.vlgmr.msra.gmra.mrb[44].mxu1 %v10054_v16  ;;  %4188 = vmatpush1.bf16.msra.mxu0 %v10055_v23  ;;  %v10062_v23 = vld [vmem:[#allocation19_spill] sm:$0xff] }
 0x2b9   : > { %5897 = vmatprep.mubr.msk.bf16.mxu0 %vm3776_vm5, %v8478_v59  ;;  %4231 = vmatpush1.bf16.msra.mxu1 %v10058_v42 }
 0x2ba   : > { %5899 = vmatprep.mubr.msk.bf16.mxu1 %vm3776_vm5, %v8478_v59  ;;  %v2841_v63 = vpop.f32.mrb[12].mxu0  ;;  %4189 = vmatprep.subr.bf16.mxu0 %v10059_v48 }
 0x2bb   : > { %v4567_v18 = vrot.slane %v2841_v63, 7  ;;  %v2884_v0 = vpop.f32.mrb[20].mxu1  ;;  %v8513_v38 = vpop.f32.mrb[13].mxu0  ;;  %4232 = vmatprep.subr.bf16.mxu1 %v10061_v4  ;;  %v4695_v45 = vmul.f32 %v2841_v63, %v1421_v26  ;;  %v4767_v50 = vrot.slane %v2841_v63, 1  ;;  %v10064_v63 = vld [vmem:[#allocation21_spill] sm:$0xff] }
 0x2bc   : > { %v4569_v29 = vrot.slane %v2884_v0, 7  ;;  %v4568_v12 = vrot.slane %v8513_v38, 7  ;;  %v8524_v5 = vpop.f32.mrb[21].mxu1  ;;  %v2845_v16 = vpop.f32.mrb[14].mxu0  ;;  %4190 = vmatpush1.bf16.msra.mxu0 %v10062_v23  ;;  %v4697_v28 = vmul.f32 %v2884_v0, %v8495_v53  ;;  %v4773_v48 = vrot.slane %v2884_v0, 1 }
 0x2bd   : > { %v4647_v42 = vsel %vm787_vm3, 0.0, %v4567_v18  ;;  %v2888_v4 = vpop.f32.mrb[22].mxu1  ;;  %4233 = vmatpush1.bf16.msra.mxu1 %v10063_v34  ;;  %v2847_v1 = vpop.f32.mrb[15].mxu0  ;;  %4191 = vmatprep.subr.bf16.mxu0 %v10064_v63  ;;  %v4696_v23 = vmul.f32 %v8513_v38, %v8501_v17  ;;  %v4770_v34 = vrot.slane %v8513_v38, 1  ;;  %v10066_v63 = vrot.slane %v8524_v5, 7  ;;  %v10069_v38 = vld [vmem:[#allocation25_spill] sm:$0xff] }
 0x2be   : > { %v4663_v10 = vmul.f32 %v4647_v42, %v1357_v32  ;;  %v4649_v62 = vsel %vm787_vm3, 0.0, %v4569_v29  ;;  %v4648_v51 = vsel %vm787_vm3, 0.0, %v4568_v12  ;;  %v8536_v6 = vpop.f32.mrb[23].mxu1  ;;  %4234 = vmatprep.subr.bf16.mxu1 %v10065_v60  ;;  %v4698_v2 = vmul.f32 %v8524_v5, %v8509_v52 }
 0x2bf   : > { %v4665_v0 = vmul.f32 %v4649_v62, %v8489_v55  ;;  %v4664_v61 = vmul.f32 %v4648_v51, %v8498_v9  ;;  %v4650_v42 = vsel %vm787_vm3, 0.0, %v10066_v63  ;;  %v4776_v39 = vrot.slane %v8524_v5, 1 }
 0x2c0   : > { %v4727_v21 = vadd.f32 %v4695_v45, %v4663_v10  ;;  %v4587_v35 = vrot.slane %v2845_v16, 7  ;;  %4192 = vmatpush1.bf16.msra.mxu0 %v10067_v25  ;;  %v4666_v60 = vmul.f32 %v4650_v42, %v8506_v8  ;;  %v4711_v62 = vmul.f32 %v2845_v16, %v1421_v26 }
 0x2c1   : > { %v4768_v19 = vrot.slane %v2845_v16, 1  ;;  %v4591_v51 = vrot.slane %v2888_v4, 7  ;;  %4235 = vmatpush1.bf16.msra.mxu1 %v10068_v41  ;;  %4193 = vmatprep.subr.bf16.mxu0 %v10069_v38  ;;  %v4729_v49 = vadd.f32 %v4697_v28, %v4665_v0  ;;  %v4728_v63 = vadd.f32 %v4696_v23, %v4664_v61  ;;  %v10071_v61 = vld [vmem:[#allocation27_spill] sm:$0xff]  ;;  %v10072_v23 = vld [vmem:[#allocation28_spill] sm:$0xff] }
 0x2c2   : > { %v4588_v10 = vsel %vm787_vm3, %v4567_v18, %v4587_v35  ;;  %v4774_v45 = vrot.slane %v2888_v4, 1  ;;  %4236 = vmatprep.subr.bf16.mxu1 %v10070_v37  ;;  %v4713_v41 = vmul.f32 %v2888_v4, %v8495_v53  ;;  %v4771_v0 = vrot.slane %v2847_v1, 1 }
 0x2c3   : > { %v4679_v15 = vmul.f32 %v4588_v10, %v1357_v32  ;;  %v4769_v7 = vsel %vm848_vm4, %v4767_v50, %v4768_v19  ;;  %v4839_v25 = vsel %vm848_vm4, %v4768_v19, 0.0  ;;  %v4592_v26 = vsel %vm787_vm3, %v4569_v29, %v4591_v51  ;;  %v10073_v50 = vld [vmem:[#allocation29_spill] sm:$0xff] }
 0x2c4   : > { %v4855_v16 = vmul.f32 %v4769_v7, %v1485_v43  ;;  %v4681_v42 = vmul.f32 %v4592_v26, %v8489_v55  ;;  %v4775_v28 = vsel %vm848_vm4, %v4773_v48, %v4774_v45  ;;  %4194 = vmatpush1.bf16.msra.mxu0 %v10071_v61  ;;  %v4871_v18 = vmul.f32 %v4839_v25, %v1485_v43  ;;  %v10074_v55 = vld [vmem:[#allocation30_spill] sm:$0xff]  ;;  %v10080_v26 = vld [vmem:[#allocation33_spill] sm:$0xff] }
 0x2c5   : > { %v4743_v35 = vadd.f32 %v4711_v62, %v4679_v15  ;;  %v4841_v37 = vsel %vm848_vm4, %v4774_v45, 0.0  ;;  %v4589_v32 = vrot.slane %v2847_v1, 7  ;;  %4237 = vmatpush1.bf16.msra.mxu1 %v10072_v23  ;;  %4195 = vmatprep.subr.bf16.mxu0 %v10073_v50  ;;  %v4857_v29 = vmul.f32 %v4775_v28, %v1493_v14  ;;  %v10093_v23 = vld [vmem:[#allocation40_spill] sm:$0xff]  ;;  %v10094_v50 = vld [vmem:[#allocation41_spill] sm:$0xff] }
 0x2c6   : > { %v4745_v19 = vadd.f32 %v4713_v41, %v4681_v42  ;;  %v4873_v7 = vmul.f32 %v4841_v37, %v1493_v14  ;;  %4238 = vmatprep.subr.bf16.mxu1 %v10074_v55  ;;  %v4712_v15 = vmul.f32 %v2847_v1, %v8501_v17  ;;  %v4593_v43 = vrot.slane %v8536_v6, 7  ;;  %v10077_v14 = vld [vmem:[#allocation31_spill] sm:$0xff]  ;;  %v10079_v17 = vld [vmem:[#allocation32_spill] sm:$0xff] }
 0x2c7   : > { %v8565_v53 = vadd.f32 %v4871_v18, %v4743_v35  ;;  %v4590_v48 = vsel %vm787_vm3, %v4568_v12, %v4589_v32  ;;  %v4772_v51 = vsel %vm848_vm4, %v4770_v34, %v4771_v0  ;;  %v4840_v38 = vsel %vm848_vm4, %v4771_v0, 0.0  ;;  %v10085_v37 = vld [vmem:[#allocation35_spill] sm:$0xff]  ;;  %v10098_v0 = vld [vmem:[#allocation45_spill] sm:$0xff] }
 0x2c8   : > { %v8570_v4 = vadd.f32 %v4873_v7, %v4745_v19  ;;  %v4680_v62 = vmul.f32 %v4590_v48, %v8498_v9  ;;  %4196 = vmatpush1.bf16.msra.mxu0 %v10077_v14  ;;  %v4730_v10 = vadd.f32 %v4698_v2, %v4666_v60  ;;  %v4856_v45 = vmul.f32 %v4772_v51, %v8518_v40  ;;  %v10081_v60 = vld [vmem:[#allocation34_spill] sm:$0xff]  ;;  %v10096_v19 = vld [vmem:[#allocation43_spill] sm:$0xff]  ;;  %v10097_v7 = vld [vmem:[#allocation44_spill] sm:$0xff] }
 0x2c9   : > { %10075 = vst [vmem:[#allocation53_spill] sm:$0xff] %v8565_v53  ;;  %v10078_v25 = vrot.slane %v8524_v5, 7  ;;  %v4777_v1 = vrot.slane %v8536_v6, 1  ;;  %4239 = vmatpush1.bf16.msra.mxu1 %v10079_v17  ;;  %4197 = vmatprep.subr.bf16.mxu0 %v10080_v26  ;;  %v4872_v34 = vmul.f32 %v4840_v38, %v8518_v40  ;;  %v4714_v2 = vmul.f32 %v8536_v6, %v8509_v52  ;;  %v10086_v6 = vld [vmem:[#allocation36_spill] sm:$0xff]  ;;  %v10087_v52 = vld [vmem:[#allocation37_spill] sm:$0xff]  ;;  %v10099_v48 = vld [vmem:[#allocation46_spill] sm:$0xff] }
 0x2ca   : > { %10076 = vst [vmem:[#allocation9_spill] sm:$0xff] %v8570_v4  ;;  %v4744_v9 = vadd.f32 %v4712_v15, %v4680_v62  ;;  %4240 = vmatprep.subr.bf16.mxu1 %v10081_v60  ;;  %v8590_v28 = vadd.f32 %v4855_v16, %v4727_v21  ;;  %v8592_v61 = vadd.f32 %v4857_v29, %v4729_v49  ;;  %v10090_v21 = vld [vmem:[#allocation38_spill] sm:$0xff]  ;;  %v10092_v16 = vld [vmem:[#allocation39_spill] sm:$0xff]  ;;  %v4176_v29 = vpop.permute.xlu1 %4175  ;;  %v1333_v62 = vld [vmem:[%s9516_s6 + $0x58] sm:$0x3f] }
 0x2cb   : > { %v4594_v12 = vsel %vm787_vm3, %v10078_v25, %v4593_v43  ;;  %v4778_v5 = vsel %vm848_vm4, %v4776_v39, %v4777_v1  ;;  %v4842_v41 = vsel %vm848_vm4, %v4777_v1, 0.0  ;;  %v8601_v39 = vadd.f32 %v4856_v45, %v4728_v63  ;;  %v1330_v63 = vld [vmem:[%s9516_s6 + $0x40] sm:$0x3f]  ;;  %v1332_v55 = vld [vmem:[%s9516_s6 + $0x50] sm:$0x3f]  ;;  %v10102_v17 = vld [vmem:[#allocation48_spill] sm:$0xff] }
 0x2cc   : > { %v4682_v42 = vmul.f32 %v4594_v12, %v8506_v8  ;;  %10082 = vst [vmem:[#allocation12_spill] sm:$0xff] %v8590_v28  ;;  %10083 = vst [vmem:[#allocation13_spill] sm:$0xff] %v8592_v61  ;;  %v8594_v35 = vadd.f32 %v4872_v34, %v4744_v9  ;;  %v4858_v40 = vmul.f32 %v4778_v5, %v8521_v56  ;;  %4198 = vmatpush1.bf16.msra.mxu0 %v10085_v37  ;;  %v1331_v15 = vld [vmem:[%s9516_s6 + $0x48] sm:$0x3f]  ;;  %v10100_v38 = vld [vmem:[#allocation47_spill] sm:$0xff] }
 0x2cd   : > { %v4874_v8 = vmul.f32 %v4842_v41, %v8521_v56  ;;  %4241 = vmatpush1.bf16.msra.mxu1 %v10086_v6  ;;  %4199 = vmatprep.subr.bf16.mxu0 %v10087_v52  ;;  %10088 = vst [vmem:[#allocation11_spill] sm:$0xff] %v8601_v39  ;;  %v10095_v56 = vld [vmem:[#allocation42_spill] sm:$0xff]  ;;  %v1437_v43 = vrot.slane %v1330_v63, %v10057_v36  ;;  %v10101_v25 = vld [vmem:[#allocation49_spill] sm:$0xff]  ;;  %v10108_v53 = vld [vmem:[#allocation56_spill] sm:$0xff] }
 0x2ce   : > { %10084 = vst [vmem:[#allocation10_spill] sm:$0xff] %v8594_v35  ;;  %v4746_v18 = vadd.f32 %v4714_v2, %v4682_v42  ;;  %4242 = vmatprep.subr.bf16.mxu1 %v10090_v21  ;;  %v8606_v49 = vadd.f32 %v4858_v40, %v4730_v10  ;;  %v8633_v51 = vsel %vm3092_vm6, %v4176_v29, %v8467_v27  ;;  %v10103_v34 = vld [vmem:[#allocation50_spill] sm:$0xff] }
 0x2cf   : > { %v8637_v14 = vrot.slane %v1330_v63, %v10056_v57  ;;  %v8640_v10 = vrot.slane %v1332_v55, %v10056_v57  ;;  %v1445_v45 = vrot.slane %v1332_v55, %v10057_v36  ;;  %v8645_v12 = vrot.slane %v1331_v15, %v10056_v57  ;;  %v10110_v61 = vld [vmem:[#allocation58_spill] sm:$0xff] }
 0x2d0   : > { %v8603_v32 = vadd.f32 %v4874_v8, %v4746_v18  ;;  %10091 = vst [vmem:[#allocation18_spill] sm:$0xff] %v8606_v49  ;;  %4200 = vmatpush1.bf16.msra.mxu0 %v10092_v16  ;;  %v8648_v1 = vrot.slane %v1331_v15, %v10057_v36  ;;  %v8651_v27 = vrot.slane %v1333_v62, %v10056_v57 }
 0x2d1   : > { %4243 = vmatpush1.bf16.msra.mxu1 %v10093_v23  ;;  %4201 = vmatprep.subr.bf16.mxu0 %v10094_v50  ;;  %v8655_v9 = vrot.slane %v1333_v62, %v10057_v36  ;;  %v1501_v42 = vrot.slane %v1330_v63, %v10060_v3  ;;  %v8660_v2 = vrot.slane %v1332_v55, %v10060_v3  ;;  %v10105_v55 = vld [vmem:[#allocation52_spill] sm:$0xff] }
 0x2d2   : > { %10089 = vst [vmem:[#allocation14_spill] sm:$0xff] %v8603_v32  ;;  %4244 = vmatprep.subr.bf16.mxu1 %v10095_v56  ;;  %v8663_v60 = vrot.slane %v1331_v15, %v10060_v3  ;;  %v8669_v37 = vrot.slane %v1333_v62, %v10060_v3  ;;  %v10104_v56 = vld [vmem:[#allocation51_spill] sm:$0xff] }
 0x2d4   : > { %4202 = vmatpush1.bf16.msra.mxu0 %v10096_v19 }
 0x2d5   : > { %4245 = vmatpush1.bf16.msra.mxu1 %v10097_v7  ;;  %5896 = vmatprep.subr.msk.bf16.mxu0 %vm787_vm3, %v10098_v0 }
 0x2d6   : > { %5898 = vmatprep.subr.msk.bf16.mxu1 %vm787_vm3, %v10099_v48 }
 0x2d8   : > { %4204 = vmatpush1.bf16.msra.mxu0 %v10100_v38 }
 0x2d9   : > { %4247 = vmatpush1.bf16.msra.mxu1 %v10101_v25  ;;  %4273 = vmatprep.subr.bf16.mxu0 %v10102_v17 }
 0x2da   : > { %v2927_v26 = vpop.f32.mrb[16].mxu0  ;;  %4316 = vmatprep.subr.bf16.mxu1 %v10103_v34 }
 0x2db   : > { %v4571_v5 = vrot.slane %v2927_v26, 7  ;;  %v4699_v41 = vmul.f32 %v2927_v26, %v1437_v43  ;;  %v4779_v18 = vrot.slane %v2927_v26, 1  ;;  %v2970_v40 = vpop.f32.mrb[24].mxu1  ;;  %v8665_v8 = vpop.f32.mrb[17].mxu0  ;;  %4220 = vmatmul.mubr.bf16.vlgmr.msra.gmra.mrb[24].mxu0 %v8633_v51  ;;  %v10106_v26 = vld [vmem:[#allocation54_spill] sm:$0xff] }
 0x2dc   : > { %v4573_v6 = vrot.slane %v2970_v40, 7  ;;  %v4701_v52 = vmul.f32 %v2970_v40, %v1445_v45  ;;  %v4785_v21 = vrot.slane %v2970_v40, 1  ;;  %v9743_v16 = vrot.slane %v8665_v8, 7  ;;  %v8672_v23 = vpop.f32.mrb[25].mxu1  ;;  %4263 = vmatmul.mubr.bf16.vlgmr.msra.gmra.mrb[32].mxu1 %v8633_v51  ;;  %v2931_v50 = vpop.f32.mrb[18].mxu0  ;;  %4274 = vmatpush1.bf16.msra.mxu0 %v10104_v56 }
 0x2dd   : > { %v4651_v19 = vsel %vm787_vm3, 0.0, %v4571_v5  ;;  %v4700_v63 = vmul.f32 %v8665_v8, %v8648_v1  ;;  %v4782_v29 = vrot.slane %v8665_v8, 1  ;;  %v9744_v7 = vrot.slane %v8672_v23, 7  ;;  %v2974_v0 = vpop.f32.mrb[26].mxu1  ;;  %5901 = vmatprep.mubr.msk.bf16.mxu0 %vm3776_vm5, %v8478_v59  ;;  %4317 = vmatpush1.bf16.msra.mxu1 %v10105_v55  ;;  %v2933_v48 = vpop.f32.mrb[19].mxu0  ;;  %v10107_v55 = vld [vmem:[#allocation55_spill] sm:$0xff] }
 0x2de   : > { %v4667_v15 = vmul.f32 %v4651_v19, %v8637_v14  ;;  %v4653_v62 = vsel %vm787_vm3, 0.0, %v4573_v6  ;;  %v4652_v38 = vsel %vm787_vm3, 0.0, %v9743_v16  ;;  %v4702_v25 = vmul.f32 %v8672_v23, %v8655_v9  ;;  %5903 = vmatprep.mubr.msk.bf16.mxu1 %vm3776_vm5, %v8478_v59  ;;  %v8693_v17 = vpop.f32.mrb[27].mxu1  ;;  %4275 = vmatprep.subr.bf16.mxu0 %v10106_v26 }
 0x2df   : > { %v4669_v34 = vmul.f32 %v4653_v62, %v8640_v10  ;;  %v4668_v40 = vmul.f32 %v4652_v38, %v8645_v12  ;;  %v4654_v56 = vsel %vm787_vm3, 0.0, %v9744_v7  ;;  %v4788_v19 = vrot.slane %v8672_v23, 1  ;;  %4318 = vmatprep.subr.bf16.mxu1 %v10107_v55  ;;  %v10109_v38 = vld [vmem:[#allocation57_spill] sm:$0xff] }
 0x2e0   : > { %v4731_v16 = vadd.f32 %v4699_v41, %v4667_v15  ;;  %v4670_v32 = vmul.f32 %v4654_v56, %v8651_v27  ;;  %v4595_v35 = vrot.slane %v2931_v50, 7  ;;  %v4715_v4 = vmul.f32 %v2931_v50, %v1437_v43  ;;  %4276 = vmatpush1.bf16.msra.mxu0 %v10108_v53  ;;  %v10111_v41 = vld [vmem:[#allocation59_spill] sm:$0xff] }
 0x2e1   : > { %v4733_v26 = vadd.f32 %v4701_v52, %v4669_v34  ;;  %v4732_v49 = vadd.f32 %v4700_v63, %v4668_v40  ;;  %v4780_v62 = vrot.slane %v2931_v50, 1  ;;  %v4599_v39 = vrot.slane %v2974_v0, 7  ;;  %4319 = vmatpush1.bf16.msra.mxu1 %v10109_v38  ;;  %4277 = vmatprep.subr.bf16.mxu0 %v10110_v61 }
 0x2e2   : > { %v4734_v7 = vadd.f32 %v4702_v25, %v4670_v32  ;;  %v4596_v28 = vsel %vm787_vm3, %v4571_v5, %v4595_v35  ;;  %v4717_v58 = vmul.f32 %v2974_v0, %v1445_v45  ;;  %v4786_v55 = vrot.slane %v2974_v0, 1  ;;  %4320 = vmatprep.subr.bf16.mxu1 %v10111_v41  ;;  %v10112_v32 = vld [vmem:[#allocation60_spill] sm:$0xff] }
 0x2e3   : > { %v4683_v15 = vmul.f32 %v4596_v28, %v8637_v14  ;;  %v4781_v43 = vsel %vm848_vm4, %v4779_v18, %v4780_v62  ;;  %v4843_v53 = vsel %vm848_vm4, %v4780_v62, 0.0  ;;  %v4600_v52 = vsel %vm787_vm3, %v4573_v6, %v4599_v39  ;;  %v10113_v14 = vld [vmem:[#allocation61_spill] sm:$0xff]  ;;  %v10114_v18 = vld [vmem:[#allocation62_spill] sm:$0xff]  ;;  %v10115_v6 = vld [vmem:[#allocation63_spill] sm:$0xff] }
 0x2e4   : > { %v4859_v50 = vmul.f32 %v4781_v43, %v1501_v42  ;;  %v4875_v63 = vmul.f32 %v4843_v53, %v1501_v42  ;;  %v4685_v34 = vmul.f32 %v4600_v52, %v8640_v10  ;;  %v4787_v61 = vsel %vm848_vm4, %v4785_v21, %v4786_v55  ;;  %4278 = vmatpush1.bf16.msra.mxu0 %v10112_v32  ;;  %v10120_v43 = vld [vmem:[#allocation66_spill] sm:$0xff]  ;;  %v10121_v53 = vld [vmem:[#allocation67_spill] sm:$0xff] }
 0x2e5   : > { %v4747_v35 = vadd.f32 %v4715_v4, %v4683_v15  ;;  %v4845_v45 = vsel %vm848_vm4, %v4786_v55, 0.0  ;;  %v4861_v5 = vmul.f32 %v4787_v61, %v8660_v2  ;;  %v4597_v28 = vrot.slane %v2933_v48, 7  ;;  %4321 = vmatpush1.bf16.msra.mxu1 %v10113_v14  ;;  %4279 = vmatprep.subr.bf16.mxu0 %v10114_v18  ;;  %v10119_v15 = vld [vmem:[#allocation65_spill] sm:$0xff]  ;;  %v10129_v14 = vld [vmem:[#allocation75_spill] sm:$0xff] }
 0x2e6   : > { %v4749_v0 = vadd.f32 %v4717_v58, %v4685_v34  ;;  %v4877_v39 = vmul.f32 %v4845_v45, %v8660_v2  ;;  %v4716_v42 = vmul.f32 %v2933_v48, %v8648_v1  ;;  %v4783_v10 = vrot.slane %v2933_v48, 1  ;;  %4322 = vmatprep.subr.bf16.mxu1 %v10115_v6  ;;  %v10117_v48 = vld [vmem:[#allocation64_spill] sm:$0xff]  ;;  %v10123_v45 = vld [vmem:[#allocation69_spill] sm:$0xff] }
 0x2e7   : > { %v8723_v21 = vadd.f32 %v4875_v63, %v4747_v35  ;;  %v10116_v4 = vrot.slane %v8665_v8, 7  ;;  %v4601_v40 = vrot.slane %v8693_v17, 7  ;;  %v4718_v56 = vmul.f32 %v8693_v17, %v8655_v9  ;;  %v1334_v18 = vld [vmem:[%s9516_s6 + $0x60] sm:$0x3f] }
 0x2e8   : > { %v8731_v62 = vadd.f32 %v4877_v39, %v4749_v0  ;;  %v4784_v1 = vsel %vm848_vm4, %v4782_v29, %v4783_v10  ;;  %v4844_v2 = vsel %vm848_vm4, %v4783_v10, 0.0  ;;  %4280 = vmatpush1.bf16.msra.mxu0 %v10117_v48  ;;  %v10118_v55 = vrot.slane %v8672_v23, 7  ;;  %v10131_v0 = vld [vmem:[#allocation77_spill] sm:$0xff]  ;;  %v10132_v39 = vld [vmem:[#allocation78_spill] sm:$0xff] }
 0x2e9   : > { %v4598_v25 = vsel %vm787_vm3, %v10116_v4, %v4597_v28  ;;  %v4860_v38 = vmul.f32 %v4784_v1, %v8663_v60  ;;  %v4876_v8 = vmul.f32 %v4844_v2, %v8663_v60  ;;  %v4789_v9 = vrot.slane %v8693_v17, 1  ;;  %4323 = vmatpush1.bf16.msra.mxu1 %v10119_v15  ;;  %4281 = vmatprep.subr.bf16.mxu0 %v10120_v43  ;;  %v10128_v28 = vld [vmem:[#allocation74_spill] sm:$0xff]  ;;  %v1337_v4 = vld [vmem:[%s9516_s6 + $0x78] sm:$0x3f]  ;;  %v10135_v1 = vld [vmem:[#allocation81_spill] sm:$0xff] }
 0x2ea   : > { %v4684_v58 = vmul.f32 %v4598_v25, %v8645_v12  ;;  %v4602_v41 = vsel %vm787_vm3, %v10118_v55, %v4601_v40  ;;  %4324 = vmatprep.subr.bf16.mxu1 %v10121_v53  ;;  %v8747_v52 = vadd.f32 %v4859_v50, %v4731_v16  ;;  %v8749_v63 = vadd.f32 %v4861_v5, %v4733_v26  ;;  %v10124_v16 = vld [vmem:[#allocation70_spill] sm:$0xff]  ;;  %v10127_v5 = vld [vmem:[#allocation73_spill] sm:$0xff]  ;;  %v10134_v25 = vld [vmem:[#allocation80_spill] sm:$0xff] }
 0x2eb   : > { %v4686_v29 = vmul.f32 %v4602_v41, %v8651_v27  ;;  %v4790_v60 = vsel %vm848_vm4, %v4788_v19, %v4789_v9  ;;  %v4846_v23 = vsel %vm848_vm4, %v4789_v9, 0.0  ;;  %v8753_v34 = vadd.f32 %v4860_v38, %v4732_v49  ;;  %v10122_v27 = vld [vmem:[#allocation68_spill] sm:$0xff]  ;;  %v10125_v19 = vld [vmem:[#allocation71_spill] sm:$0xff]  ;;  %v1335_v10 = vld [vmem:[%s9516_s6 + $0x68] sm:$0x3f] }
 0x2ec   : > { %v4748_v12 = vadd.f32 %v4716_v42, %v4684_v58  ;;  %v4862_v32 = vmul.f32 %v4790_v60, %v8669_v37  ;;  %v4878_v35 = vmul.f32 %v4846_v23, %v8669_v37  ;;  %4282 = vmatpush1.bf16.msra.mxu0 %v10122_v27  ;;  %v10126_v49 = vld [vmem:[#allocation72_spill] sm:$0xff]  ;;  %v10133_v42 = vld [vmem:[#allocation79_spill] sm:$0xff]  ;;  %v1453_v6 = vrot.slane %v1334_v18, %v10057_v36 }
 0x2ed   : > { %v4750_v61 = vadd.f32 %v4718_v56, %v4686_v29  ;;  %4325 = vmatpush1.bf16.msra.mxu1 %v10123_v45  ;;  %4283 = vmatprep.subr.bf16.mxu0 %v10124_v16  ;;  %v10130_v37 = vld [vmem:[#allocation76_spill] sm:$0xff]  ;;  %v8790_v40 = vrot.slane %v1334_v18, %v10056_v57  ;;  %v8798_v2 = vrot.slane %v1335_v10, %v10056_v57  ;;  %v10137_v9 = vld [vmem:[#allocation83_spill] sm:$0xff] }
 0x2ee   : > { %v8755_v17 = vadd.f32 %v4876_v8, %v4748_v12  ;;  %4326 = vmatprep.subr.bf16.mxu1 %v10125_v19  ;;  %v8765_v50 = vadd.f32 %v4862_v32, %v4734_v7  ;;  %v1336_v7 = vld [vmem:[%s9516_s6 + $0x70] sm:$0x3f]  ;;  %v8801_v48 = vrot.slane %v1335_v10, %v10057_v36  ;;  %v8804_v38 = vrot.slane %v1337_v4, %v10056_v57  ;;  %v10136_v8 = vld [vmem:[#allocation82_spill] sm:$0xff]  ;;  %v10138_v19 = vld [vmem:[#allocation84_spill] sm:$0xff] }
 0x2ef   : > { %v8762_v26 = vadd.f32 %v4878_v35, %v4750_v61  ;;  %v8793_v56 = vrot.slane %v1336_v7, %v10056_v57  ;;  %v1461_v58 = vrot.slane %v1336_v7, %v10057_v36  ;;  %v8809_v41 = vrot.slane %v1337_v4, %v10057_v36 }
 0x2f0   : > { %4284 = vmatpush1.bf16.msra.mxu0 %v10126_v49  ;;  %v1517_v15 = vrot.slane %v1334_v18, %v10060_v3  ;;  %v8815_v43 = vrot.slane %v1336_v7, %v10060_v3  ;;  %v8818_v12 = vrot.slane %v1335_v10, %v10060_v3  ;;  %v8823_v36 = vrot.slane %v1337_v4, %v10060_v3 }
 0x2f1   : > { %4327 = vmatpush1.bf16.msra.mxu1 %v10127_v5  ;;  %4285 = vmatprep.subr.bf16.mxu0 %v10128_v28 }
 0x2f2   : > { %4328 = vmatprep.subr.bf16.mxu1 %v10129_v14 }
 0x2f4   : > { %4286 = vmatpush1.bf16.msra.mxu0 %v10130_v37  ;;  %v10139_v37 = vld [vmem:[#allocation86_spill] sm:$0xff] }
 0x2f5   : > { %4329 = vmatpush1.bf16.msra.mxu1 %v10131_v0  ;;  %4287 = vmatprep.subr.bf16.mxu0 %v10132_v39  ;;  %v10140_v0 = vld [vmem:[#allocation85_spill] sm:$0xff] }
 0x2f6   : > { %4330 = vmatprep.subr.bf16.mxu1 %v10133_v42 }
 0x2f8   : > { %4288 = vmatpush1.bf16.msra.mxu0 %v10134_v25  ;;  %v10141_v25 = vld [vmem:[#allocation87_spill] sm:$0xff] }
 0x2f9   : > { %4331 = vmatpush1.bf16.msra.mxu1 %v10135_v1  ;;  %5900 = vmatprep.subr.msk.bf16.mxu0 %vm787_vm3, %v10136_v8 }
 0x2fa   : > { %v3013_v55 = vpop.f32.mrb[20].mxu0  ;;  %5902 = vmatprep.subr.msk.bf16.mxu1 %vm787_vm3, %v10137_v9 }
 0x2fb   : > { %v4575_v57 = vrot.slane %v3013_v55, 7  ;;  %v4703_v29 = vmul.f32 %v3013_v55, %v1453_v6  ;;  %v4791_v53 = vrot.slane %v3013_v55, 1  ;;  %v3056_v60 = vpop.f32.mrb[28].mxu1  ;;  %v8820_v23 = vpop.f32.mrb[21].mxu0 }
 0x2fc   : > { %v4577_v61 = vrot.slane %v3056_v60, 7  ;;  %v4705_v32 = vmul.f32 %v3056_v60, %v1461_v58  ;;  %v4797_v35 = vrot.slane %v3056_v60, 1  ;;  %v9747_v27 = vrot.slane %v8820_v23, 7  ;;  %v8826_v45 = vpop.f32.mrb[29].mxu1  ;;  %v3017_v16 = vpop.f32.mrb[22].mxu0  ;;  %4290 = vmatpush1.bf16.msra.mxu0 %v10138_v19 }
 0x2fd   : > { %v4655_v49 = vsel %vm787_vm3, 0.0, %v4575_v57  ;;  %v4704_v5 = vmul.f32 %v8820_v23, %v8801_v48  ;;  %v9746_v3 = vrot.slane %v8826_v45, 7  ;;  %v3060_v14 = vpop.f32.mrb[30].mxu1  ;;  %4333 = vmatpush1.bf16.msra.mxu1 %v10139_v37  ;;  %v3019_v18 = vpop.f32.mrb[23].mxu0  ;;  %4359 = vmatprep.subr.bf16.mxu0 %v10140_v0  ;;  %v4706_v10 = vmul.f32 %v8826_v45, %v8809_v41  ;;  %v10142_v0 = vld [vmem:[#allocation88_spill] sm:$0xff] }
 0x2fe   : > { %v4671_v39 = vmul.f32 %v4655_v49, %v8790_v40  ;;  %v4657_v7 = vsel %vm787_vm3, 0.0, %v4577_v61  ;;  %v4656_v42 = vsel %vm787_vm3, 0.0, %v9747_v27  ;;  %v8843_v4 = vpop.f32.mrb[31].mxu1  ;;  %4402 = vmatprep.subr.bf16.mxu1 %v10141_v25  ;;  %v4800_v9 = vrot.slane %v8826_v45, 1 }
 0x2ff   : > { %v4673_v1 = vmul.f32 %v4657_v7, %v8793_v56  ;;  %v4672_v8 = vmul.f32 %v4656_v42, %v8798_v2  ;;  %v4658_v55 = vsel %vm787_vm3, 0.0, %v9746_v3  ;;  %4306 = vmatmul.mubr.bf16.vlgmr.msra.gmra.mrb[28].mxu0 %v8633_v51  ;;  %v4603_v49 = vrot.slane %v3017_v16, 7  ;;  %v10143_v3 = vld [vmem:[#allocation89_spill] sm:$0xff] }
 0x300   : > { %v4735_v60 = vadd.f32 %v4703_v29, %v4671_v39  ;;  %v4674_v19 = vmul.f32 %v4658_v55, %v8804_v38  ;;  %v4719_v37 = vmul.f32 %v3017_v16, %v1453_v6  ;;  %4349 = vmatmul.mubr.bf16.vlgmr.msra.gmra.mrb[36].mxu1 %v8633_v51  ;;  %4360 = vmatpush1.bf16.msra.mxu0 %v10142_v0  ;;  %v4792_v42 = vrot.slane %v3017_v16, 1  ;;  %v10144_v6 = vld [vmem:[#allocation90_spill] sm:$0xff]  ;;  %v10147_v0 = vld [vmem:[#allocation93_spill] sm:$0xff] }
 0x301   : > { %v4737_v7 = vadd.f32 %v4705_v32, %v4673_v1  ;;  %v4736_v25 = vadd.f32 %v4704_v5, %v4672_v8  ;;  %v4607_v28 = vrot.slane %v3060_v14, 7  ;;  %5905 = vmatprep.mubr.msk.bf16.mxu0 %vm3776_vm5, %v8478_v59  ;;  %4403 = vmatpush1.bf16.msra.mxu1 %v10143_v3  ;;  %v4604_v29 = vsel %vm787_vm3, %v4575_v57, %v4603_v49  ;;  %v10145_v8 = vld [vmem:[#allocation91_spill] sm:$0xff] }
 0x302   : > { %v4738_v27 = vadd.f32 %v4706_v10, %v4674_v19  ;;  %v4721_v39 = vmul.f32 %v3060_v14, %v1461_v58  ;;  %v4798_v55 = vrot.slane %v3060_v14, 1  ;;  %5907 = vmatprep.mubr.msk.bf16.mxu1 %vm3776_vm5, %v8478_v59  ;;  %4361 = vmatprep.subr.bf16.mxu0 %v10144_v6  ;;  %v4687_v32 = vmul.f32 %v4604_v29, %v8790_v40  ;;  %v10146_v14 = vld [vmem:[#allocation92_spill] sm:$0xff]  ;;  %v10149_v29 = vld [vmem:[#allocation95_spill] sm:$0xff] }
 0x303   : > { %v4793_v16 = vsel %vm848_vm4, %v4791_v53, %v4792_v42  ;;  %v4847_v5 = vsel %vm848_vm4, %v4792_v42, 0.0  ;;  %v4608_v1 = vsel %vm787_vm3, %v4577_v61, %v4607_v28  ;;  %4404 = vmatprep.subr.bf16.mxu1 %v10145_v8  ;;  %v4605_v53 = vrot.slane %v3019_v18, 7  ;;  %v10148_v42 = vld [vmem:[#allocation94_spill] sm:$0xff] }
 0x304   : > { %v4863_v3 = vmul.f32 %v4793_v16, %v1517_v15  ;;  %v4879_v10 = vmul.f32 %v4847_v5, %v1517_v15  ;;  %v4689_v58 = vmul.f32 %v4608_v1, %v8793_v56  ;;  %v4799_v57 = vsel %vm848_vm4, %v4797_v35, %v4798_v55  ;;  %4362 = vmatpush1.bf16.msra.mxu0 %v10146_v14  ;;  %v10154_v5 = vld [vmem:[#allocation96_spill] sm:$0xff] }
 0x305   : > { %v4751_v19 = vadd.f32 %v4719_v37, %v4687_v32  ;;  %v4849_v49 = vsel %vm848_vm4, %v4798_v55, 0.0  ;;  %v4865_v40 = vmul.f32 %v4799_v57, %v8815_v43  ;;  %4405 = vmatpush1.bf16.msra.mxu1 %v10147_v0  ;;  %4363 = vmatprep.subr.bf16.mxu0 %v10148_v42  ;;  %v4720_v15 = vmul.f32 %v3019_v18, %v8801_v48  ;;  %v10156_v57 = vld [vmem:[#allocation97_spill] sm:$0xff] }
 0x306   : > { %v4753_v61 = vadd.f32 %v4721_v39, %v4689_v58  ;;  %v4881_v28 = vmul.f32 %v4849_v49, %v8815_v43  ;;  %v4795_v56 = vrot.slane %v3019_v18, 1  ;;  %4406 = vmatprep.subr.bf16.mxu1 %v10149_v29  ;;  %v10151_v37 = vrot.slane %v8820_v23, 7  ;;  %v10170_v29 = vld [vmem:[#allocation107_spill] sm:$0xff] }
 0x307   : > { %v8878_v35 = vadd.f32 %v4879_v10, %v4751_v19  ;;  %v4609_v6 = vrot.slane %v8843_v4, 7  ;;  %v4722_v32 = vmul.f32 %v8843_v4, %v8809_v41  ;;  %v10153_v48 = vrot.slane %v8820_v23, 1  ;;  %v10158_v19 = vld [vmem:[#allocation99_spill] sm:$0xff] }
 0x308   : > { %v4606_v55 = vsel %vm787_vm3, %v10151_v37, %v4605_v53  ;;  %v8886_v16 = vadd.f32 %v4881_v28, %v4753_v61  ;;  %v4848_v39 = vsel %vm848_vm4, %v4795_v56, 0.0  ;;  %4364 = vmatpush1.bf16.msra.mxu0 %v10154_v5  ;;  %v10155_v10 = vrot.slane %v8826_v45, 7  ;;  %v10172_v37 = vld [vmem:[#allocation109_spill] sm:$0xff]  ;;  %v10181_v5 = vld [vmem:[#allocation118_spill] sm:$0xff] }
 0x309   : > { %10150 = vst [vmem:[#allocation19_spill] sm:$0xff] %v8878_v35  ;;  %v4688_v43 = vmul.f32 %v4606_v55, %v8798_v2  ;;  %v4796_v18 = vsel %vm848_vm4, %v10153_v48, %v4795_v56  ;;  %v4880_v8 = vmul.f32 %v4848_v39, %v8818_v12  ;;  %v4801_v58 = vrot.slane %v8843_v4, 1  ;;  %4407 = vmatpush1.bf16.msra.mxu1 %v10156_v57  ;;  %v10157_v2 = vld [vmem:[#allocation98_spill] sm:$0xff]  ;;  %v10178_v48 = vld [vmem:[#allocation115_spill] sm:$0xff]  ;;  %v10180_v39 = vld [vmem:[#allocation117_spill] sm:$0xff] }
 0x30a   : > { %10152 = vst [vmem:[#allocation20_spill] sm:$0xff] %v8886_v16  ;;  %v4864_v1 = vmul.f32 %v4796_v18, %v8818_v12  ;;  %v4610_v41 = vsel %vm787_vm3, %v10155_v10, %v4609_v6  ;;  %4365 = vmatprep.subr.bf16.mxu0 %v10157_v2  ;;  %4408 = vmatprep.subr.bf16.mxu1 %v10158_v19  ;;  %v10169_v56 = vld [vmem:[#allocation106_spill] sm:$0xff]  ;;  %v10174_v6 = vld [vmem:[#allocation111_spill] sm:$0xff]  ;;  %v10179_v18 = vld [vmem:[#allocation116_spill] sm:$0xff] }
 0x30b   : > { %v4752_v23 = vadd.f32 %v4720_v15, %v4688_v43  ;;  %v4690_v14 = vmul.f32 %v4610_v41, %v8804_v38  ;;  %v8904_v49 = vadd.f32 %v4863_v3, %v4735_v60  ;;  %v8906_v53 = vadd.f32 %v4865_v40, %v4737_v7  ;;  %v10161_v38 = vld [vmem:[#allocation100_spill] sm:$0xff]  ;;  %v10162_v15 = vld [vmem:[#allocation101_spill] sm:$0xff]  ;;  %v10163_v60 = vld [vmem:[#allocation102_spill] sm:$0xff] }
 0x30c   : > { %v4802_v12 = vsel %vm848_vm4, %v4800_v9, %v4801_v58  ;;  %v4850_v45 = vsel %vm848_vm4, %v4801_v58, 0.0  ;;  %v8910_v0 = vadd.f32 %v4864_v1, %v4736_v25  ;;  %4366 = vmatpush1.bf16.msra.mxu0 %v10161_v38  ;;  %v10165_v9 = vld [vmem:[#allocation103_spill] sm:$0xff]  ;;  %v10167_v25 = vld [vmem:[#allocation104_spill] sm:$0xff]  ;;  %v10168_v40 = vld [vmem:[#allocation105_spill] sm:$0xff] }
 0x30d   : > { %v8912_v4 = vadd.f32 %v4880_v8, %v4752_v23  ;;  %v4754_v42 = vadd.f32 %v4722_v32, %v4690_v14  ;;  %v4866_v61 = vmul.f32 %v4802_v12, %v8823_v36  ;;  %v4882_v28 = vmul.f32 %v4850_v45, %v8823_v36  ;;  %4409 = vmatpush1.bf16.msra.mxu1 %v10162_v15  ;;  %v10171_v36 = vld [vmem:[#allocation108_spill] sm:$0xff]  ;;  %v10173_v55 = vld [vmem:[#allocation110_spill] sm:$0xff]  ;;  %v10182_v1 = vld [vmem:[#allocation119_spill] sm:$0xff] }
 0x30e   : > { %10159 = vst [vmem:[#allocation21_spill] sm:$0xff] %v8910_v0  ;;  %4367 = vmatprep.subr.bf16.mxu0 %v10163_v60  ;;  %4410 = vmatprep.subr.bf16.mxu1 %v10165_v9  ;;  %v10175_v32 = vld [vmem:[#allocation112_spill] sm:$0xff]  ;;  %v10177_v43 = vld [vmem:[#allocation114_spill] sm:$0xff]  ;;  %v10185_v41 = vld [vmem:[#allocation121_spill] sm:$0xff] }
 0x30f   : > { %10160 = vst [vmem:[#allocation22_spill] sm:$0xff] %v8912_v4  ;;  %v8919_v7 = vadd.f32 %v4882_v28, %v4754_v42  ;;  %v8922_v3 = vadd.f32 %v4866_v61, %v4738_v27  ;;  %v10176_v27 = vld [vmem:[#allocation113_spill] sm:$0xff]  ;;  %v10183_v8 = vld [vmem:[#allocation120_spill] sm:$0xff]  ;;  %v10184_v10 = vld [vmem:[#allocation122_spill] sm:$0xff] }
 0x310   : > { %4368 = vmatpush1.bf16.msra.mxu0 %v10167_v25  ;;  %v10186_v58 = vld [vmem:[#allocation123_spill] sm:$0xff]  ;;  %v10187_v57 = vld [vmem:[#allocation124_spill] sm:$0xff]  ;;  %v10188_v2 = vld [vmem:[#allocation125_spill] sm:$0xff] }
 0x311   : > { %10164 = vst [vmem:[#allocation23_spill] sm:$0xff] %v8919_v7  ;;  %10166 = vst [vmem:[#allocation24_spill] sm:$0xff] %v8922_v3  ;;  %4411 = vmatpush1.bf16.msra.mxu1 %v10168_v40  ;;  %4369 = vmatprep.subr.bf16.mxu0 %v10169_v56  ;;  %v10189_v23 = vld [vmem:[#allocation127_spill] sm:$0xff]  ;;  %v10190_v14 = vld [vmem:[#allocation129_spill] sm:$0xff] }
 0x312   : > { %4412 = vmatprep.subr.bf16.mxu1 %v10170_v29  ;;  %v10191_v19 = vld [vmem:[#allocation126_spill] sm:$0xff]  ;;  %v10192_v12 = vld [vmem:[#allocation128_spill] sm:$0xff]  ;;  %v10193_v45 = vld [vmem:[#allocation131_spill] sm:$0xff] }
 0x313   : > { %v10194_v42 = vld [vmem:[#allocation133_spill] sm:$0xff]  ;;  %v10195_v61 = vld [vmem:[#allocation130_spill] sm:$0xff]  ;;  %v10196_v28 = vld [vmem:[#allocation132_spill] sm:$0xff] }
 0x314   : > { %4370 = vmatpush1.bf16.msra.mxu0 %v10171_v36  ;;  %v10197_v38 = vld [vmem:[#allocation134_spill] sm:$0xff]  ;;  %v10198_v15 = vld [vmem:[#allocation135_spill] sm:$0xff] }
 0x315   : > { %4413 = vmatpush1.bf16.msra.mxu1 %v10172_v37  ;;  %4371 = vmatprep.subr.bf16.mxu0 %v10173_v55  ;;  %v10210_v60 = vld [vmem:[#allocation15_spill] sm:$0xff]  ;;  %v6141_v37 = vld [vmem:[%s9516_s6 + $0x18] sm:$0x3f] }
 0x316   : > { %4414 = vmatprep.subr.bf16.mxu1 %v10174_v6  ;;  %v6139_v25 = vld [vmem:[%s9516_s6 + $0x10] sm:$0x3f]  ;;  %v9015_v55 = vrot.slane %v6141_v37, %v10210_v60 }
 0x317   : > { %v8999_v40 = vrot.slane %v6139_v25, %v10210_v60  ;;  %v10215_v4 = vld [vmem:[#allocation151_spill] sm:$0xff] }
 0x318   : > { %4372 = vmatpush1.bf16.msra.mxu0 %v10175_v32 }
 0x319   : > { %4415 = vmatpush1.bf16.msra.mxu1 %v10176_v27  ;;  %4373 = vmatprep.subr.bf16.mxu0 %v10177_v43  ;;  %v10211_v27 = vld [vmem:[#allocation17_spill] sm:$0xff] }
 0x31a   : > { %4416 = vmatprep.subr.bf16.mxu1 %v10178_v48  ;;  %v9021_v48 = vstv %s5607_s23  ;;  %s6259_s23 = smov [#allocation6]  }
 0x31b   : > { %s6173_s19 = sshll.u32 %s6259_s23, 4  ;;  %s6174_s19 = int_to_ptr.vmem [resolvable:$false] %s6173_s19 }
 0x31c   : > { %4374 = vmatpush1.bf16.msra.mxu0 %v10179_v18  ;;  %v9024_v18 = vrot.slane %v6139_v25, %v10211_v27  ;;  %s6175_s20 = scalar_lea.vmem %s6174_s19, 8192  ;;  %p6176_p0 = scmp.lt.s32.totalorder %s9458_s24, %s6174_s19 }
 0x31d   : > { %4417 = vmatpush1.bf16.msra.mxu1 %v10180_v39  ;;  %5904 = vmatprep.subr.msk.bf16.mxu0 %vm787_vm3, %v10181_v5  ;;  %p6177_p1 = scmp.lt.s32.totalorder %s6175_s20, %s6169_s30 }
 0x31e   : > { %5906 = vmatprep.subr.msk.bf16.mxu1 %vm787_vm3, %v10182_v1 }
 0x31f   : > { %p6178_p2 = por %p6177_p1, %p6176_p0 }
 0x320   : > { %4376 = vmatpush1.bf16.msra.mxu0 %v10183_v8 }
 0x321   : > { %4419 = vmatpush1.bf16.msra.mxu1 %v10184_v10  ;;  %4445 = vmatprep.subr.bf16.mxu0 %v10185_v41  ;;  %p6179_p3 = pnand %p6178_p2, %p6172_p13 }
 0x322   : > { %4488 = vmatprep.subr.bf16.mxu1 %v10186_v58  ;;  %v9032_v58 = vrot.slane %v6141_v37, %v10211_v27 }
 0x323   : > { %4392 = vmatmul.mubr.bf16.vlgmr.msra.gmra.mrb[32].mxu0 %v8633_v51 }
 0x324   : > { %4435 = vmatmul.mubr.bf16.vlgmr.msra.gmra.mrb[40].mxu1 %v8633_v51  ;;  %4446 = vmatpush1.bf16.msra.mxu0 %v10187_v57 }
 0x325   : > { %5909 = vmatprep.mubr.msk.bf16.mxu0 %vm3776_vm5, %v8478_v59  ;;  %4489 = vmatpush1.bf16.msra.mxu1 %v10188_v2 }
 0x326   : > { %5911 = vmatprep.mubr.msk.bf16.mxu1 %vm3776_vm5, %v8478_v59  ;;  %4447 = vmatprep.subr.bf16.mxu0 %v10189_v23 }
 0x327   : > { %4490 = vmatprep.subr.bf16.mxu1 %v10190_v14 }
 0x328   : > { %4448 = vmatpush1.bf16.msra.mxu0 %v10191_v19 }
 0x329   : > { %4491 = vmatpush1.bf16.msra.mxu1 %v10192_v12  ;;  %4449 = vmatprep.subr.bf16.mxu0 %v10193_v45 }
 0x32a   : > { %4492 = vmatprep.subr.bf16.mxu1 %v10194_v42 }
 0x32c   : > { %4450 = vmatpush1.bf16.msra.mxu0 %v10195_v61 }
 0x32d   : > { %4493 = vmatpush1.bf16.msra.mxu1 %v10196_v28  ;;  %4451 = vmatprep.subr.bf16.mxu0 %v10197_v38 }
 0x32e   : > { %4494 = vmatprep.subr.bf16.mxu1 %v10198_v15 }
 0x330   : > { %4452 = vmatpush1.bf16.msra.mxu0 %v8256_v30  ;;  %v10199_v30 = vld [vmem:[#allocation136_spill] sm:$0xff] }
 0x331   : > { %4495 = vmatpush1.bf16.msra.mxu1 %v8270_v20  ;;  %4453 = vmatprep.subr.bf16.mxu0 %v8276_v33  ;;  %v10200_v20 = vld [vmem:[#allocation137_spill] sm:$0xff]  ;;  %v10201_v33 = vld [vmem:[#allocation138_spill] sm:$0xff] }
 0x332   : > { %4496 = vmatprep.subr.bf16.mxu1 %v8294_v22  ;;  %v10204_v22 = vld [vmem:[#allocation147_spill] sm:$0xff] }
 0x334   : > { %4454 = vmatpush1.bf16.msra.mxu0 %v8274_v31  ;;  %v10202_v31 = vld [vmem:[#allocation139_spill] sm:$0xff] }
 0x335   : > { %4497 = vmatpush1.bf16.msra.mxu1 %v8292_v46  ;;  %4455 = vmatprep.subr.bf16.mxu0 %v8298_v47  ;;  %v10203_v46 = vld [vmem:[#allocation144_spill] sm:$0xff] }
 0x336   : > { %4498 = vmatprep.subr.bf16.mxu1 %v8314_v13  ;;  %v10205_v47 = vld [vmem:[#allocation148_spill] sm:$0xff] }
 0x337   : > { %v10209_v13 = vld [vmem:[#allocation16_spill] sm:$0xff] }
 0x338   : > { %4456 = vmatpush1.bf16.msra.mxu0 %v8296_v24  ;;  %v10206_v24 = vld [vmem:[#allocation150_spill] sm:$0xff]  ;;  %v1605_v56 = vrot.slane %v6139_v25, %v10209_v13  ;;  %v9018_v6 = vrot.slane %v6141_v37, %v10209_v13 }
 0x339   : > { %4499 = vmatpush1.bf16.msra.mxu1 %v8312_v11  ;;  %4457 = vmatprep.subr.bf16.mxu0 %v8319_v44  ;;  %v10207_v44 = vld [vmem:[#allocation152_spill] sm:$0xff]  ;;  %v6138_v11 = vld [vmem:[%s9516_s6] sm:$0x3f] }
 0x33a   : > { %4500 = vmatprep.subr.bf16.mxu1 %v8323_v54  ;;  %v10208_v54 = vld [vmem:[#allocation153_spill] sm:$0xff]  ;;  %v1597_v59 = vrot.slane %v6138_v11, %v10209_v13  ;;  %v1533_v9 = vrot.slane %v6138_v11, %v10210_v60  ;;  %v1661_v43 = vrot.slane %v6138_v11, %v10211_v27 }
 0x33c   : > { %4458 = vmatpush1.bf16.msra.mxu0 %v10199_v30 }
 0x33d   : > { %4501 = vmatpush1.bf16.msra.mxu1 %v10200_v20  ;;  %4459 = vmatprep.subr.bf16.mxu0 %v10201_v33 }
 0x33e   : > { %4502 = vmatprep.subr.bf16.mxu1 %v10202_v31 }
 0x340   : > { %4460 = vmatpush1.bf16.msra.mxu0 %v10203_v46 }
 0x341   : > { %4503 = vmatpush1.bf16.msra.mxu1 %v10204_v22  ;;  %5908 = vmatprep.subr.msk.bf16.mxu0 %vm787_vm3, %v10205_v47 }
 0x342   : > { %5910 = vmatprep.subr.msk.bf16.mxu1 %vm787_vm3, %v10206_v24 }
 0x344   : > { %4462 = vmatpush1.bf16.msra.mxu0 %v10207_v44 }
 0x345   : > { %4505 = vmatpush1.bf16.msra.mxu1 %v10208_v54  ;;  %v10212_v54 = vld [vmem:[#allocation142_spill] sm:$0xff] }
 0x347   : > { %4478 = vmatmul.mubr.bf16.vlgmr.msra.gmra.mrb[36].mxu0 %v8633_v51 }
 0x348   : > { %4521 = vmatmul.mubr.bf16.vlgmr.msra.gmra.mrb[44].mxu1 %v8633_v51  ;;  %v6140_v51 = vld [vmem:[%s9516_s6 + $0x8] sm:$0x3f] }
 0x349   : > { %v9006_v29 = vrot.slane %v6140_v51, %v10210_v60  ;;  %v9009_v36 = vrot.slane %v6140_v51, %v10209_v13  ;;  %v9027_v39 = vrot.slane %v6140_v51, %v10211_v27 }
 0x3ae   : > { %v4221_v32 = vpop.f32.mrb[24].mxu0 }
 0x3af   : > { %v4947_v5 = vrot.slane %v4221_v32, 7  ;;  %v5107_v1 = vmul.f32 %v4221_v32, %v1597_v59  ;;  %v5171_v8 = vrot.slane %v4221_v32, 1  ;;  %v4264_v10 = vpop.f32.mrb[32].mxu1  ;;  %v9029_v41 = vpop.f32.mrb[25].mxu0  ;;  %v10213_v32 = vld [vmem:[#allocation143_spill] sm:$0xff] }
 0x3b0   : > { %v4949_v57 = vrot.slane %v4264_v10, 7  ;;  %v5109_v2 = vmul.f32 %v4264_v10, %v1605_v56  ;;  %v5177_v23 = vrot.slane %v4264_v10, 1  ;;  %v4948_v14 = vrot.slane %v9029_v41, 7  ;;  %v9035_v19 = vpop.f32.mrb[33].mxu1  ;;  %v4225_v12 = vpop.f32.mrb[26].mxu0 }
 0x3b1   : > { %v5027_v45 = vsel %vm787_vm3, 0.0, %v4947_v5  ;;  %v5108_v42 = vmul.f32 %v9029_v41, %v9009_v36  ;;  %v5174_v61 = vrot.slane %v9029_v41, 1  ;;  %v9748_v28 = vrot.slane %v9035_v19, 7  ;;  %v4268_v38 = vpop.f32.mrb[34].mxu1  ;;  %v4227_v15 = vpop.f32.mrb[27].mxu0  ;;  %v10214_v41 = vld [vmem:[#allocation145_spill] sm:$0xff] }
 0x3b2   : > { %v5043_v30 = vmul.f32 %v5027_v45, %v1533_v9  ;;  %v5029_v20 = vsel %vm787_vm3, 0.0, %v4949_v57  ;;  %v5028_v33 = vsel %vm787_vm3, 0.0, %v4948_v14  ;;  %v5110_v31 = vmul.f32 %v9035_v19, %v9018_v6  ;;  %v9046_v46 = vpop.f32.mrb[35].mxu1 }
 0x3b3   : > { %v5045_v22 = vmul.f32 %v5029_v20, %v8999_v40  ;;  %v5044_v47 = vmul.f32 %v5028_v33, %v9006_v29  ;;  %v5030_v24 = vsel %vm787_vm3, 0.0, %v9748_v28  ;;  %v4963_v51 = vrot.slane %v4225_v12, 7 }
 0x3b4   : > { %v5075_v11 = vadd.f32 %v5043_v30, %v10212_v54  ;;  %v5046_v25 = vmul.f32 %v5030_v24, %v9015_v55  ;;  %v5123_v37 = vmul.f32 %v4225_v12, %v1597_v59  ;;  %v5172_v20 = vrot.slane %v4225_v12, 1 }
 0x3b5   : > { %v5077_v10 = vadd.f32 %v5045_v22, %v10213_v32  ;;  %v5076_v45 = vadd.f32 %v5044_v47, %v10214_v41  ;;  %v4967_v7 = vrot.slane %v4268_v38, 7  ;;  %v4964_v28 = vsel %vm787_vm3, %v4947_v5, %v4963_v51 }
 0x3b6   : > { %v5139_v33 = vadd.f32 %v5107_v1, %v5075_v11  ;;  %v5078_v16 = vadd.f32 %v5046_v25, %v10215_v4  ;;  %v5125_v35 = vmul.f32 %v4268_v38, %v1605_v56  ;;  %v5059_v30 = vmul.f32 %v4964_v28, %v1533_v9  ;;  %v10216_v1 = vld [vmem:[#allocation140_spill] sm:$0xff]  ;;  %v10217_v28 = vld [vmem:[#allocation141_spill] sm:$0xff] }
 0x3b7   : > { %v5141_v44 = vadd.f32 %v5109_v2, %v5077_v10  ;;  %v5140_v3 = vadd.f32 %v5108_v42, %v5076_v45  ;;  %v5173_v24 = vsel %vm848_vm4, %v5171_v8, %v5172_v20  ;;  %v5251_v59 = vsel %vm848_vm4, %v5172_v20, 0.0  ;;  %v10218_v20 = vld [vmem:[#allocation146_spill] sm:$0xff] }
 0x3b8   : > { %v9061_v54 = vadd.f32 %v5110_v31, %v5078_v16  ;;  %v5267_v22 = vmul.f32 %v5173_v24, %v1661_v43  ;;  %v4968_v12 = vsel %vm787_vm3, %v4949_v57, %v4967_v7  ;;  %v5091_v47 = vadd.f32 %v5059_v30, %v10216_v1 }
 0x3b9   : > { %v5283_v4 = vmul.f32 %v5251_v59, %v1661_v43  ;;  %v5061_v5 = vmul.f32 %v4968_v12, %v8999_v40  ;;  %v5178_v56 = vrot.slane %v4268_v38, 1  ;;  %v4965_v42 = vrot.slane %v4227_v15, 7 }
 0x3ba   : > { %v5299_v2 = vadd.f32 %v5267_v22, %v5139_v33  ;;  %v5124_v9 = vmul.f32 %v4227_v15, %v9009_v36  ;;  %v5175_v8 = vrot.slane %v4227_v15, 1  ;;  %v5155_v16 = vadd.f32 %v5123_v37, %v5091_v47 }
 0x3bb   : > { %v5093_v31 = vadd.f32 %v5061_v5, %v10217_v28  ;;  %v5179_v11 = vsel %vm848_vm4, %v5177_v23, %v5178_v56  ;;  %v5253_v25 = vsel %vm848_vm4, %v5178_v56, 0.0  ;;  %v4966_v57 = vsel %vm787_vm3, %v4948_v14, %v4965_v42  ;;  %v10221_v28 = vld [vmem:[#allocation149_spill] sm:$0xff] }
 0x3bc   : > { %v5332_v7 = vadd.f32 %v9021_v48, %v5299_v2  ;;  %v5269_v43 = vmul.f32 %v5179_v11, %v9024_v18  ;;  %v5285_v40 = vmul.f32 %v5253_v25, %v9024_v18  ;;  %v5315_v38 = vadd.f32 %v5283_v4, %v5155_v16 }
 0x3bd   : > { %v5157_v36 = vadd.f32 %v5125_v35, %v5093_v31  ;;  %v5060_v15 = vmul.f32 %v4966_v57, %v9006_v29  ;;  %v5176_v51 = vsel %vm848_vm4, %v5174_v61, %v5175_v8  ;;  %v5252_v32 = vsel %vm848_vm4, %v5175_v8, 0.0 }
 0x3be   : > { %v5364_v37 = vmul.f32 0.4, %v5332_v7  ;;  %v5301_v23 = vadd.f32 %v5269_v43, %v5141_v44  ;;  %v5268_v10 = vmul.f32 %v5176_v51, %v9027_v39  ;;  %v5348_v41 = vadd.f32 %v9021_v48, %v5315_v38 }
 0x3bf   : > { %v5317_v45 = vadd.f32 %v5285_v40, %v5157_v36  ;;  %v5092_v33 = vadd.f32 %v5060_v15, %v10218_v20  ;;  %v5284_v18 = vmul.f32 %v5252_v32, %v9027_v39  ;;  %v4969_v29 = vrot.slane %v9046_v46, 7  ;;  %v6144_v20 = vld [vmem:[%s9516_s6 + $0x28] sm:$0x3f] }
 0x3c0   : > { %v5396_v14 = vmax.f32 %v5332_v7, %v5364_v37  ;;  %v5334_v35 = vadd.f32 %v9021_v48, %v5301_v23  ;;  %v5300_v30 = vadd.f32 %v5268_v10, %v5140_v3  ;;  %v5380_v61 = vmul.f32 0.4, %v5348_v41  ;;  %v6143_v10 = vld [vmem:[%s9516_s6 + $0x30] sm:$0x3f] }
 0x3c1   : > { %v5350_v44 = vadd.f32 %v9021_v48, %v5317_v45  ;;  %v5156_v24 = vadd.f32 %v5124_v9, %v5092_v33  ;;  %v5126_v59 = vmul.f32 %v9046_v46, %v9018_v6  ;;  %v10219_v12 = vrot.slane %v9035_v19, 7 }
 0x3c2   : > { %5428 = vst [vmem:[%s9090_s16] sm:$0xff] %v5396_v14  ;;  %v5366_v22 = vmul.f32 0.4, %v5334_v35  ;;  %v5333_v39 = vadd.f32 %v9021_v48, %v5300_v30  ;;  %v5181_v1 = vrot.slane %v9046_v46, 1  ;;  %v5412_v47 = vmax.f32 %v5348_v41, %v5380_v61  ;;  %v6145_v14 = vld [vmem:[%s9516_s6 + $0x38] sm:$0x3f] }
 0x3c3   : > { %v4970_v3 = vsel %vm787_vm3, %v10219_v12, %v4969_v29  ;;  %v5382_v4 = vmul.f32 0.4, %v5350_v44  ;;  %v5316_v5 = vadd.f32 %v5284_v18, %v5156_v24  ;;  %v10220_v42 = vrot.slane %v9035_v19, 1 }
 0x3c4   : > { %v5062_v6 = vmul.f32 %v4970_v3, %v9015_v55  ;;  %v5398_v56 = vmax.f32 %v5334_v35, %v5366_v22  ;;  %v5365_v2 = vmul.f32 0.4, %v5333_v39  ;;  %v5254_v8 = vsel %vm848_vm4, %v5181_v1, 0.0  ;;  %5444 = vst [vmem:[%s9090_s16 + $0x80] sm:$0xff] %v5412_v47 }
 0x3c5   : > { %v5182_v9 = vsel %vm848_vm4, %v10220_v42, %v5181_v1  ;;  %v5414_v16 = vmax.f32 %v5350_v44, %v5382_v4  ;;  %v5349_v46 = vadd.f32 %v9021_v48, %v5316_v5  ;;  %v5286_v19 = vmul.f32 %v5254_v8, %v9032_v58 }
 0x3c6   : > { %v5094_v31 = vadd.f32 %v5062_v6, %v10221_v28  ;;  %v5270_v11 = vmul.f32 %v5182_v9, %v9032_v58  ;;  %5430 = vst [vmem:[%s9090_s16 + $0x10] sm:$0xff] %v5398_v56  ;;  %v5397_v55 = vmax.f32 %v5333_v39, %v5365_v2  ;;  %v6142_v58 = vld [vmem:[%s9516_s6 + $0x20] sm:$0x3f]  ;;  %v1621_v41 = vrot.slane %v6143_v10, %v10209_v13 }
 0x3c7   : > { %5446 = vst [vmem:[%s9090_s16 + $0x90] sm:$0xff] %v5414_v16  ;;  %v5381_v25 = vmul.f32 0.4, %v5349_v46  ;;  %v1549_v32 = vrot.slane %v6142_v58, %v10210_v60  ;;  %v1557_v45 = vrot.slane %v6143_v10, %v10210_v60  ;;  %v9131_v33 = vrot.slane %v6144_v20, %v10210_v60 }
 0x3c8   : > { %v5158_v7 = vadd.f32 %v5126_v59, %v5094_v31  ;;  %v5302_v43 = vadd.f32 %v5270_v11, %v9061_v54  ;;  %5429 = vst [vmem:[%s9090_s16 + $0x8] sm:$0xff] %v5397_v55  ;;  %v1613_v54 = vrot.slane %v6142_v58, %v10209_v13  ;;  %v1617_v18 = vrot.slane %v6144_v20, %v10209_v13 }
 0x3c9   : > { %v5413_v40 = vmax.f32 %v5349_v46, %v5381_v25  ;;  %v9138_v35 = vrot.slane %v6145_v14, %v10210_v60  ;;  %v9141_v29 = vrot.slane %v6145_v14, %v10209_v13  ;;  %v1677_v61 = vrot.slane %v6142_v58, %v10211_v27 }
 0x3ca   : > { %v5318_v57 = vadd.f32 %v5286_v19, %v5158_v7  ;;  %v5335_v38 = vadd.f32 %v9021_v48, %v5302_v43  ;;  %v9145_v44 = vrot.slane %v6143_v10, %v10211_v27  ;;  %v9148_v24 = vrot.slane %v6144_v20, %v10211_v27  ;;  %v10224_v10 = vld [vmem:[#allocation11_spill] sm:$0xff] }
 0x3cb   : > { %5445 = vst [vmem:[%s9090_s16 + $0x88] sm:$0xff] %v5413_v40  ;;  %v9153_v1 = vrot.slane %v6145_v14, %v10211_v27 }
 0x3cc   : > { %v5351_v36 = vadd.f32 %v9021_v48, %v5318_v57  ;;  %v5367_v15 = vmul.f32 0.4, %v5335_v38 }
 0x3ce   : > { %v5383_v51 = vmul.f32 0.4, %v5351_v36  ;;  %v5399_v37 = vmax.f32 %v5335_v38, %v5367_v15  ;;  %v10222_v38 = vld [vmem:[#allocation12_spill] sm:$0xff] }
 0x3d0   : > { %v5415_v23 = vmax.f32 %v5351_v36, %v5383_v51  ;;  %5431 = vst [vmem:[%s9090_s16 + $0x18] sm:$0xff] %v5399_v37 }
 0x3d2   : > { %5447 = vst [vmem:[%s9090_s16 + $0x98] sm:$0xff] %v5415_v23  ;;  %v4307_v30 = vpop.f32.mrb[28].mxu0  ;;  %v10223_v23 = vld [vmem:[#allocation13_spill] sm:$0xff] }
 0x3d3   : > { %v4951_v59 = vrot.slane %v4307_v30, 7  ;;  %v5111_v22 = vmul.f32 %v4307_v30, %v1613_v54  ;;  %v5183_v39 = vrot.slane %v4307_v30, 1  ;;  %v4350_v12 = vpop.f32.mrb[36].mxu1  ;;  %v9150_v3 = vpop.f32.mrb[29].mxu0 }
 0x3d4   : > { %v4953_v47 = vrot.slane %v4350_v12, 7  ;;  %v5113_v4 = vmul.f32 %v4350_v12, %v1621_v41  ;;  %v5189_v5 = vrot.slane %v4350_v12, 1  ;;  %v4952_v6 = vrot.slane %v9150_v3, 7  ;;  %v9156_v56 = vpop.f32.mrb[37].mxu1  ;;  %v4311_v2 = vpop.f32.mrb[30].mxu0 }
 0x3d5   : > { %v5031_v42 = vsel %vm787_vm3, 0.0, %v4951_v59  ;;  %v5112_v9 = vmul.f32 %v9150_v3, %v1617_v18  ;;  %v5186_v8 = vrot.slane %v9150_v3, 1  ;;  %v9749_v16 = vrot.slane %v9156_v56, 7  ;;  %v4354_v46 = vpop.f32.mrb[38].mxu1  ;;  %v4313_v28 = vpop.f32.mrb[31].mxu0  ;;  %v10225_v3 = vld [vmem:[#allocation18_spill] sm:$0xff] }
 0x3d6   : > { %v5047_v31 = vmul.f32 %v5031_v42, %v1549_v32  ;;  %v5033_v11 = vsel %vm787_vm3, 0.0, %v4953_v47  ;;  %v5032_v55 = vsel %vm787_vm3, 0.0, %v4952_v6  ;;  %v5114_v25 = vmul.f32 %v9156_v56, %v9141_v29  ;;  %v9166_v7 = vpop.f32.mrb[39].mxu1 }
 0x3d7   : > { %v5049_v19 = vmul.f32 %v5033_v11, %v1557_v45  ;;  %v5048_v43 = vmul.f32 %v5032_v55, %v9131_v33  ;;  %v5034_v40 = vsel %vm787_vm3, 0.0, %v9749_v16  ;;  %v4971_v51 = vrot.slane %v4311_v2, 7 }
 0x3d8   : > { %v5079_v36 = vadd.f32 %v5047_v31, %v10222_v38  ;;  %v5050_v15 = vmul.f32 %v5034_v40, %v9138_v35  ;;  %v5127_v37 = vmul.f32 %v4311_v2, %v1613_v54  ;;  %v5184_v14 = vrot.slane %v4311_v2, 1  ;;  %v10226_v2 = vld [vmem:[#allocation53_spill] sm:$0xff] }
 0x3d9   : > { %v5081_v58 = vadd.f32 %v5049_v19, %v10223_v23  ;;  %v5080_v20 = vadd.f32 %v5048_v43, %v10224_v10  ;;  %v4975_v30 = vrot.slane %v4354_v46, 7  ;;  %v4972_v11 = vsel %vm787_vm3, %v4951_v59, %v4971_v51 }
 0x3da   : > { %v5143_v12 = vadd.f32 %v5111_v22, %v5079_v36  ;;  %v5082_v42 = vadd.f32 %v5050_v15, %v10225_v3  ;;  %v5129_v55 = vmul.f32 %v4354_v46, %v1621_v41  ;;  %v5063_v0 = vmul.f32 %v4972_v11, %v1549_v32  ;;  %v10227_v32 = vld [vmem:[#allocation9_spill] sm:$0xff] }
 0x3db   : > { %v5145_v16 = vadd.f32 %v5113_v4, %v5081_v58  ;;  %v5144_v57 = vadd.f32 %v5112_v9, %v5080_v20  ;;  %v5185_v31 = vsel %vm848_vm4, %v5183_v39, %v5184_v14  ;;  %v5255_v54 = vsel %vm848_vm4, %v5184_v14, 0.0 }
 0x3dc   : > { %v9180_v40 = vadd.f32 %v5114_v25, %v5082_v42  ;;  %v5271_v19 = vmul.f32 %v5185_v31, %v1677_v61  ;;  %v4976_v43 = vsel %vm787_vm3, %v4953_v47, %v4975_v30  ;;  %v5095_v38 = vadd.f32 %v5063_v0, %v10226_v2 }
 0x3dd   : > { %v5287_v22 = vmul.f32 %v5255_v54, %v1677_v61  ;;  %v5065_v36 = vmul.f32 %v4976_v43, %v1557_v45  ;;  %v5190_v15 = vrot.slane %v4354_v46, 1  ;;  %v4973_v59 = vrot.slane %v4313_v28, 7 }
 0x3de   : > { %v5303_v23 = vadd.f32 %v5271_v19, %v5143_v12  ;;  %v5128_v41 = vmul.f32 %v4313_v28, %v1617_v18  ;;  %v5187_v4 = vrot.slane %v4313_v28, 1  ;;  %v5159_v9 = vadd.f32 %v5127_v37, %v5095_v38  ;;  %v10228_v12 = vld [vmem:[#allocation10_spill] sm:$0xff] }
 0x3df   : > { %v5097_v51 = vadd.f32 %v5065_v36, %v10227_v32  ;;  %v5191_v39 = vsel %vm848_vm4, %v5189_v5, %v5190_v15  ;;  %v5257_v25 = vsel %vm848_vm4, %v5190_v15, 0.0  ;;  %v4974_v45 = vsel %vm787_vm3, %v4952_v6, %v4973_v59 }
 0x3e0   : > { %v5336_v58 = vadd.f32 %v9021_v48, %v5303_v23  ;;  %v5273_v47 = vmul.f32 %v5191_v39, %v9145_v44  ;;  %v5289_v0 = vmul.f32 %v5257_v25, %v9145_v44  ;;  %v5319_v61 = vadd.f32 %v5287_v22, %v5159_v9  ;;  %v10231_v9 = vld [vmem:[#allocation14_spill] sm:$0xff] }
 0x3e1   : > { %v5161_v46 = vadd.f32 %v5129_v55, %v5097_v51  ;;  %v5064_v18 = vmul.f32 %v4974_v45, %v9131_v33  ;;  %v5188_v28 = vsel %vm848_vm4, %v5186_v8, %v5187_v4  ;;  %v5256_v5 = vsel %vm848_vm4, %v5187_v4, 0.0 }
 0x3e2   : > { %v5368_v37 = vmul.f32 0.4, %v5336_v58  ;;  %v5305_v10 = vadd.f32 %v5273_v47, %v5145_v16  ;;  %v5272_v20 = vmul.f32 %v5188_v28, %v9148_v24  ;;  %v5352_v14 = vadd.f32 %v9021_v48, %v5319_v61 }
 0x3e3   : > { %v5321_v30 = vadd.f32 %v5289_v0, %v5161_v46  ;;  %v5096_v44 = vadd.f32 %v5064_v18, %v10228_v12  ;;  %v5288_v6 = vmul.f32 %v5256_v5, %v9148_v24  ;;  %v4977_v8 = vrot.slane %v9166_v7, 7  ;;  %v6147_v5 = vld [vmem:[%s9516_s6 + $0x50] sm:$0x3f] }
 0x3e4   : > { %v5400_v3 = vmax.f32 %v5336_v58, %v5368_v37  ;;  %v5338_v42 = vadd.f32 %v9021_v48, %v5305_v10  ;;  %v5304_v33 = vadd.f32 %v5272_v20, %v5144_v57  ;;  %v5384_v11 = vmul.f32 0.4, %v5352_v14 }
 0x3e5   : > { %v5354_v16 = vadd.f32 %v9021_v48, %v5321_v30  ;;  %v5160_v55 = vadd.f32 %v5128_v41, %v5096_v44  ;;  %v5130_v31 = vmul.f32 %v9166_v7, %v9141_v29  ;;  %v10229_v24 = vrot.slane %v9156_v56, 7  ;;  %v6148_v30 = vld [vmem:[%s9516_s6 + $0x48] sm:$0x3f] }
 0x3e6   : > { %5432 = vst [vmem:[%s9090_s16 + $0x20] sm:$0xff] %v5400_v3  ;;  %v5370_v54 = vmul.f32 0.4, %v5338_v42  ;;  %v5337_v19 = vadd.f32 %v9021_v48, %v5304_v33  ;;  %v5193_v57 = vrot.slane %v9166_v7, 1  ;;  %v5416_v2 = vmax.f32 %v5352_v14, %v5384_v11 }
 0x3e7   : > { %v4978_v43 = vsel %vm787_vm3, %v10229_v24, %v4977_v8  ;;  %v5386_v38 = vmul.f32 0.4, %v5354_v16  ;;  %v5320_v22 = vadd.f32 %v5288_v6, %v5160_v55  ;;  %v10230_v23 = vrot.slane %v9156_v56, 1  ;;  %v6149_v6 = vld [vmem:[%s9516_s6 + $0x58] sm:$0x3f] }
 0x3e8   : > { %v5066_v36 = vmul.f32 %v4978_v43, %v9138_v35  ;;  %v5402_v15 = vmax.f32 %v5338_v42, %v5370_v54  ;;  %v5369_v29 = vmul.f32 0.4, %v5337_v19  ;;  %v5258_v41 = vsel %vm848_vm4, %v5193_v57, 0.0  ;;  %5448 = vst [vmem:[%s9090_s16 + $0xa0] sm:$0xff] %v5416_v2 }
 0x3e9   : > { %v5194_v59 = vsel %vm848_vm4, %v10230_v23, %v5193_v57  ;;  %v5418_v4 = vmax.f32 %v5354_v16, %v5386_v38  ;;  %v5353_v7 = vadd.f32 %v9021_v48, %v5320_v22  ;;  %v5290_v56 = vmul.f32 %v5258_v41, %v9153_v1 }
 0x3ea   : > { %v5098_v32 = vadd.f32 %v5066_v36, %v10231_v9  ;;  %v5274_v51 = vmul.f32 %v5194_v59, %v9153_v1  ;;  %5434 = vst [vmem:[%s9090_s16 + $0x30] sm:$0xff] %v5402_v15  ;;  %v5401_v35 = vmax.f32 %v5337_v19, %v5369_v29  ;;  %v6146_v1 = vld [vmem:[%s9516_s6 + $0x40] sm:$0x3f]  ;;  %v1637_v20 = vrot.slane %v6147_v5, %v10209_v13 }
 0x3eb   : > { %5450 = vst [vmem:[%s9090_s16 + $0xb0] sm:$0xff] %v5418_v4  ;;  %v5385_v39 = vmul.f32 0.4, %v5353_v7  ;;  %v1565_v10 = vrot.slane %v6146_v1, %v10210_v60  ;;  %v1573_v14 = vrot.slane %v6147_v5, %v10210_v60  ;;  %v9243_v12 = vrot.slane %v6148_v30, %v10210_v60 }
 0x3ec   : > { %v5162_v25 = vadd.f32 %v5130_v31, %v5098_v32  ;;  %v5306_v58 = vadd.f32 %v5274_v51, %v9180_v40  ;;  %5433 = vst [vmem:[%s9090_s16 + $0x28] sm:$0xff] %v5401_v35  ;;  %v1629_v40 = vrot.slane %v6146_v1, %v10209_v13  ;;  %v1633_v44 = vrot.slane %v6148_v30, %v10209_v13 }
 0x3ed   : > { %v5417_v47 = vmax.f32 %v5353_v7, %v5385_v39  ;;  %v9250_v3 = vrot.slane %v6149_v6, %v10210_v60  ;;  %v9253_v33 = vrot.slane %v6149_v6, %v10209_v13  ;;  %v1693_v8 = vrot.slane %v6146_v1, %v10211_v27 }
 0x3ee   : > { %v5322_v0 = vadd.f32 %v5290_v56, %v5162_v25  ;;  %v5339_v45 = vadd.f32 %v9021_v48, %v5306_v58  ;;  %v9257_v11 = vrot.slane %v6147_v5, %v10211_v27  ;;  %v9260_v16 = vrot.slane %v6148_v30, %v10211_v27 }
 0x3ef   : > { %5449 = vst [vmem:[%s9090_s16 + $0xa8] sm:$0xff] %v5417_v47  ;;  %v9265_v43 = vrot.slane %v6149_v6, %v10211_v27 }
 0x3f0   : > { %v5355_v61 = vadd.f32 %v9021_v48, %v5322_v0  ;;  %v5371_v46 = vmul.f32 0.4, %v5339_v45 }
 0x3f2   : > { %v5387_v18 = vmul.f32 0.4, %v5355_v61  ;;  %v5403_v28 = vmax.f32 %v5339_v45, %v5371_v46 }
 0x3f4   : > { %v5419_v37 = vmax.f32 %v5355_v61, %v5387_v18  ;;  %5435 = vst [vmem:[%s9090_s16 + $0x38] sm:$0xff] %v5403_v28 }
 0x3f6   : > { %5451 = vst [vmem:[%s9090_s16 + $0xb8] sm:$0xff] %v5419_v37  ;;  %v4393_v42 = vpop.f32.mrb[32].mxu0 }
 0x3f7   : > { %v4955_v55 = vrot.slane %v4393_v42, 7  ;;  %v5115_v31 = vmul.f32 %v4393_v42, %v1629_v40  ;;  %v5195_v54 = vrot.slane %v4393_v42, 1  ;;  %v4436_v19 = vpop.f32.mrb[40].mxu1  ;;  %v9262_v24 = vpop.f32.mrb[33].mxu0 }
 0x3f8   : > { %v4957_v57 = vrot.slane %v4436_v19, 7  ;;  %v5117_v2 = vmul.f32 %v4436_v19, %v1637_v20  ;;  %v5201_v38 = vrot.slane %v4436_v19, 1  ;;  %v4956_v22 = vrot.slane %v9262_v24, 7  ;;  %v9268_v36 = vpop.f32.mrb[41].mxu1  ;;  %v4397_v15 = vpop.f32.mrb[34].mxu0 }
 0x3f9   : > { %v5035_v29 = vsel %vm787_vm3, 0.0, %v4955_v55  ;;  %v5116_v23 = vmul.f32 %v9262_v24, %v1633_v44  ;;  %v5198_v59 = vrot.slane %v9262_v24, 1  ;;  %v4958_v41 = vrot.slane %v9268_v36, 7  ;;  %v4440_v4 = vpop.f32.mrb[42].mxu1  ;;  %v4399_v7 = vpop.f32.mrb[35].mxu0 }
 0x3fa   : > { %v5051_v9 = vmul.f32 %v5035_v29, %v1565_v10  ;;  %v5037_v32 = vsel %vm787_vm3, 0.0, %v4957_v57  ;;  %v5036_v51 = vsel %vm787_vm3, 0.0, %v4956_v22  ;;  %v5118_v35 = vmul.f32 %v9268_v36, %v9253_v33  ;;  %v9278_v39 = vpop.f32.mrb[43].mxu1 }
 0x3fb   : > { %v5053_v25 = vmul.f32 %v5037_v32, %v1573_v14  ;;  %v5052_v56 = vmul.f32 %v5036_v51, %v9243_v12  ;;  %v5038_v58 = vsel %vm787_vm3, 0.0, %v4958_v41  ;;  %v5204_v47 = vrot.slane %v9268_v36, 1 }
 0x3fc   : > { %v5083_v0 = vadd.f32 %v5051_v9, %v8747_v52  ;;  %v5054_v45 = vmul.f32 %v5038_v58, %v9250_v3  ;;  %v4979_v61 = vrot.slane %v4397_v15, 7  ;;  %v5131_v46 = vmul.f32 %v4397_v15, %v1629_v40 }
 0x3fd   : > { %v5085_v18 = vadd.f32 %v5053_v25, %v8749_v63  ;;  %v5084_v28 = vadd.f32 %v5052_v56, %v8753_v34  ;;  %v5196_v37 = vrot.slane %v4397_v15, 1  ;;  %v4983_v1 = vrot.slane %v4440_v4, 7 }
 0x3fe   : > { %v5147_v5 = vadd.f32 %v5115_v31, %v5083_v0  ;;  %v5086_v30 = vadd.f32 %v5054_v45, %v8765_v50  ;;  %v4980_v6 = vsel %vm787_vm3, %v4955_v55, %v4979_v61  ;;  %v5133_v42 = vmul.f32 %v4440_v4, %v1637_v20 }
 0x3ff   : > { %v5149_v19 = vadd.f32 %v5117_v2, %v5085_v18  ;;  %v5148_v24 = vadd.f32 %v5116_v23, %v5084_v28  ;;  %v5067_v29 = vmul.f32 %v4980_v6, %v1565_v10  ;;  %v5197_v52 = vsel %vm848_vm4, %v5195_v54, %v5196_v37 }
 0x400   : > { %v9292_v9 = vadd.f32 %v5118_v35, %v5086_v30  ;;  %v5259_v40 = vsel %vm848_vm4, %v5196_v37, 0.0  ;;  %v5275_v63 = vmul.f32 %v5197_v52, %v1693_v8  ;;  %v4984_v34 = vsel %vm787_vm3, %v4957_v57, %v4983_v1 }
 0x401   : > { %v5099_v15 = vadd.f32 %v5067_v29, %v8723_v21  ;;  %v5291_v31 = vmul.f32 %v5259_v40, %v1693_v8  ;;  %v5069_v32 = vmul.f32 %v4984_v34, %v1573_v14  ;;  %v5202_v50 = vrot.slane %v4440_v4, 1 }
 0x402   : > { %v5307_v51 = vadd.f32 %v5275_v63, %v5147_v5  ;;  %v4981_v55 = vrot.slane %v4399_v7, 7  ;;  %v5132_v20 = vmul.f32 %v4399_v7, %v1633_v44  ;;  %v5199_v2 = vrot.slane %v4399_v7, 1 }
 0x403   : > { %v5163_v23 = vadd.f32 %v5131_v46, %v5099_v15  ;;  %v5101_v10 = vadd.f32 %v5069_v32, %v8731_v62  ;;  %v5203_v54 = vsel %vm848_vm4, %v5201_v38, %v5202_v50  ;;  %v5261_v35 = vsel %vm848_vm4, %v5202_v50, 0.0 }
 0x404   : > { %v5340_v25 = vadd.f32 %v9021_v48, %v5307_v51  ;;  %v5277_v57 = vmul.f32 %v5203_v54, %v9257_v11  ;;  %v5293_v21 = vmul.f32 %v5261_v35, %v9257_v11  ;;  %v4982_v14 = vsel %vm787_vm3, %v4956_v22, %v4981_v55  ;;  %v6151_v54 = vld [vmem:[%s9516_s6 + $0x70] sm:$0x3f] }
 0x405   : > { %v5323_v8 = vadd.f32 %v5291_v31, %v5163_v23  ;;  %v5165_v4 = vadd.f32 %v5133_v42, %v5101_v10  ;;  %v5068_v44 = vmul.f32 %v4982_v14, %v9243_v12  ;;  %v5200_v7 = vsel %vm848_vm4, %v5198_v59, %v5199_v2 }
 0x406   : > { %v5372_v56 = vmul.f32 0.4, %v5340_v25  ;;  %v5309_v62 = vadd.f32 %v5277_v57, %v5149_v19  ;;  %v5260_v38 = vsel %vm848_vm4, %v5199_v2, 0.0  ;;  %v5276_v58 = vmul.f32 %v5200_v7, %v9260_v16  ;;  %v6152_v57 = vld [vmem:[%s9516_s6 + $0x68] sm:$0x3f] }
 0x407   : > { %v5356_v0 = vadd.f32 %v9021_v48, %v5323_v8  ;;  %v5325_v45 = vadd.f32 %v5293_v21, %v5165_v4  ;;  %v5100_v11 = vadd.f32 %v5068_v44, %v8755_v17  ;;  %v5292_v22 = vmul.f32 %v5260_v38, %v9260_v16  ;;  %v6153_v8 = vld [vmem:[%s9516_s6 + $0x78] sm:$0x3f] }
 0x408   : > { %v5404_v61 = vmax.f32 %v5340_v25, %v5372_v56  ;;  %v5342_v46 = vadd.f32 %v9021_v48, %v5309_v62  ;;  %v5308_v12 = vadd.f32 %v5276_v58, %v5148_v24  ;;  %v4985_v59 = vrot.slane %v9278_v39, 7 }
 0x409   : > { %v5388_v18 = vmul.f32 0.4, %v5356_v0  ;;  %v5358_v28 = vadd.f32 %v9021_v48, %v5325_v45  ;;  %v5164_v37 = vadd.f32 %v5132_v20, %v5100_v11  ;;  %v5134_v1 = vmul.f32 %v9278_v39, %v9253_v33 }
 0x40a   : > { %5436 = vst [vmem:[%s9090_s16 + $0x40] sm:$0xff] %v5404_v61  ;;  %v5374_v5 = vmul.f32 0.4, %v5342_v46  ;;  %v5341_v17 = vadd.f32 %v9021_v48, %v5308_v12  ;;  %v4986_v16 = vsel %vm787_vm3, %v4958_v41, %v4985_v59  ;;  %v5205_v30 = vrot.slane %v9278_v39, 1 }
 0x40b   : > { %v5420_v6 = vmax.f32 %v5356_v0, %v5388_v18  ;;  %v5390_v42 = vmul.f32 0.4, %v5358_v28  ;;  %v5324_v19 = vadd.f32 %v5292_v22, %v5164_v37  ;;  %v5070_v24 = vmul.f32 %v4986_v16, %v9250_v3 }
 0x40c   : > { %v5406_v29 = vmax.f32 %v5342_v46, %v5374_v5  ;;  %v5373_v33 = vmul.f32 0.4, %v5341_v17  ;;  %v5206_v52 = vsel %vm848_vm4, %v5204_v47, %v5205_v30  ;;  %v5262_v40 = vsel %vm848_vm4, %v5205_v30, 0.0 }
 0x40d   : > { %5452 = vst [vmem:[%s9090_s16 + $0xc0] sm:$0xff] %v5420_v6  ;;  %v5422_v41 = vmax.f32 %v5358_v28, %v5390_v42  ;;  %v5357_v39 = vadd.f32 %v9021_v48, %v5324_v19  ;;  %v5102_v63 = vadd.f32 %v5070_v24, %v8762_v26  ;;  %v5278_v34 = vmul.f32 %v5206_v52, %v9265_v43 }
 0x40e   : > { %5438 = vst [vmem:[%s9090_s16 + $0x50] sm:$0xff] %v5406_v29  ;;  %v5405_v3 = vmax.f32 %v5341_v17, %v5373_v33  ;;  %v5294_v36 = vmul.f32 %v5262_v40, %v9265_v43  ;;  %v6150_v43 = vld [vmem:[%s9516_s6 + $0x60] sm:$0x3f]  ;;  %v1653_v35 = vrot.slane %v6151_v54, %v10209_v13  ;;  %v1589_v25 = vrot.slane %v6151_v54, %v10210_v60 }
 0x40f   : > { %5454 = vst [vmem:[%s9090_s16 + $0xd0] sm:$0xff] %v5422_v41  ;;  %v5389_v15 = vmul.f32 0.4, %v5357_v39  ;;  %v5166_v31 = vadd.f32 %v5134_v1, %v5102_v63  ;;  %v5310_v47 = vadd.f32 %v5278_v34, %v9292_v9  ;;  %v1645_v9 = vrot.slane %v6150_v43, %v10209_v13 }
 0x410   : > { %5437 = vst [vmem:[%s9090_s16 + $0x48] sm:$0xff] %v5405_v3  ;;  %v1581_v10 = vrot.slane %v6150_v43, %v10210_v60  ;;  %v9355_v21 = vrot.slane %v6152_v57, %v10210_v60  ;;  %v1649_v14 = vrot.slane %v6152_v57, %v10209_v13  ;;  %v9362_v4 = vrot.slane %v6153_v8, %v10210_v60  ;;  %v10232_v3 = vld [vmem:[#allocation21_spill] sm:$0xff] }
 0x411   : > { %v5421_v32 = vmax.f32 %v5357_v39, %v5389_v15  ;;  %v5326_v50 = vadd.f32 %v5294_v36, %v5166_v31  ;;  %v5343_v51 = vadd.f32 %v9021_v48, %v5310_v47  ;;  %v9365_v7 = vrot.slane %v6153_v8, %v10209_v13 }
 0x412   : > { %v1709_v56 = vrot.slane %v6150_v43, %v10211_v27  ;;  %v9369_v62 = vrot.slane %v6151_v54, %v10211_v27  ;;  %v9372_v38 = vrot.slane %v6152_v57, %v10211_v27  ;;  %v9377_v60 = vrot.slane %v6153_v8, %v10211_v27  ;;  %v10234_v54 = vld [vmem:[#allocation19_spill] sm:$0xff] }
 0x413   : > { %5453 = vst [vmem:[%s9090_s16 + $0xc8] sm:$0xff] %v5421_v32  ;;  %v5359_v26 = vadd.f32 %v9021_v48, %v5326_v50  ;;  %v5375_v55 = vmul.f32 0.4, %v5343_v51  ;;  %v10233_v32 = vld [vmem:[#allocation24_spill] sm:$0xff] }
 0x415   : > { %v5391_v20 = vmul.f32 0.4, %v5359_v26  ;;  %v5407_v2 = vmax.f32 %v5343_v51, %v5375_v55 }
 0x417   : > { %v5423_v23 = vmax.f32 %v5359_v26, %v5391_v20  ;;  %5439 = vst [vmem:[%s9090_s16 + $0x58] sm:$0xff] %v5407_v2 }
 0x419   : > { %5455 = vst [vmem:[%s9090_s16 + $0xd8] sm:$0xff] %v5423_v23 }
 0x41a   : > { %v4479_v44 = vpop.f32.mrb[36].mxu0 }
 0x41b   : > { %v4959_v58 = vrot.slane %v4479_v44, 7  ;;  %v5119_v0 = vmul.f32 %v4479_v44, %v1645_v9  ;;  %v5207_v45 = vrot.slane %v4479_v44, 1  ;;  %v4522_v11 = vpop.f32.mrb[44].mxu1  ;;  %v9374_v22 = vpop.f32.mrb[37].mxu0 }
 0x41c   : > { %v4961_v61 = vrot.slane %v4522_v11, 7  ;;  %v5121_v13 = vmul.f32 %v4522_v11, %v1653_v35  ;;  %v5213_v46 = vrot.slane %v4522_v11, 1  ;;  %v4960_v12 = vrot.slane %v9374_v22, 7  ;;  %v9380_v59 = vpop.f32.mrb[45].mxu1  ;;  %v4483_v18 = vpop.f32.mrb[38].mxu0 }
 0x41d   : > { %v5039_v28 = vsel %vm787_vm3, 0.0, %v4959_v58  ;;  %v5120_v37 = vmul.f32 %v9374_v22, %v1649_v14  ;;  %v5210_v1 = vrot.slane %v9374_v22, 1  ;;  %v4962_v5 = vrot.slane %v9380_v59, 7  ;;  %v4526_v17 = vpop.f32.mrb[46].mxu1  ;;  %v4485_v16 = vpop.f32.mrb[39].mxu0 }
 0x41e   : > { %v5055_v27 = vmul.f32 %v5039_v28, %v1581_v10  ;;  %v5041_v30 = vsel %vm787_vm3, 0.0, %v4961_v61  ;;  %v5040_v6 = vsel %vm787_vm3, 0.0, %v4960_v12  ;;  %v5122_v42 = vmul.f32 %v9380_v59, %v9365_v7  ;;  %v9390_v19 = vpop.f32.mrb[47].mxu1 }
 0x41f   : > { %v5057_v24 = vmul.f32 %v5041_v30, %v1589_v25  ;;  %v5056_v29 = vmul.f32 %v5040_v6, %v9355_v21  ;;  %v5042_v33 = vsel %vm787_vm3, 0.0, %v4962_v5  ;;  %v5216_v52 = vrot.slane %v9380_v59, 1 }
 0x420   : > { %v5087_v40 = vadd.f32 %v5055_v27, %v8904_v49  ;;  %v5058_v41 = vmul.f32 %v5042_v33, %v9362_v4  ;;  %v4987_v39 = vrot.slane %v4483_v18, 7  ;;  %v5135_v63 = vmul.f32 %v4483_v18, %v1645_v9  ;;  %v10236_v33 = vld [vmem:[#allocation22_spill] sm:$0xff] }
 0x421   : > { %v5089_v34 = vadd.f32 %v5057_v24, %v8906_v53  ;;  %v5088_v15 = vadd.f32 %v5056_v29, %v10232_v3  ;;  %v5208_v31 = vrot.slane %v4483_v18, 1  ;;  %v4991_v36 = vrot.slane %v4526_v17, 7 }
 0x422   : > { %v5151_v47 = vadd.f32 %v5119_v0, %v5087_v40  ;;  %v5090_v50 = vadd.f32 %v5058_v41, %v10233_v32  ;;  %v4988_v51 = vsel %vm787_vm3, %v4959_v58, %v4987_v39  ;;  %v5137_v26 = vmul.f32 %v4526_v17, %v1653_v35 }
 0x423   : > { %v5153_v55 = vadd.f32 %v5121_v13, %v5089_v34  ;;  %v5152_v20 = vadd.f32 %v5120_v37, %v5088_v15  ;;  %v5071_v2 = vmul.f32 %v4988_v51, %v1581_v10  ;;  %v5209_v49 = vsel %vm848_vm4, %v5207_v45, %v5208_v31  ;;  %v10235_v10 = vld [vmem:[#allocation20_spill] sm:$0xff] }
 0x424   : > { %v9404_v23 = vadd.f32 %v5122_v42, %v5090_v50  ;;  %v5263_v43 = vsel %vm848_vm4, %v5208_v31, 0.0  ;;  %v5279_v53 = vmul.f32 %v5209_v49, %v1709_v56  ;;  %v4992_v9 = vsel %vm787_vm3, %v4961_v61, %v4991_v36 }
 0x425   : > { %v5103_v57 = vadd.f32 %v5071_v2, %v10234_v54  ;;  %v5295_v8 = vmul.f32 %v5263_v43, %v1709_v56  ;;  %v5073_v44 = vmul.f32 %v4992_v9, %v1589_v25  ;;  %v5214_v0 = vrot.slane %v4526_v17, 1  ;;  %v10237_v2 = vld [vmem:[#allocation23_spill] sm:$0xff] }
 0x426   : > { %v5311_v11 = vadd.f32 %v5279_v53, %v5151_v47  ;;  %v4989_v58 = vrot.slane %v4485_v16, 7  ;;  %v5136_v35 = vmul.f32 %v4485_v16, %v1649_v14  ;;  %v5211_v22 = vrot.slane %v4485_v16, 1 }
 0x427   : > { %v5167_v13 = vadd.f32 %v5135_v63, %v5103_v57  ;;  %v5105_v18 = vadd.f32 %v5073_v44, %v10235_v10  ;;  %v5215_v45 = vsel %vm848_vm4, %v5213_v46, %v5214_v0  ;;  %v5265_v28 = vsel %vm848_vm4, %v5214_v0, 0.0 }
 0x428   : > { %v5344_v37 = vadd.f32 %v9021_v48, %v5311_v11  ;;  %v5281_v61 = vmul.f32 %v5215_v45, %v9369_v62  ;;  %v5297_v27 = vmul.f32 %v5265_v28, %v9369_v62  ;;  %v4990_v25 = vsel %vm787_vm3, %v4960_v12, %v4989_v58 }
 0x429   : > { %v5327_v56 = vadd.f32 %v5295_v8, %v5167_v13  ;;  %v5169_v17 = vadd.f32 %v5137_v26, %v5105_v18  ;;  %v5072_v14 = vmul.f32 %v4990_v25, %v9355_v21  ;;  %v5212_v16 = vsel %vm848_vm4, %v5210_v1, %v5211_v22 }
 0x42a   : > { %v5376_v30 = vmul.f32 0.4, %v5344_v37  ;;  %v5313_v6 = vadd.f32 %v5281_v61, %v5153_v55  ;;  %v5264_v46 = vsel %vm848_vm4, %v5211_v22, 0.0  ;;  %v5280_v42 = vmul.f32 %v5212_v16, %v9372_v38 }
 0x42b   : > { %v5360_v24 = vadd.f32 %v9021_v48, %v5327_v56  ;;  %v5329_v29 = vadd.f32 %v5297_v27, %v5169_v17  ;;  %v5104_v62 = vadd.f32 %v5072_v14, %v10236_v33  ;;  %v5296_v12 = vmul.f32 %v5264_v46, %v9372_v38 }
 0x42c   : > { %v5408_v40 = vmax.f32 %v5344_v37, %v5376_v30  ;;  %v5346_v41 = vadd.f32 %v9021_v48, %v5313_v6  ;;  %v5312_v21 = vadd.f32 %v5280_v42, %v5152_v20  ;;  %v4993_v1 = vrot.slane %v9390_v19, 7 }
 0x42d   : > { %v5392_v39 = vmul.f32 0.4, %v5360_v24  ;;  %v5362_v63 = vadd.f32 %v9021_v48, %v5329_v29  ;;  %v5168_v34 = vadd.f32 %v5136_v35, %v5104_v62  ;;  %v5138_v3 = vmul.f32 %v9390_v19, %v9365_v7 }
 0x42e   : > { %5440 = vst [vmem:[%s9090_s16 + $0x60] sm:$0xff] %v5408_v40  ;;  %v5378_v15 = vmul.f32 0.4, %v5346_v41  ;;  %v5345_v31 = vadd.f32 %v9021_v48, %v5312_v21  ;;  %v4994_v38 = vsel %vm787_vm3, %v4962_v5, %v4993_v1  ;;  %v5217_v36 = vrot.slane %v9390_v19, 1 }
 0x42f   : > { %v5424_v47 = vmax.f32 %v5360_v24, %v5392_v39  ;;  %v5394_v32 = vmul.f32 0.4, %v5362_v63  ;;  %v5328_v50 = vadd.f32 %v5296_v12, %v5168_v34  ;;  %v5074_v51 = vmul.f32 %v4994_v38, %v9362_v4 }
 0x430   : > { %v5410_v26 = vmax.f32 %v5346_v41, %v5378_v15  ;;  %v5377_v7 = vmul.f32 0.4, %v5345_v31  ;;  %v5218_v55 = vsel %vm848_vm4, %v5216_v52, %v5217_v36  ;;  %v5266_v20 = vsel %vm848_vm4, %v5217_v36, 0.0 }
 0x431   : > { %5456 = vst [vmem:[%s9090_s16 + $0xe0] sm:$0xff] %v5424_v47  ;;  %v5426_v5 = vmax.f32 %v5362_v63, %v5394_v32  ;;  %v5361_v19 = vadd.f32 %v9021_v48, %v5328_v50  ;;  %v5106_v49 = vadd.f32 %v5074_v51, %v10237_v2  ;;  %v5282_v43 = vmul.f32 %v5218_v55, %v9377_v60 }
 0x432   : > { %5442 = vst [vmem:[%s9090_s16 + $0x70] sm:$0xff] %v5410_v26  ;;  %v5409_v4 = vmax.f32 %v5345_v31, %v5377_v7  ;;  %v5298_v52 = vmul.f32 %v5266_v20, %v9377_v60 }
 0x433   : > { %5458 = vst [vmem:[%s9090_s16 + $0xf0] sm:$0xff] %v5426_v5  ;;  %v5393_v53 = vmul.f32 0.4, %v5361_v19  ;;  %v5170_v59 = vadd.f32 %v5138_v3, %v5106_v49  ;;  %v5314_v9 = vadd.f32 %v5282_v43, %v9404_v23 }
 0x434   : > { %5441 = vst [vmem:[%s9090_s16 + $0x68] sm:$0xff] %v5409_v4 }
 0x435   : > { %v5425_v54 = vmax.f32 %v5361_v19, %v5393_v53  ;;  %v5330_v57 = vadd.f32 %v5298_v52, %v5170_v59  ;;  %v5347_v8 = vadd.f32 %v9021_v48, %v5314_v9 }
 0x437   : > { %5457 = vst [vmem:[%s9090_s16 + $0xe8] sm:$0xff] %v5425_v54  ;;  %v5363_v44 = vadd.f32 %v9021_v48, %v5330_v57  ;;  %v5379_v0 = vmul.f32 0.4, %v5347_v8 }
 0x439   : > { %v5395_v11 = vmul.f32 0.4, %v5363_v44  ;;  %v5411_v58 = vmax.f32 %v5347_v8, %v5379_v0 }
 0x43b   : > { %v5427_v60 = vmax.f32 %v5363_v44, %v5395_v11  ;;  %5443 = vst [vmem:[%s9090_s16 + $0x78] sm:$0xff] %v5411_v58 }
 0x43d   : > { %5459 = vst [vmem:[%s9090_s16 + $0xf8] sm:$0xff] %v5427_v60 }
 0x43e   : > { %6182 = shalt.err (!%p6179_p3)
}
 0x43f   : > { %s6183_s12 = scalar_lea.hbm %s9456_s11, 4096  ;;  %s6187_s22 = scalar_lea.hbm %s9518_s8, 8192 }
 0x440   : > { %p6184_p5 = scmp.ne.s32.totalorder %s9456_s11, %s6183_s12  ;;  %p6188_p9 = scmp.lt.u32.totalorder %s9456_s11, %s9518_s8 }
 0x441   : > { %p6189_p10 = scmp.lt.u32.totalorder %s6187_s22, %s6183_s12  ;;  %p6191_p12 = scmp.lt.u32.totalorder %s6183_s12, %s9456_s11 }
 0x442   : > { %p6185_p6 = pnand %p6184_p5, %p6347_p4 }
 0x443   : > { %p6190_p11 = por %p6189_p10, %p6188_p9 }
 0x444   : > { %p6186_p7 = pneg %p6185_p6 }
 0x445   : > { %p6192_p13 = por %p6191_p12, %p6190_p11 }
 0x447   : > { %p6193_p0 = pnand %p6192_p13, %p6186_p7 }
 0x449   : > { %6196 = shalt.err (!%p6193_p0)
}
 0x44a   : > { %s6260_s30 = smov 2048   ;;  %s6261_s23 = smov 128  }
 0x44b   : > { %6039 = dma.vmem_to_hbm [thread:$0]  (%p6347_p4), %s9458_s24, 4096, %s9456_s11, %s9464_s14, %s6260_s30, %s6260_s30, %s6261_s23  }
 0x44c PF: > { %p6051_p1 = scmp.ge.s32.totalorder %s6251_s10, 2  ;;  %s5491_s19 = sand.u32 1, %s6231_s27  }
 0x44d   : > { %s5492_s20 = scalar_lea.sflag [#allocation4], %s5491_s19 }
 0x44e   : > { %p6046_p2 = pnand %p6051_p1, %p6354_p8 }
 0x450   : > { %6226 = dma.done.wait (!%p6046_p2), %s5492_s20, 4096  }
 0x451   : > { %6228 = vsyncadd (!%p6046_p2), %s5492_s20, 4294963200  ;;  %s22_s10 = sadd.s32 1, %s6251_s10   ;;  %s10238_s27 = smov %s6235_s28 }
 0x452   : > { %p19_p3 = scmp.ge.s32.totalorder %s22_s10, 4   ;;  %s10239_s28 = smov %s6239_s29 }
 0x453   : > { %s10240_s29 = smov %s6360_s18  ;;  %s10241_s30 = smov %s6247_s9 }
 0x454   : > { %s10242_s9 = smov %s10244_s13  ;;  %21 = sbr.rel (!%p19_p3) target bundleno = 5 (0x5), region = 92 }
 0x45b   :  { %5497 = vsyncpa [#allocation4], 1 }
 0x45c   :  { %5499 = vsyncpa [#allocation4 + $0x1], 1 }
 0x45d   :  { %5500 = vsyncpa [#allocation5], 1 }
 0x45e   :  { %5502 = vsyncpa [#allocation5 + $0x1], 1 }

</bundles_post_ra>
